<compile_context>
chip_gen: v7x
topology: tpu7x:2x2x1
jax: 0.10.0
libtpu: 0.0.40
codegen_flags: <defaults>
</compile_context>

<pallas_src>
import functools

import jax
import jax.numpy as jnp
import numpy as np
from jax.experimental import pallas as pl
from jax.experimental.pallas import tpu as pltpu

# ---------------- synthetic "GPT-2 small-small" config ----------------
VOCAB = 256          # len(tokenizer) after resize_token_embeddings
N_EMBD = 128         # gpt_embedding_size
N_HEAD = 2
HEAD_DIM = N_EMBD // N_HEAD
N_LAYER = 2
N_POS = 64
ECG_LEN = 4          # encoded_ecg_length
ECG_SIZE = 64        # encoded_ecg_size
LN_EPS = 1e-5


# ---------------- in-kernel helpers (traced inside Pallas bodies, f32) ----------------
def _ln(x, g, b):
    mu = jnp.mean(x, axis=-1, keepdims=True)
    xc = x - mu
    var = jnp.mean(xc * xc, axis=-1, keepdims=True)
    return xc * jax.lax.rsqrt(var + LN_EPS) * g + b


def _gelu_new(x):
    c = jnp.float32(0.7978845608028654)   # sqrt(2/pi)
    return 0.5 * x * (1.0 + jnp.tanh(c * (x + 0.044715 * x * x * x)))


# ---------------- fused prefix-MLP + embedding-concat + positional-add kernel ----------------
def _embed_kernel(prefix_ref, emb_ref, w1_ref, b1_ref, w2_ref, b2_ref, wpe_ref, o_ref):
    # ecg_project MLP: Linear(E, D/2) -> Tanh -> Linear(D/2, D), intermediate in vregs.
    pf = prefix_ref[0].astype(jnp.bfloat16)                               # (L, E)
    hmid = jnp.tanh(
        jnp.dot(pf, w1_ref[...], preferred_element_type=jnp.float32) + b1_ref[...])
    pproj = jnp.dot(hmid.astype(jnp.bfloat16), w2_ref[...],
                    preferred_element_type=jnp.float32) + b2_ref[...]     # (L, D)
    emb = emb_ref[0].astype(jnp.float32)                                  # (S, D)
    h0 = jnp.concatenate([pproj, emb], axis=0) + wpe_ref[...]             # (T, D)
    o_ref[0] = h0.astype(o_ref.dtype)


def pallas_embed(prefix, emb_text, params, T):
    B = prefix.shape[0]
    S = emb_text.shape[1]
    D = N_EMBD
    wpe_slab = params["wpe"][:T]                                          # (T, D) f32
    full2 = lambda b: (0, 0)
    return pl.pallas_call(
        _embed_kernel,
        out_shape=jax.ShapeDtypeStruct((B, T, D), jnp.float32),
        grid=(B,),
        in_specs=[
            pl.BlockSpec((1, ECG_LEN, ECG_SIZE), lambda b: (b, 0, 0)),
            pl.BlockSpec((1, S, D), lambda b: (b, 0, 0)),
            pl.BlockSpec((ECG_SIZE, D // 2), full2),
            pl.BlockSpec((1, D // 2), full2),
            pl.BlockSpec((D // 2, D), full2),
            pl.BlockSpec((1, D), full2),
            pl.BlockSpec((T, D), full2),
        ],
        out_specs=pl.BlockSpec((1, T, D), lambda b: (b, 0, 0)),
        compiler_params=pltpu.CompilerParams(dimension_semantics=("parallel",)),
    )(prefix, emb_text, params["mlp_w1"], params["mlp_b1"],
      params["mlp_w2"], params["mlp_b2"], wpe_slab)


# ---------------- fused transformer-block kernel (one grid step per batch element) ----------------
def _block_kernel(h_ref, ln1g, ln1b, wqkv, bqkv, wproj, bproj,
                  ln2g, ln2b, wfc, bfc, wfc2, bfc2, o_ref,
                  *, nhead, head_dim, scale):
    D = nhead * head_dim
    h = h_ref[0].astype(jnp.float32)                                      # (T, D)

    # --- attention sub-block ---
    a = _ln(h, ln1g[...], ln1b[...])
    qkv = jnp.dot(a.astype(jnp.bfloat16), wqkv[...],
                  preferred_element_type=jnp.float32) + bqkv[...]         # (T, 3D)
    T = qkv.shape[0]
    row = jax.lax.broadcasted_iota(jnp.int32, (T, T), 0)
    col = jax.lax.broadcasted_iota(jnp.int32, (T, T), 1)
    heads = []
    for hd in range(nhead):
        q = qkv[:, hd * head_dim:(hd + 1) * head_dim]
        k = qkv[:, D + hd * head_dim:D + (hd + 1) * head_dim]
        v = qkv[:, 2 * D + hd * head_dim:2 * D + (hd + 1) * head_dim]
        # q @ k^T via dot_general (no in-kernel transpose); MXU bf16, f32 accumulate.
        s = jax.lax.dot_general(q.astype(jnp.bfloat16), k.astype(jnp.bfloat16),
                                (((1,), (1,)), ((), ())),
                                preferred_element_type=jnp.float32) * scale
        s = jnp.where(col <= row, s, jnp.float32(-1e9))                   # causal mask (f32)
        m = jnp.max(s, axis=-1, keepdims=True)
        p = jnp.exp(s - m)
        p = p * pl.reciprocal(jnp.sum(p, axis=-1, keepdims=True), approx=True)
        heads.append(jnp.dot(p.astype(jnp.bfloat16), v.astype(jnp.bfloat16),
                             preferred_element_type=jnp.float32))
    attn = jnp.concatenate(heads, axis=-1)                                # (T, D) lane-dense
    attn = jnp.dot(attn.astype(jnp.bfloat16), wproj[...],
                   preferred_element_type=jnp.float32) + bproj[...]
    h = h + attn

    # --- MLP sub-block ---
    m2 = _ln(h, ln2g[...], ln2b[...])
    m2 = jnp.dot(m2.astype(jnp.bfloat16), wfc[...],
                 preferred_element_type=jnp.float32) + bfc[...]
    m2 = _gelu_new(m2)
    m2 = jnp.dot(m2.astype(jnp.bfloat16), wfc2[...],
                 preferred_element_type=jnp.float32) + bfc2[...]
    o_ref[0] = (h + m2).astype(o_ref.dtype)


def pallas_block(h, blk):
    B, T, D = h.shape
    full2 = lambda b: (0, 0)
    kern = functools.partial(_block_kernel, nhead=N_HEAD, head_dim=HEAD_DIM,
                             scale=1.0 / float(np.sqrt(HEAD_DIM)))
    return pl.pallas_call(
        kern,
        out_shape=jax.ShapeDtypeStruct((B, T, D), jnp.float32),
        grid=(B,),
        in_specs=[
            pl.BlockSpec((1, T, D), lambda b: (b, 0, 0)),
            pl.BlockSpec((1, D), full2), pl.BlockSpec((1, D), full2),
            pl.BlockSpec((D, 3 * D), full2), pl.BlockSpec((1, 3 * D), full2),
            pl.BlockSpec((D, D), full2), pl.BlockSpec((1, D), full2),
            pl.BlockSpec((1, D), full2), pl.BlockSpec((1, D), full2),
            pl.BlockSpec((D, 4 * D), full2), pl.BlockSpec((1, 4 * D), full2),
            pl.BlockSpec((4 * D, D), full2), pl.BlockSpec((1, D), full2),
        ],
        out_specs=pl.BlockSpec((1, T, D), lambda b: (b, 0, 0)),
        compiler_params=pltpu.CompilerParams(dimension_semantics=("parallel",)),
    )(h, blk["ln1_g"], blk["ln1_b"], blk["attn_w"], blk["attn_b"],
      blk["proj_w"], blk["proj_b"], blk["ln2_g"], blk["ln2_b"],
      blk["fc_w"], blk["fc_b"], blk["fcproj_w"], blk["fcproj_b"])


# ---------------- fused final-LN + tied LM head + shifted cross-entropy kernel ----------------
def _head_kernel(*refs, with_loss):
    if with_loss:
        h_ref, lng, lnb, lmw, lab_ref, logits_ref, loss_ref = refs
    else:
        h_ref, lng, lnb, lmw, logits_ref = refs

    h = h_ref[0].astype(jnp.float32)                                      # (T, D)
    hf = _ln(h, lng[...], lnb[...])
    logits = jnp.dot(hf.astype(jnp.bfloat16), lmw[...],
                     preferred_element_type=jnp.float32)                  # (T, V)
    logits_ref[0] = logits.astype(logits_ref.dtype)

    if with_loss:
        sl = logits[:-1, :]                                               # (T-1, V)
        lab = lab_ref[0][1:, :]                                           # (T-1, 1) int32
        m = jnp.max(sl, axis=-1, keepdims=True)
        lse = m + jnp.log(jnp.sum(jnp.exp(sl - m), axis=-1, keepdims=True))
        colv = jax.lax.broadcasted_iota(jnp.int32, sl.shape, 1)
        picked = jnp.sum(jnp.where(colv == lab, sl, 0.0), axis=-1, keepdims=True)
        loss_ref[0] = (lse - picked).astype(loss_ref.dtype)               # (T-1, 1) per-token


def pallas_head(h, params, labels=None):
    B, T, D = h.shape
    V = VOCAB
    full2 = lambda b: (0, 0)

    if labels is None:
        logits = pl.pallas_call(
            functools.partial(_head_kernel, with_loss=False),
            out_shape=jax.ShapeDtypeStruct((B, T, V), jnp.float32),
            grid=(B,),
            in_specs=[
                pl.BlockSpec((1, T, D), lambda b: (b, 0, 0)),
                pl.BlockSpec((1, D), full2), pl.BlockSpec((1, D), full2),
                pl.BlockSpec((D, V), full2),
            ],
            out_specs=pl.BlockSpec((1, T, V), lambda b: (b, 0, 0)),
            compiler_params=pltpu.CompilerParams(dimension_semantics=("parallel",)),
        )(h, params["lnf_g"], params["lnf_b"], params["lm_w"])
        return None, logits

    labels3 = labels.astype(jnp.int32)[..., None]                         # (B, T, 1)
    logits, loss_tok = pl.pallas_call(
        functools.partial(_head_kernel, with_loss=True),
        out_shape=(jax.ShapeDtypeStruct((B, T, V), jnp.float32),
                   jax.ShapeDtypeStruct((B, T - 1, 1), jnp.float32)),
        grid=(B,),
        in_specs=[
            pl.BlockSpec((1, T, D), lambda b: (b, 0, 0)),
            pl.BlockSpec((1, D), full2), pl.BlockSpec((1, D), full2),
            pl.BlockSpec((D, V), full2),
            pl.BlockSpec((1, T, 1), lambda b: (b, 0, 0)),
        ],
        out_specs=(pl.BlockSpec((1, T, V), lambda b: (b, 0, 0)),
                   pl.BlockSpec((1, T - 1, 1), lambda b: (b, 0, 0))),
        compiler_params=pltpu.CompilerParams(dimension_semantics=("parallel",)),
    )(h, params["lnf_g"], params["lnf_b"], params["lm_w"], labels3)
    # HF mean over all B*(T-1) shifted tokens (prefix dummy-zero labels included, as in reference).
    loss = jnp.mean(loss_tok)
    return loss, logits


# ---------------- model assembly ----------------
def init_params(key):
    def nrm(k, shape, scale=0.02, dtype=jnp.float32):
        return (scale * jax.random.normal(k, shape, dtype=jnp.float32)).astype(dtype)

    keys = iter(jax.random.split(key, 4 + 4 * N_LAYER))
    wte = nrm(next(keys), (VOCAB, N_EMBD))
    params = {
        "wte": wte,
        "wpe": nrm(next(keys), (N_POS, N_EMBD)),
        "lm_w": wte.T.astype(jnp.bfloat16),          # tied LM head, precomputed (D, V) bf16
        "lnf_g": jnp.ones((1, N_EMBD), jnp.float32),
        "lnf_b": jnp.zeros((1, N_EMBD), jnp.float32),
        # ecg_project MLP: Linear(E, D/2) -> Tanh -> Linear(D/2, D)
        "mlp_w1": nrm(next(keys), (ECG_SIZE, N_EMBD // 2),
                      scale=1.0 / np.sqrt(ECG_SIZE), dtype=jnp.bfloat16),
        "mlp_b1": jnp.zeros((1, N_EMBD // 2), jnp.float32),
        "mlp_w2": nrm(next(keys), (N_EMBD // 2, N_EMBD),
                      scale=1.0 / np.sqrt(N_EMBD // 2), dtype=jnp.bfloat16),
        "mlp_b2": jnp.zeros((1, N_EMBD), jnp.float32),
        "blocks": [],
    }
    for _ in range(N_LAYER):
        blk = {
            "ln1_g": jnp.ones((1, N_EMBD), jnp.float32),
            "ln1_b": jnp.zeros((1, N_EMBD), jnp.float32),
            "attn_w": nrm(next(keys), (N_EMBD, 3 * N_EMBD), dtype=jnp.bfloat16),
            "attn_b": jnp.zeros((1, 3 * N_EMBD), jnp.float32),
            "proj_w": nrm(next(keys), (N_EMBD, N_EMBD), dtype=jnp.bfloat16),
            "proj_b": jnp.zeros((1, N_EMBD), jnp.float32),
            "ln2_g": jnp.ones((1, N_EMBD), jnp.float32),
            "ln2_b": jnp.zeros((1, N_EMBD), jnp.float32),
            "fc_w": nrm(next(keys), (N_EMBD, 4 * N_EMBD), dtype=jnp.bfloat16),
            "fc_b": jnp.zeros((1, 4 * N_EMBD), jnp.float32),
            "fcproj_w": nrm(next(keys), (4 * N_EMBD, N_EMBD), dtype=jnp.bfloat16),
            "fcproj_b": jnp.zeros((1, N_EMBD), jnp.float32),
        }
        params["blocks"].append(blk)
    return params


def gpt2_blocks_and_head(params, h0, labels):
    """Shared GPT-2 trunk: fused block kernels + fused LN_f/LM-head/CE kernel."""
    h = h0
    for blk in params["blocks"]:
        h = pallas_block(h, blk)
    return pallas_head(h, params, labels)


def caption_model_forward(params, tokens, prefix, mask=None, labels=None, pretrain=False):
    """CaptionModel.forward. tokens:(B,S) int32, prefix:(B, ECG_LEN, ECG_SIZE) f32."""
    # wte embedding lookup (gather) — plain-JAX glue fused by XLA under jit.
    embedding_text = jnp.take(params["wte"], tokens, axis=0)              # (B, S, D) f32

    if pretrain:
        # gpt on text embeddings only (not exercised in the demo below).
        T = tokens.shape[1]
        h0 = embedding_text + params["wpe"][:T][None, :, :]
        return gpt2_blocks_and_head(params, h0, labels)

    B, S = tokens.shape
    T = ECG_LEN + S
    # Fused: ecg_project MLP + concat(prefix_proj, text_emb) + wpe positional add.
    h0 = pallas_embed(prefix, embedding_text, params, T)

    if labels is not None:
        dummy_token = jnp.zeros((B, ECG_LEN), dtype=tokens.dtype)         # get_dummy_token
        labels = jnp.concatenate([dummy_token, tokens], axis=1)           # (B, T)

    # TODO(synk): attention_mask path not implemented (reference is invoked with mask=None).
    return gpt2_blocks_and_head(params, h0, labels)


if __name__ == "__main__":
    key = jax.random.PRNGKey(0)
    kp, kt, kpref = jax.random.split(key, 3)

    params = init_params(kp)

    B, S = 2, 8
    tokens = jax.random.randint(kt, (B, S), 0, VOCAB, dtype=jnp.int32)
    prefix = jax.random.normal(kpref, (B, ECG_LEN, ECG_SIZE), dtype=jnp.float32)

    fwd = jax.jit(caption_model_forward, static_argnames=("pretrain",))
    loss, logits = fwd(params, tokens, prefix, None, tokens)
    jax.block_until_ready((loss, logits))

    assert logits.shape == (B, ECG_LEN + S, VOCAB)
    assert loss.shape == ()
    print("KERNEL_OK")
</pallas_src>

<mosaic_0001>
module attributes {stable_mosaic.version = 11 : i64} {
  func.func @_block_kernel(%arg0: i32, %arg1: memref<1x12x128xf32, #tpu.memory_space<vmem>>, %arg2: memref<1x128xf32, #tpu.memory_space<vmem>>, %arg3: memref<1x128xf32, #tpu.memory_space<vmem>>, %arg4: memref<128x384xbf16, #tpu.memory_space<vmem>>, %arg5: memref<1x384xf32, #tpu.memory_space<vmem>>, %arg6: memref<128x128xbf16, #tpu.memory_space<vmem>>, %arg7: memref<1x128xf32, #tpu.memory_space<vmem>>, %arg8: memref<1x128xf32, #tpu.memory_space<vmem>>, %arg9: memref<1x128xf32, #tpu.memory_space<vmem>>, %arg10: memref<128x512xbf16, #tpu.memory_space<vmem>>, %arg11: memref<1x512xf32, #tpu.memory_space<vmem>>, %arg12: memref<512x128xbf16, #tpu.memory_space<vmem>>, %arg13: memref<1x128xf32, #tpu.memory_space<vmem>>, %arg14: memref<1x12x128xf32, #tpu.memory_space<vmem>>) attributes {dimension_semantics = [#tpu.dimension_semantics<parallel>], iteration_bounds = array<i64: 2>, scalar_prefetch = 0 : i64, scratch_operands = 0 : i64, tpu.core_type = #tpu.core_type<tc>, window_params = [{transform_indices = @transform_0, window_bounds = array<i64: 1, 12, 128>}, {pipeline_mode = #tpu.pipeline_mode<synchronous>, transform_indices = @transform_1, window_bounds = array<i64: 1, 128>}, {pipeline_mode = #tpu.pipeline_mode<synchronous>, transform_indices = @transform_2, window_bounds = array<i64: 1, 128>}, {pipeline_mode = #tpu.pipeline_mode<synchronous>, transform_indices = @transform_3, window_bounds = array<i64: 128, 384>}, {pipeline_mode = #tpu.pipeline_mode<synchronous>, transform_indices = @transform_4, window_bounds = array<i64: 1, 384>}, {pipeline_mode = #tpu.pipeline_mode<synchronous>, transform_indices = @transform_5, window_bounds = array<i64: 128, 128>}, {pipeline_mode = #tpu.pipeline_mode<synchronous>, transform_indices = @transform_6, window_bounds = array<i64: 1, 128>}, {pipeline_mode = #tpu.pipeline_mode<synchronous>, transform_indices = @transform_7, window_bounds = array<i64: 1, 128>}, {pipeline_mode = #tpu.pipeline_mode<synchronous>, transform_indices = @transform_8, window_bounds = array<i64: 1, 128>}, {pipeline_mode = #tpu.pipeline_mode<synchronous>, transform_indices = @transform_9, window_bounds = array<i64: 128, 512>}, {pipeline_mode = #tpu.pipeline_mode<synchronous>, transform_indices = @transform_10, window_bounds = array<i64: 1, 512>}, {pipeline_mode = #tpu.pipeline_mode<synchronous>, transform_indices = @transform_11, window_bounds = array<i64: 512, 128>}, {pipeline_mode = #tpu.pipeline_mode<synchronous>, transform_indices = @transform_12, window_bounds = array<i64: 1, 128>}, {transform_indices = @transform_13, window_bounds = array<i64: 1, 12, 128>}]} {
    %c0 = arith.constant 0 : index
    %c0_0 = arith.constant 0 : index
    %c0_1 = arith.constant 0 : index
    %0 = vector.load %arg1[%c0, %c0_0, %c0_1] : memref<1x12x128xf32, #tpu.memory_space<vmem>>, vector<1x12x128xf32>
    %1 = vector.shape_cast %0 : vector<1x12x128xf32> to vector<12x128xf32>
    %c0_2 = arith.constant 0 : index
    %c0_3 = arith.constant 0 : index
    %2 = vector.load %arg2[%c0_2, %c0_3] : memref<1x128xf32, #tpu.memory_space<vmem>>, vector<1x128xf32>
    %c0_4 = arith.constant 0 : index
    %c0_5 = arith.constant 0 : index
    %3 = vector.load %arg3[%c0_4, %c0_5] : memref<1x128xf32, #tpu.memory_space<vmem>>, vector<1x128xf32>
    %cst = arith.constant dense<0.000000e+00> : vector<12xf32>
    %4 = vector.multi_reduction <add>, %1, %cst [1] : vector<12x128xf32> to vector<12xf32>
    %5 = vector.shape_cast %4 : vector<12xf32> to vector<12x1xf32>
    %cst_6 = arith.constant 1.280000e+02 : f32
    %6 = vector.broadcast %cst_6 : f32 to vector<12x1xf32>
    %7 = arith.divf %5, %6 : vector<12x1xf32>
    %8 = vector.broadcast %7 : vector<12x1xf32> to vector<12x128xf32>
    %9 = arith.subf %1, %8 : vector<12x128xf32>
    %10 = arith.mulf %9, %9 : vector<12x128xf32>
    %cst_7 = arith.constant dense<0.000000e+00> : vector<12xf32>
    %11 = vector.multi_reduction <add>, %10, %cst_7 [1] : vector<12x128xf32> to vector<12xf32>
    %12 = vector.shape_cast %11 : vector<12xf32> to vector<12x1xf32>
    %cst_8 = arith.constant 1.280000e+02 : f32
    %13 = vector.broadcast %cst_8 : f32 to vector<12x1xf32>
    %14 = arith.divf %12, %13 : vector<12x1xf32>
    %cst_9 = arith.constant 9.99999974E-6 : f32
    %15 = vector.broadcast %cst_9 : f32 to vector<12x1xf32>
    %16 = arith.addf %14, %15 : vector<12x1xf32>
    %17 = math.rsqrt %16 : vector<12x1xf32>
    %18 = vector.broadcast %17 : vector<12x1xf32> to vector<12x128xf32>
    %19 = arith.mulf %9, %18 : vector<12x128xf32>
    %20 = vector.broadcast %2 : vector<1x128xf32> to vector<12x128xf32>
    %21 = arith.mulf %19, %20 : vector<12x128xf32>
    %22 = vector.broadcast %3 : vector<1x128xf32> to vector<12x128xf32>
    %23 = arith.addf %21, %22 : vector<12x128xf32>
    %24 = arith.truncf %23 : vector<12x128xf32> to vector<12x128xbf16>
    %c0_10 = arith.constant 0 : index
    %c0_11 = arith.constant 0 : index
    %25 = vector.load %arg4[%c0_10, %c0_11] : memref<128x384xbf16, #tpu.memory_space<vmem>>, vector<128x384xbf16>
    %cst_12 = arith.constant dense<0.000000e+00> : vector<12x384xf32>
    %26 = tpu.matmul %24, %25, %cst_12 {dimension_numbers = #tpu.dot_dimension_numbers<[1], [0], [0], [1], [0, 0, 1, 1], [], []>} : vector<12x128xbf16>, vector<128x384xbf16>, vector<12x384xf32> -> vector<12x384xf32>
    %c0_13 = arith.constant 0 : index
    %c0_14 = arith.constant 0 : index
    %27 = vector.load %arg5[%c0_13, %c0_14] : memref<1x384xf32, #tpu.memory_space<vmem>>, vector<1x384xf32>
    %28 = vector.broadcast %27 : vector<1x384xf32> to vector<12x384xf32>
    %29 = arith.addf %26, %28 : vector<12x384xf32>
    %30 = tpu.iota {dimensions = array<i32: 0>} : vector<12x12xi32>
    %31 = tpu.iota {dimensions = array<i32: 1>} : vector<12x12xi32>
    %32 = vector.extract_strided_slice %29 {offsets = [0, 0], sizes = [12, 64], strides = [1, 1]} : vector<12x384xf32> to vector<12x64xf32>
    %33 = vector.extract_strided_slice %29 {offsets = [0, 128], sizes = [12, 64], strides = [1, 1]} : vector<12x384xf32> to vector<12x64xf32>
    %34 = vector.extract_strided_slice %29 {offsets = [0, 256], sizes = [12, 64], strides = [1, 1]} : vector<12x384xf32> to vector<12x64xf32>
    %35 = arith.truncf %32 : vector<12x64xf32> to vector<12x64xbf16>
    %36 = arith.truncf %33 : vector<12x64xf32> to vector<12x64xbf16>
    %cst_15 = arith.constant dense<0.000000e+00> : vector<12x12xf32>
    %37 = tpu.matmul %35, %36, %cst_15 {dimension_numbers = #tpu.dot_dimension_numbers<[1], [1], [0], [0], [0, 0, 1, 0], [], []>} : vector<12x64xbf16>, vector<12x64xbf16>, vector<12x12xf32> -> vector<12x12xf32>
    %cst_16 = arith.constant 1.250000e-01 : f32
    %38 = vector.broadcast %cst_16 : f32 to vector<12x12xf32>
    %39 = arith.mulf %37, %38 : vector<12x12xf32>
    %40 = arith.cmpi sle, %31, %30 : vector<12x12xi32>
    %cst_17 = arith.constant -1.000000e+09 : f32
    %41 = vector.broadcast %cst_17 : f32 to vector<12x12xf32>
    %42 = arith.select %40, %39, %41 : vector<12x12xi1>, vector<12x12xf32>
    %cst_18 = arith.constant dense<0xFF800000> : vector<12xf32>
    %43 = vector.multi_reduction <maximumf>, %42, %cst_18 [1] : vector<12x12xf32> to vector<12xf32>
    %44 = vector.shape_cast %43 : vector<12xf32> to vector<12x1xf32>
    %45 = vector.broadcast %44 : vector<12x1xf32> to vector<12x12xf32>
    %46 = arith.subf %42, %45 : vector<12x12xf32>
    %47 = math.exp %46 : vector<12x12xf32>
    %cst_19 = arith.constant dense<0.000000e+00> : vector<12xf32>
    %48 = vector.multi_reduction <add>, %47, %cst_19 [1] : vector<12x12xf32> to vector<12xf32>
    %49 = vector.shape_cast %48 : vector<12xf32> to vector<12x1xf32>
    %50 = tpu.reciprocal %49 {approx = true} : vector<12x1xf32> -> vector<12x1xf32>
    %51 = vector.broadcast %50 : vector<12x1xf32> to vector<12x12xf32>
    %52 = arith.mulf %47, %51 : vector<12x12xf32>
    %53 = arith.truncf %52 : vector<12x12xf32> to vector<12x12xbf16>
    %54 = arith.truncf %34 : vector<12x64xf32> to vector<12x64xbf16>
    %cst_20 = arith.constant dense<0.000000e+00> : vector<12x64xf32>
    %55 = tpu.matmul %53, %54, %cst_20 {dimension_numbers = #tpu.dot_dimension_numbers<[1], [0], [0], [1], [0, 0, 1, 1], [], []>} : vector<12x12xbf16>, vector<12x64xbf16>, vector<12x64xf32> -> vector<12x64xf32>
    %56 = vector.extract_strided_slice %29 {offsets = [0, 64], sizes = [12, 64], strides = [1, 1]} : vector<12x384xf32> to vector<12x64xf32>
    %57 = vector.extract_strided_slice %29 {offsets = [0, 192], sizes = [12, 64], strides = [1, 1]} : vector<12x384xf32> to vector<12x64xf32>
    %58 = vector.extract_strided_slice %29 {offsets = [0, 320], sizes = [12, 64], strides = [1, 1]} : vector<12x384xf32> to vector<12x64xf32>
    %59 = arith.truncf %56 : vector<12x64xf32> to vector<12x64xbf16>
    %60 = arith.truncf %57 : vector<12x64xf32> to vector<12x64xbf16>
    %cst_21 = arith.constant dense<0.000000e+00> : vector<12x12xf32>
    %61 = tpu.matmul %59, %60, %cst_21 {dimension_numbers = #tpu.dot_dimension_numbers<[1], [1], [0], [0], [0, 0, 1, 0], [], []>} : vector<12x64xbf16>, vector<12x64xbf16>, vector<12x12xf32> -> vector<12x12xf32>
    %cst_22 = arith.constant 1.250000e-01 : f32
    %62 = vector.broadcast %cst_22 : f32 to vector<12x12xf32>
    %63 = arith.mulf %61, %62 : vector<12x12xf32>
    %64 = arith.cmpi sle, %31, %30 : vector<12x12xi32>
    %cst_23 = arith.constant -1.000000e+09 : f32
    %65 = vector.broadcast %cst_23 : f32 to vector<12x12xf32>
    %66 = arith.select %64, %63, %65 : vector<12x12xi1>, vector<12x12xf32>
    %cst_24 = arith.constant dense<0xFF800000> : vector<12xf32>
    %67 = vector.multi_reduction <maximumf>, %66, %cst_24 [1] : vector<12x12xf32> to vector<12xf32>
    %68 = vector.shape_cast %67 : vector<12xf32> to vector<12x1xf32>
    %69 = vector.broadcast %68 : vector<12x1xf32> to vector<12x12xf32>
    %70 = arith.subf %66, %69 : vector<12x12xf32>
    %71 = math.exp %70 : vector<12x12xf32>
    %cst_25 = arith.constant dense<0.000000e+00> : vector<12xf32>
    %72 = vector.multi_reduction <add>, %71, %cst_25 [1] : vector<12x12xf32> to vector<12xf32>
    %73 = vector.shape_cast %72 : vector<12xf32> to vector<12x1xf32>
    %74 = tpu.reciprocal %73 {approx = true} : vector<12x1xf32> -> vector<12x1xf32>
    %75 = vector.broadcast %74 : vector<12x1xf32> to vector<12x12xf32>
    %76 = arith.mulf %71, %75 : vector<12x12xf32>
    %77 = arith.truncf %76 : vector<12x12xf32> to vector<12x12xbf16>
    %78 = arith.truncf %58 : vector<12x64xf32> to vector<12x64xbf16>
    %cst_26 = arith.constant dense<0.000000e+00> : vector<12x64xf32>
    %79 = tpu.matmul %77, %78, %cst_26 {dimension_numbers = #tpu.dot_dimension_numbers<[1], [0], [0], [1], [0, 0, 1, 1], [], []>} : vector<12x12xbf16>, vector<12x64xbf16>, vector<12x64xf32> -> vector<12x64xf32>
    %80 = tpu.concatenate %55, %79 in 1 : vector<12x64xf32>, vector<12x64xf32> -> vector<12x128xf32>
    %81 = arith.truncf %80 : vector<12x128xf32> to vector<12x128xbf16>
    %c0_27 = arith.constant 0 : index
    %c0_28 = arith.constant 0 : index
    %82 = vector.load %arg6[%c0_27, %c0_28] : memref<128x128xbf16, #tpu.memory_space<vmem>>, vector<128x128xbf16>
    %cst_29 = arith.constant dense<0.000000e+00> : vector<12x128xf32>
    %83 = tpu.matmul %81, %82, %cst_29 {dimension_numbers = #tpu.dot_dimension_numbers<[1], [0], [0], [1], [0, 0, 1, 1], [], []>} : vector<12x128xbf16>, vector<128x128xbf16>, vector<12x128xf32> -> vector<12x128xf32>
    %c0_30 = arith.constant 0 : index
    %c0_31 = arith.constant 0 : index
    %84 = vector.load %arg7[%c0_30, %c0_31] : memref<1x128xf32, #tpu.memory_space<vmem>>, vector<1x128xf32>
    %85 = vector.broadcast %84 : vector<1x128xf32> to vector<12x128xf32>
    %86 = arith.addf %83, %85 : vector<12x128xf32>
    %87 = arith.addf %1, %86 : vector<12x128xf32>
    %c0_32 = arith.constant 0 : index
    %c0_33 = arith.constant 0 : index
    %88 = vector.load %arg8[%c0_32, %c0_33] : memref<1x128xf32, #tpu.memory_space<vmem>>, vector<1x128xf32>
    %c0_34 = arith.constant 0 : index
    %c0_35 = arith.constant 0 : index
    %89 = vector.load %arg9[%c0_34, %c0_35] : memref<1x128xf32, #tpu.memory_space<vmem>>, vector<1x128xf32>
    %cst_36 = arith.constant dense<0.000000e+00> : vector<12xf32>
    %90 = vector.multi_reduction <add>, %87, %cst_36 [1] : vector<12x128xf32> to vector<12xf32>
    %91 = vector.shape_cast %90 : vector<12xf32> to vector<12x1xf32>
    %cst_37 = arith.constant 1.280000e+02 : f32
    %92 = vector.broadcast %cst_37 : f32 to vector<12x1xf32>
    %93 = arith.divf %91, %92 : vector<12x1xf32>
    %94 = vector.broadcast %93 : vector<12x1xf32> to vector<12x128xf32>
    %95 = arith.subf %87, %94 : vector<12x128xf32>
    %96 = arith.mulf %95, %95 : vector<12x128xf32>
    %cst_38 = arith.constant dense<0.000000e+00> : vector<12xf32>
    %97 = vector.multi_reduction <add>, %96, %cst_38 [1] : vector<12x128xf32> to vector<12xf32>
    %98 = vector.shape_cast %97 : vector<12xf32> to vector<12x1xf32>
    %cst_39 = arith.constant 1.280000e+02 : f32
    %99 = vector.broadcast %cst_39 : f32 to vector<12x1xf32>
    %100 = arith.divf %98, %99 : vector<12x1xf32>
    %cst_40 = arith.constant 9.99999974E-6 : f32
    %101 = vector.broadcast %cst_40 : f32 to vector<12x1xf32>
    %102 = arith.addf %100, %101 : vector<12x1xf32>
    %103 = math.rsqrt %102 : vector<12x1xf32>
    %104 = vector.broadcast %103 : vector<12x1xf32> to vector<12x128xf32>
    %105 = arith.mulf %95, %104 : vector<12x128xf32>
    %106 = vector.broadcast %88 : vector<1x128xf32> to vector<12x128xf32>
    %107 = arith.mulf %105, %106 : vector<12x128xf32>
    %108 = vector.broadcast %89 : vector<1x128xf32> to vector<12x128xf32>
    %109 = arith.addf %107, %108 : vector<12x128xf32>
    %110 = arith.truncf %109 : vector<12x128xf32> to vector<12x128xbf16>
    %c0_41 = arith.constant 0 : index
    %c0_42 = arith.constant 0 : index
    %111 = vector.load %arg10[%c0_41, %c0_42] : memref<128x512xbf16, #tpu.memory_space<vmem>>, vector<128x512xbf16>
    %cst_43 = arith.constant dense<0.000000e+00> : vector<12x512xf32>
    %112 = tpu.matmul %110, %111, %cst_43 {dimension_numbers = #tpu.dot_dimension_numbers<[1], [0], [0], [1], [0, 0, 1, 1], [], []>} : vector<12x128xbf16>, vector<128x512xbf16>, vector<12x512xf32> -> vector<12x512xf32>
    %c0_44 = arith.constant 0 : index
    %c0_45 = arith.constant 0 : index
    %113 = vector.load %arg11[%c0_44, %c0_45] : memref<1x512xf32, #tpu.memory_space<vmem>>, vector<1x512xf32>
    %114 = vector.broadcast %113 : vector<1x512xf32> to vector<12x512xf32>
    %115 = arith.addf %112, %114 : vector<12x512xf32>
    %cst_46 = arith.constant 5.000000e-01 : f32
    %116 = vector.broadcast %cst_46 : f32 to vector<12x512xf32>
    %117 = arith.mulf %116, %115 : vector<12x512xf32>
    %cst_47 = arith.constant 4.471500e-02 : f32
    %118 = vector.broadcast %cst_47 : f32 to vector<12x512xf32>
    %119 = arith.mulf %118, %115 : vector<12x512xf32>
    %120 = arith.mulf %119, %115 : vector<12x512xf32>
    %121 = arith.mulf %120, %115 : vector<12x512xf32>
    %122 = arith.addf %115, %121 : vector<12x512xf32>
    %cst_48 = arith.constant 0.797884583 : f32
    %123 = vector.broadcast %cst_48 : f32 to vector<12x512xf32>
    %124 = arith.mulf %123, %122 : vector<12x512xf32>
    %125 = math.tanh %124 : vector<12x512xf32>
    %cst_49 = arith.constant 1.000000e+00 : f32
    %126 = vector.broadcast %cst_49 : f32 to vector<12x512xf32>
    %127 = arith.addf %126, %125 : vector<12x512xf32>
    %128 = arith.mulf %117, %127 : vector<12x512xf32>
    %129 = arith.truncf %128 : vector<12x512xf32> to vector<12x512xbf16>
    %c0_50 = arith.constant 0 : index
    %c0_51 = arith.constant 0 : index
    %130 = vector.load %arg12[%c0_50, %c0_51] : memref<512x128xbf16, #tpu.memory_space<vmem>>, vector<512x128xbf16>
    %cst_52 = arith.constant dense<0.000000e+00> : vector<12x128xf32>
    %131 = tpu.matmul %129, %130, %cst_52 {dimension_numbers = #tpu.dot_dimension_numbers<[1], [0], [0], [1], [0, 0, 1, 1], [], []>} : vector<12x512xbf16>, vector<512x128xbf16>, vector<12x128xf32> -> vector<12x128xf32>
    %c0_53 = arith.constant 0 : index
    %c0_54 = arith.constant 0 : index
    %132 = vector.load %arg13[%c0_53, %c0_54] : memref<1x128xf32, #tpu.memory_space<vmem>>, vector<1x128xf32>
    %133 = vector.broadcast %132 : vector<1x128xf32> to vector<12x128xf32>
    %134 = arith.addf %131, %133 : vector<12x128xf32>
    %135 = arith.addf %87, %134 : vector<12x128xf32>
    %c0_55 = arith.constant 0 : index
    %c0_56 = arith.constant 0 : index
    %c0_57 = arith.constant 0 : index
    %136 = vector.load %arg14[%c0_55, %c0_56, %c0_57] : memref<1x12x128xf32, #tpu.memory_space<vmem>>, vector<1x12x128xf32>
    %137 = vector.shape_cast %136 : vector<1x12x128xf32> to vector<12x128xf32>
    %138 = vector.shape_cast %135 : vector<12x128xf32> to vector<1x12x128xf32>
    tpu.vector_store %arg14[%c0_55, %c0_56, %c0_57], %138 {strides = array<i32>} : memref<1x12x128xf32, #tpu.memory_space<vmem>>, vector<1x12x128xf32>,
    return
  }
  func.func @transform_0(%arg0: i32) -> (i32, i32, i32) {
    %c0_i32 = arith.constant 0 : i32
    %c0_i32_0 = arith.constant 0 : i32
    %c0_i32_1 = arith.constant 0 : i32
    return %arg0, %c0_i32, %c0_i32_0 : i32, i32, i32
  }
  func.func @transform_1(%arg0: i32) -> (i32, i32) {
    %c0_i32 = arith.constant 0 : i32
    %c0_i32_0 = arith.constant 0 : i32
    %c0_i32_1 = arith.constant 0 : i32
    return %c0_i32, %c0_i32_0 : i32, i32
  }
  func.func @transform_2(%arg0: i32) -> (i32, i32) {
    %c0_i32 = arith.constant 0 : i32
    %c0_i32_0 = arith.constant 0 : i32
    %c0_i32_1 = arith.constant 0 : i32
    return %c0_i32, %c0_i32_0 : i32, i32
  }
  func.func @transform_3(%arg0: i32) -> (i32, i32) {
    %c0_i32 = arith.constant 0 : i32
    %c0_i32_0 = arith.constant 0 : i32
    %c0_i32_1 = arith.constant 0 : i32
    return %c0_i32, %c0_i32_0 : i32, i32
  }
  func.func @transform_4(%arg0: i32) -> (i32, i32) {
    %c0_i32 = arith.constant 0 : i32
    %c0_i32_0 = arith.constant 0 : i32
    %c0_i32_1 = arith.constant 0 : i32
    return %c0_i32, %c0_i32_0 : i32, i32
  }
  func.func @transform_5(%arg0: i32) -> (i32, i32) {
    %c0_i32 = arith.constant 0 : i32
    %c0_i32_0 = arith.constant 0 : i32
    %c0_i32_1 = arith.constant 0 : i32
    return %c0_i32, %c0_i32_0 : i32, i32
  }
  func.func @transform_6(%arg0: i32) -> (i32, i32) {
    %c0_i32 = arith.constant 0 : i32
    %c0_i32_0 = arith.constant 0 : i32
    %c0_i32_1 = arith.constant 0 : i32
    return %c0_i32, %c0_i32_0 : i32, i32
  }
  func.func @transform_7(%arg0: i32) -> (i32, i32) {
    %c0_i32 = arith.constant 0 : i32
    %c0_i32_0 = arith.constant 0 : i32
    %c0_i32_1 = arith.constant 0 : i32
    return %c0_i32, %c0_i32_0 : i32, i32
  }
  func.func @transform_8(%arg0: i32) -> (i32, i32) {
    %c0_i32 = arith.constant 0 : i32
    %c0_i32_0 = arith.constant 0 : i32
    %c0_i32_1 = arith.constant 0 : i32
    return %c0_i32, %c0_i32_0 : i32, i32
  }
  func.func @transform_9(%arg0: i32) -> (i32, i32) {
    %c0_i32 = arith.constant 0 : i32
    %c0_i32_0 = arith.constant 0 : i32
    %c0_i32_1 = arith.constant 0 : i32
    return %c0_i32, %c0_i32_0 : i32, i32
  }
  func.func @transform_10(%arg0: i32) -> (i32, i32) {
    %c0_i32 = arith.constant 0 : i32
    %c0_i32_0 = arith.constant 0 : i32
    %c0_i32_1 = arith.constant 0 : i32
    return %c0_i32, %c0_i32_0 : i32, i32
  }
  func.func @transform_11(%arg0: i32) -> (i32, i32) {
    %c0_i32 = arith.constant 0 : i32
    %c0_i32_0 = arith.constant 0 : i32
    %c0_i32_1 = arith.constant 0 : i32
    return %c0_i32, %c0_i32_0 : i32, i32
  }
  func.func @transform_12(%arg0: i32) -> (i32, i32) {
    %c0_i32 = arith.constant 0 : i32
    %c0_i32_0 = arith.constant 0 : i32
    %c0_i32_1 = arith.constant 0 : i32
    return %c0_i32, %c0_i32_0 : i32, i32
  }
  func.func @transform_13(%arg0: i32) -> (i32, i32, i32) {
    %c0_i32 = arith.constant 0 : i32
    %c0_i32_0 = arith.constant 0 : i32
    %c0_i32_1 = arith.constant 0 : i32
    return %arg0, %c0_i32, %c0_i32_0 : i32, i32, i32
  }
}

module attributes {stable_mosaic.version = 11 : i64} {
  func.func @_block_kernel(%arg0: i32, %arg1: memref<1x12x128xf32, #tpu.memory_space<vmem>>, %arg2: memref<1x128xf32, #tpu.memory_space<vmem>>, %arg3: memref<1x128xf32, #tpu.memory_space<vmem>>, %arg4: memref<128x384xbf16, #tpu.memory_space<vmem>>, %arg5: memref<1x384xf32, #tpu.memory_space<vmem>>, %arg6: memref<128x128xbf16, #tpu.memory_space<vmem>>, %arg7: memref<1x128xf32, #tpu.memory_space<vmem>>, %arg8: memref<1x128xf32, #tpu.memory_space<vmem>>, %arg9: memref<1x128xf32, #tpu.memory_space<vmem>>, %arg10: memref<128x512xbf16, #tpu.memory_space<vmem>>, %arg11: memref<1x512xf32, #tpu.memory_space<vmem>>, %arg12: memref<512x128xbf16, #tpu.memory_space<vmem>>, %arg13: memref<1x128xf32, #tpu.memory_space<vmem>>, %arg14: memref<1x12x128xf32, #tpu.memory_space<vmem>>) attributes {dimension_semantics = [#tpu.dimension_semantics<parallel>], iteration_bounds = array<i64: 2>, scalar_prefetch = 0 : i64, scratch_operands = 0 : i64, tpu.core_type = #tpu.core_type<tc>, window_params = [{transform_indices = @transform_0, window_bounds = array<i64: 1, 12, 128>}, {pipeline_mode = #tpu.pipeline_mode<synchronous>, transform_indices = @transform_1, window_bounds = array<i64: 1, 128>}, {pipeline_mode = #tpu.pipeline_mode<synchronous>, transform_indices = @transform_2, window_bounds = array<i64: 1, 128>}, {pipeline_mode = #tpu.pipeline_mode<synchronous>, transform_indices = @transform_3, window_bounds = array<i64: 128, 384>}, {pipeline_mode = #tpu.pipeline_mode<synchronous>, transform_indices = @transform_4, window_bounds = array<i64: 1, 384>}, {pipeline_mode = #tpu.pipeline_mode<synchronous>, transform_indices = @transform_5, window_bounds = array<i64: 128, 128>}, {pipeline_mode = #tpu.pipeline_mode<synchronous>, transform_indices = @transform_6, window_bounds = array<i64: 1, 128>}, {pipeline_mode = #tpu.pipeline_mode<synchronous>, transform_indices = @transform_7, window_bounds = array<i64: 1, 128>}, {pipeline_mode = #tpu.pipeline_mode<synchronous>, transform_indices = @transform_8, window_bounds = array<i64: 1, 128>}, {pipeline_mode = #tpu.pipeline_mode<synchronous>, transform_indices = @transform_9, window_bounds = array<i64: 128, 512>}, {pipeline_mode = #tpu.pipeline_mode<synchronous>, transform_indices = @transform_10, window_bounds = array<i64: 1, 512>}, {pipeline_mode = #tpu.pipeline_mode<synchronous>, transform_indices = @transform_11, window_bounds = array<i64: 512, 128>}, {pipeline_mode = #tpu.pipeline_mode<synchronous>, transform_indices = @transform_12, window_bounds = array<i64: 1, 128>}, {transform_indices = @transform_13, window_bounds = array<i64: 1, 12, 128>}]} {
    %c0 = arith.constant 0 : index
    %c0_0 = arith.constant 0 : index
    %c0_1 = arith.constant 0 : index
    %0 = vector.load %arg1[%c0, %c0_0, %c0_1] : memref<1x12x128xf32, #tpu.memory_space<vmem>>, vector<1x12x128xf32>
    %1 = vector.shape_cast %0 : vector<1x12x128xf32> to vector<12x128xf32>
    %c0_2 = arith.constant 0 : index
    %c0_3 = arith.constant 0 : index
    %2 = vector.load %arg2[%c0_2, %c0_3] : memref<1x128xf32, #tpu.memory_space<vmem>>, vector<1x128xf32>
    %c0_4 = arith.constant 0 : index
    %c0_5 = arith.constant 0 : index
    %3 = vector.load %arg3[%c0_4, %c0_5] : memref<1x128xf32, #tpu.memory_space<vmem>>, vector<1x128xf32>
    %cst = arith.constant dense<0.000000e+00> : vector<12xf32>
    %4 = vector.multi_reduction <add>, %1, %cst [1] : vector<12x128xf32> to vector<12xf32>
    %5 = vector.shape_cast %4 : vector<12xf32> to vector<12x1xf32>
    %cst_6 = arith.constant 1.280000e+02 : f32
    %6 = vector.broadcast %cst_6 : f32 to vector<12x1xf32>
    %7 = arith.divf %5, %6 : vector<12x1xf32>
    %8 = vector.broadcast %7 : vector<12x1xf32> to vector<12x128xf32>
    %9 = arith.subf %1, %8 : vector<12x128xf32>
    %10 = arith.mulf %9, %9 : vector<12x128xf32>
    %cst_7 = arith.constant dense<0.000000e+00> : vector<12xf32>
    %11 = vector.multi_reduction <add>, %10, %cst_7 [1] : vector<12x128xf32> to vector<12xf32>
    %12 = vector.shape_cast %11 : vector<12xf32> to vector<12x1xf32>
    %cst_8 = arith.constant 1.280000e+02 : f32
    %13 = vector.broadcast %cst_8 : f32 to vector<12x1xf32>
    %14 = arith.divf %12, %13 : vector<12x1xf32>
    %cst_9 = arith.constant 9.99999974E-6 : f32
    %15 = vector.broadcast %cst_9 : f32 to vector<12x1xf32>
    %16 = arith.addf %14, %15 : vector<12x1xf32>
    %17 = math.rsqrt %16 : vector<12x1xf32>
    %18 = vector.broadcast %17 : vector<12x1xf32> to vector<12x128xf32>
    %19 = arith.mulf %9, %18 : vector<12x128xf32>
    %20 = vector.broadcast %2 : vector<1x128xf32> to vector<12x128xf32>
    %21 = arith.mulf %19, %20 : vector<12x128xf32>
    %22 = vector.broadcast %3 : vector<1x128xf32> to vector<12x128xf32>
    %23 = arith.addf %21, %22 : vector<12x128xf32>
    %24 = arith.truncf %23 : vector<12x128xf32> to vector<12x128xbf16>
    %c0_10 = arith.constant 0 : index
    %c0_11 = arith.constant 0 : index
    %25 = vector.load %arg4[%c0_10, %c0_11] : memref<128x384xbf16, #tpu.memory_space<vmem>>, vector<128x384xbf16>
    %cst_12 = arith.constant dense<0.000000e+00> : vector<12x384xf32>
    %26 = tpu.matmul %24, %25, %cst_12 {dimension_numbers = #tpu.dot_dimension_numbers<[1], [0], [0], [1], [0, 0, 1, 1], [], []>} : vector<12x128xbf16>, vector<128x384xbf16>, vector<12x384xf32> -> vector<12x384xf32>
    %c0_13 = arith.constant 0 : index
    %c0_14 = arith.constant 0 : index
    %27 = vector.load %arg5[%c0_13, %c0_14] : memref<1x384xf32, #tpu.memory_space<vmem>>, vector<1x384xf32>
    %28 = vector.broadcast %27 : vector<1x384xf32> to vector<12x384xf32>
    %29 = arith.addf %26, %28 : vector<12x384xf32>
    %30 = tpu.iota {dimensions = array<i32: 0>} : vector<12x12xi32>
    %31 = tpu.iota {dimensions = array<i32: 1>} : vector<12x12xi32>
    %32 = vector.extract_strided_slice %29 {offsets = [0, 0], sizes = [12, 64], strides = [1, 1]} : vector<12x384xf32> to vector<12x64xf32>
    %33 = vector.extract_strided_slice %29 {offsets = [0, 128], sizes = [12, 64], strides = [1, 1]} : vector<12x384xf32> to vector<12x64xf32>
    %34 = vector.extract_strided_slice %29 {offsets = [0, 256], sizes = [12, 64], strides = [1, 1]} : vector<12x384xf32> to vector<12x64xf32>
    %35 = arith.truncf %32 : vector<12x64xf32> to vector<12x64xbf16>
    %36 = arith.truncf %33 : vector<12x64xf32> to vector<12x64xbf16>
    %cst_15 = arith.constant dense<0.000000e+00> : vector<12x12xf32>
    %37 = tpu.matmul %35, %36, %cst_15 {dimension_numbers = #tpu.dot_dimension_numbers<[1], [1], [0], [0], [0, 0, 1, 0], [], []>} : vector<12x64xbf16>, vector<12x64xbf16>, vector<12x12xf32> -> vector<12x12xf32>
    %cst_16 = arith.constant 1.250000e-01 : f32
    %38 = vector.broadcast %cst_16 : f32 to vector<12x12xf32>
    %39 = arith.mulf %37, %38 : vector<12x12xf32>
    %40 = arith.cmpi sle, %31, %30 : vector<12x12xi32>
    %cst_17 = arith.constant -1.000000e+09 : f32
    %41 = vector.broadcast %cst_17 : f32 to vector<12x12xf32>
    %42 = arith.select %40, %39, %41 : vector<12x12xi1>, vector<12x12xf32>
    %cst_18 = arith.constant dense<0xFF800000> : vector<12xf32>
    %43 = vector.multi_reduction <maximumf>, %42, %cst_18 [1] : vector<12x12xf32> to vector<12xf32>
    %44 = vector.shape_cast %43 : vector<12xf32> to vector<12x1xf32>
    %45 = vector.broadcast %44 : vector<12x1xf32> to vector<12x12xf32>
    %46 = arith.subf %42, %45 : vector<12x12xf32>
    %47 = math.exp %46 : vector<12x12xf32>
    %cst_19 = arith.constant dense<0.000000e+00> : vector<12xf32>
    %48 = vector.multi_reduction <add>, %47, %cst_19 [1] : vector<12x12xf32> to vector<12xf32>
    %49 = vector.shape_cast %48 : vector<12xf32> to vector<12x1xf32>
    %50 = tpu.reciprocal %49 {approx = true} : vector<12x1xf32> -> vector<12x1xf32>
    %51 = vector.broadcast %50 : vector<12x1xf32> to vector<12x12xf32>
    %52 = arith.mulf %47, %51 : vector<12x12xf32>
    %53 = arith.truncf %52 : vector<12x12xf32> to vector<12x12xbf16>
    %54 = arith.truncf %34 : vector<12x64xf32> to vector<12x64xbf16>
    %cst_20 = arith.constant dense<0.000000e+00> : vector<12x64xf32>
    %55 = tpu.matmul %53, %54, %cst_20 {dimension_numbers = #tpu.dot_dimension_numbers<[1], [0], [0], [1], [0, 0, 1, 1], [], []>} : vector<12x12xbf16>, vector<12x64xbf16>, vector<12x64xf32> -> vector<12x64xf32>
    %56 = vector.extract_strided_slice %29 {offsets = [0, 64], sizes = [12, 64], strides = [1, 1]} : vector<12x384xf32> to vector<12x64xf32>
    %57 = vector.extract_strided_slice %29 {offsets = [0, 192], sizes = [12, 64], strides = [1, 1]} : vector<12x384xf32> to vector<12x64xf32>
    %58 = vector.extract_strided_slice %29 {offsets = [0, 320], sizes = [12, 64], strides = [1, 1]} : vector<12x384xf32> to vector<12x64xf32>
    %59 = arith.truncf %56 : vector<12x64xf32> to vector<12x64xbf16>
    %60 = arith.truncf %57 : vector<12x64xf32> to vector<12x64xbf16>
    %cst_21 = arith.constant dense<0.000000e+00> : vector<12x12xf32>
    %61 = tpu.matmul %59, %60, %cst_21 {dimension_numbers = #tpu.dot_dimension_numbers<[1], [1], [0], [0], [0, 0, 1, 0], [], []>} : vector<12x64xbf16>, vector<12x64xbf16>, vector<12x12xf32> -> vector<12x12xf32>
    %cst_22 = arith.constant 1.250000e-01 : f32
    %62 = vector.broadcast %cst_22 : f32 to vector<12x12xf32>
    %63 = arith.mulf %61, %62 : vector<12x12xf32>
    %64 = arith.cmpi sle, %31, %30 : vector<12x12xi32>
    %cst_23 = arith.constant -1.000000e+09 : f32
    %65 = vector.broadcast %cst_23 : f32 to vector<12x12xf32>
    %66 = arith.select %64, %63, %65 : vector<12x12xi1>, vector<12x12xf32>
    %cst_24 = arith.constant dense<0xFF800000> : vector<12xf32>
    %67 = vector.multi_reduction <maximumf>, %66, %cst_24 [1] : vector<12x12xf32> to vector<12xf32>
    %68 = vector.shape_cast %67 : vector<12xf32> to vector<12x1xf32>
    %69 = vector.broadcast %68 : vector<12x1xf32> to vector<12x12xf32>
    %70 = arith.subf %66, %69 : vector<12x12xf32>
    %71 = math.exp %70 : vector<12x12xf32>
    %cst_25 = arith.constant dense<0.000000e+00> : vector<12xf32>
    %72 = vector.multi_reduction <add>, %71, %cst_25 [1] : vector<12x12xf32> to vector<12xf32>
    %73 = vector.shape_cast %72 : vector<12xf32> to vector<12x1xf32>
    %74 = tpu.reciprocal %73 {approx = true} : vector<12x1xf32> -> vector<12x1xf32>
    %75 = vector.broadcast %74 : vector<12x1xf32> to vector<12x12xf32>
    %76 = arith.mulf %71, %75 : vector<12x12xf32>
    %77 = arith.truncf %76 : vector<12x12xf32> to vector<12x12xbf16>
    %78 = arith.truncf %58 : vector<12x64xf32> to vector<12x64xbf16>
    %cst_26 = arith.constant dense<0.000000e+00> : vector<12x64xf32>
    %79 = tpu.matmul %77, %78, %cst_26 {dimension_numbers = #tpu.dot_dimension_numbers<[1], [0], [0], [1], [0, 0, 1, 1], [], []>} : vector<12x12xbf16>, vector<12x64xbf16>, vector<12x64xf32> -> vector<12x64xf32>
    %80 = tpu.concatenate %55, %79 in 1 : vector<12x64xf32>, vector<12x64xf32> -> vector<12x128xf32>
    %81 = arith.truncf %80 : vector<12x128xf32> to vector<12x128xbf16>
    %c0_27 = arith.constant 0 : index
    %c0_28 = arith.constant 0 : index
    %82 = vector.load %arg6[%c0_27, %c0_28] : memref<128x128xbf16, #tpu.memory_space<vmem>>, vector<128x128xbf16>
    %cst_29 = arith.constant dense<0.000000e+00> : vector<12x128xf32>
    %83 = tpu.matmul %81, %82, %cst_29 {dimension_numbers = #tpu.dot_dimension_numbers<[1], [0], [0], [1], [0, 0, 1, 1], [], []>} : vector<12x128xbf16>, vector<128x128xbf16>, vector<12x128xf32> -> vector<12x128xf32>
    %c0_30 = arith.constant 0 : index
    %c0_31 = arith.constant 0 : index
    %84 = vector.load %arg7[%c0_30, %c0_31] : memref<1x128xf32, #tpu.memory_space<vmem>>, vector<1x128xf32>
    %85 = vector.broadcast %84 : vector<1x128xf32> to vector<12x128xf32>
    %86 = arith.addf %83, %85 : vector<12x128xf32>
    %87 = arith.addf %1, %86 : vector<12x128xf32>
    %c0_32 = arith.constant 0 : index
    %c0_33 = arith.constant 0 : index
    %88 = vector.load %arg8[%c0_32, %c0_33] : memref<1x128xf32, #tpu.memory_space<vmem>>, vector<1x128xf32>
    %c0_34 = arith.constant 0 : index
    %c0_35 = arith.constant 0 : index
    %89 = vector.load %arg9[%c0_34, %c0_35] : memref<1x128xf32, #tpu.memory_space<vmem>>, vector<1x128xf32>
    %cst_36 = arith.constant dense<0.000000e+00> : vector<12xf32>
    %90 = vector.multi_reduction <add>, %87, %cst_36 [1] : vector<12x128xf32> to vector<12xf32>
    %91 = vector.shape_cast %90 : vector<12xf32> to vector<12x1xf32>
    %cst_37 = arith.constant 1.280000e+02 : f32
    %92 = vector.broadcast %cst_37 : f32 to vector<12x1xf32>
    %93 = arith.divf %91, %92 : vector<12x1xf32>
    %94 = vector.broadcast %93 : vector<12x1xf32> to vector<12x128xf32>
    %95 = arith.subf %87, %94 : vector<12x128xf32>
    %96 = arith.mulf %95, %95 : vector<12x128xf32>
    %cst_38 = arith.constant dense<0.000000e+00> : vector<12xf32>
    %97 = vector.multi_reduction <add>, %96, %cst_38 [1] : vector<12x128xf32> to vector<12xf32>
    %98 = vector.shape_cast %97 : vector<12xf32> to vector<12x1xf32>
    %cst_39 = arith.constant 1.280000e+02 : f32
    %99 = vector.broadcast %cst_39 : f32 to vector<12x1xf32>
    %100 = arith.divf %98, %99 : vector<12x1xf32>
    %cst_40 = arith.constant 9.99999974E-6 : f32
    %101 = vector.broadcast %cst_40 : f32 to vector<12x1xf32>
    %102 = arith.addf %100, %101 : vector<12x1xf32>
    %103 = math.rsqrt %102 : vector<12x1xf32>
    %104 = vector.broadcast %103 : vector<12x1xf32> to vector<12x128xf32>
    %105 = arith.mulf %95, %104 : vector<12x128xf32>
    %106 = vector.broadcast %88 : vector<1x128xf32> to vector<12x128xf32>
    %107 = arith.mulf %105, %106 : vector<12x128xf32>
    %108 = vector.broadcast %89 : vector<1x128xf32> to vector<12x128xf32>
    %109 = arith.addf %107, %108 : vector<12x128xf32>
    %110 = arith.truncf %109 : vector<12x128xf32> to vector<12x128xbf16>
    %c0_41 = arith.constant 0 : index
    %c0_42 = arith.constant 0 : index
    %111 = vector.load %arg10[%c0_41, %c0_42] : memref<128x512xbf16, #tpu.memory_space<vmem>>, vector<128x512xbf16>
    %cst_43 = arith.constant dense<0.000000e+00> : vector<12x512xf32>
    %112 = tpu.matmul %110, %111, %cst_43 {dimension_numbers = #tpu.dot_dimension_numbers<[1], [0], [0], [1], [0, 0, 1, 1], [], []>} : vector<12x128xbf16>, vector<128x512xbf16>, vector<12x512xf32> -> vector<12x512xf32>
    %c0_44 = arith.constant 0 : index
    %c0_45 = arith.constant 0 : index
    %113 = vector.load %arg11[%c0_44, %c0_45] : memref<1x512xf32, #tpu.memory_space<vmem>>, vector<1x512xf32>
    %114 = vector.broadcast %113 : vector<1x512xf32> to vector<12x512xf32>
    %115 = arith.addf %112, %114 : vector<12x512xf32>
    %cst_46 = arith.constant 5.000000e-01 : f32
    %116 = vector.broadcast %cst_46 : f32 to vector<12x512xf32>
    %117 = arith.mulf %116, %115 : vector<12x512xf32>
    %cst_47 = arith.constant 4.471500e-02 : f32
    %118 = vector.broadcast %cst_47 : f32 to vector<12x512xf32>
    %119 = arith.mulf %118, %115 : vector<12x512xf32>
    %120 = arith.mulf %119, %115 : vector<12x512xf32>
    %121 = arith.mulf %120, %115 : vector<12x512xf32>
    %122 = arith.addf %115, %121 : vector<12x512xf32>
    %cst_48 = arith.constant 0.797884583 : f32
    %123 = vector.broadcast %cst_48 : f32 to vector<12x512xf32>
    %124 = arith.mulf %123, %122 : vector<12x512xf32>
    %125 = math.tanh %124 : vector<12x512xf32>
    %cst_49 = arith.constant 1.000000e+00 : f32
    %126 = vector.broadcast %cst_49 : f32 to vector<12x512xf32>
    %127 = arith.addf %126, %125 : vector<12x512xf32>
    %128 = arith.mulf %117, %127 : vector<12x512xf32>
    %129 = arith.truncf %128 : vector<12x512xf32> to vector<12x512xbf16>
    %c0_50 = arith.constant 0 : index
    %c0_51 = arith.constant 0 : index
    %130 = vector.load %arg12[%c0_50, %c0_51] : memref<512x128xbf16, #tpu.memory_space<vmem>>, vector<512x128xbf16>
    %cst_52 = arith.constant dense<0.000000e+00> : vector<12x128xf32>
    %131 = tpu.matmul %129, %130, %cst_52 {dimension_numbers = #tpu.dot_dimension_numbers<[1], [0], [0], [1], [0, 0, 1, 1], [], []>} : vector<12x512xbf16>, vector<512x128xbf16>, vector<12x128xf32> -> vector<12x128xf32>
    %c0_53 = arith.constant 0 : index
    %c0_54 = arith.constant 0 : index
    %132 = vector.load %arg13[%c0_53, %c0_54] : memref<1x128xf32, #tpu.memory_space<vmem>>, vector<1x128xf32>
    %133 = vector.broadcast %132 : vector<1x128xf32> to vector<12x128xf32>
    %134 = arith.addf %131, %133 : vector<12x128xf32>
    %135 = arith.addf %87, %134 : vector<12x128xf32>
    %c0_55 = arith.constant 0 : index
    %c0_56 = arith.constant 0 : index
    %c0_57 = arith.constant 0 : index
    %136 = vector.load %arg14[%c0_55, %c0_56, %c0_57] : memref<1x12x128xf32, #tpu.memory_space<vmem>>, vector<1x12x128xf32>
    %137 = vector.shape_cast %136 : vector<1x12x128xf32> to vector<12x128xf32>
    %138 = vector.shape_cast %135 : vector<12x128xf32> to vector<1x12x128xf32>
    tpu.vector_store %arg14[%c0_55, %c0_56, %c0_57], %138 {strides = array<i32>} : memref<1x12x128xf32, #tpu.memory_space<vmem>>, vector<1x12x128xf32>,
    return
  }
  func.func @transform_0(%arg0: i32) -> (i32, i32, i32) {
    %c0_i32 = arith.constant 0 : i32
    %c0_i32_0 = arith.constant 0 : i32
    %c0_i32_1 = arith.constant 0 : i32
    return %arg0, %c0_i32, %c0_i32_0 : i32, i32, i32
  }
  func.func @transform_1(%arg0: i32) -> (i32, i32) {
    %c0_i32 = arith.constant 0 : i32
    %c0_i32_0 = arith.constant 0 : i32
    %c0_i32_1 = arith.constant 0 : i32
    return %c0_i32, %c0_i32_0 : i32, i32
  }
  func.func @transform_2(%arg0: i32) -> (i32, i32) {
    %c0_i32 = arith.constant 0 : i32
    %c0_i32_0 = arith.constant 0 : i32
    %c0_i32_1 = arith.constant 0 : i32
    return %c0_i32, %c0_i32_0 : i32, i32
  }
  func.func @transform_3(%arg0: i32) -> (i32, i32) {
    %c0_i32 = arith.constant 0 : i32
    %c0_i32_0 = arith.constant 0 : i32
    %c0_i32_1 = arith.constant 0 : i32
    return %c0_i32, %c0_i32_0 : i32, i32
  }
  func.func @transform_4(%arg0: i32) -> (i32, i32) {
    %c0_i32 = arith.constant 0 : i32
    %c0_i32_0 = arith.constant 0 : i32
    %c0_i32_1 = arith.constant 0 : i32
    return %c0_i32, %c0_i32_0 : i32, i32
  }
  func.func @transform_5(%arg0: i32) -> (i32, i32) {
    %c0_i32 = arith.constant 0 : i32
    %c0_i32_0 = arith.constant 0 : i32
    %c0_i32_1 = arith.constant 0 : i32
    return %c0_i32, %c0_i32_0 : i32, i32
  }
  func.func @transform_6(%arg0: i32) -> (i32, i32) {
    %c0_i32 = arith.constant 0 : i32
    %c0_i32_0 = arith.constant 0 : i32
    %c0_i32_1 = arith.constant 0 : i32
    return %c0_i32, %c0_i32_0 : i32, i32
  }
  func.func @transform_7(%arg0: i32) -> (i32, i32) {
    %c0_i32 = arith.constant 0 : i32
    %c0_i32_0 = arith.constant 0 : i32
    %c0_i32_1 = arith.constant 0 : i32
    return %c0_i32, %c0_i32_0 : i32, i32
  }
  func.func @transform_8(%arg0: i32) -> (i32, i32) {
    %c0_i32 = arith.constant 0 : i32
    %c0_i32_0 = arith.constant 0 : i32
    %c0_i32_1 = arith.constant 0 : i32
    return %c0_i32, %c0_i32_0 : i32, i32
  }
  func.func @transform_9(%arg0: i32) -> (i32, i32) {
    %c0_i32 = arith.constant 0 : i32
    %c0_i32_0 = arith.constant 0 : i32
    %c0_i32_1 = arith.constant 0 : i32
    return %c0_i32, %c0_i32_0 : i32, i32
  }
  func.func @transform_10(%arg0: i32) -> (i32, i32) {
    %c0_i32 = arith.constant 0 : i32
    %c0_i32_0 = arith.constant 0 : i32
    %c0_i32_1 = arith.constant 0 : i32
    return %c0_i32, %c0_i32_0 : i32, i32
  }
  func.func @transform_11(%arg0: i32) -> (i32, i32) {
    %c0_i32 = arith.constant 0 : i32
    %c0_i32_0 = arith.constant 0 : i32
    %c0_i32_1 = arith.constant 0 : i32
    return %c0_i32, %c0_i32_0 : i32, i32
  }
  func.func @transform_12(%arg0: i32) -> (i32, i32) {
    %c0_i32 = arith.constant 0 : i32
    %c0_i32_0 = arith.constant 0 : i32
    %c0_i32_1 = arith.constant 0 : i32
    return %c0_i32, %c0_i32_0 : i32, i32
  }
  func.func @transform_13(%arg0: i32) -> (i32, i32, i32) {
    %c0_i32 = arith.constant 0 : i32
    %c0_i32_0 = arith.constant 0 : i32
    %c0_i32_1 = arith.constant 0 : i32
    return %arg0, %c0_i32, %c0_i32_0 : i32, i32, i32
  }
}

module attributes {stable_mosaic.version = 11 : i64} {
  func.func @_embed_kernel(%arg0: i32, %arg1: memref<1x4x64xf32, #tpu.memory_space<vmem>>, %arg2: memref<1x8x128xf32, #tpu.memory_space<vmem>>, %arg3: memref<64x64xbf16, #tpu.memory_space<vmem>>, %arg4: memref<1x64xf32, #tpu.memory_space<vmem>>, %arg5: memref<64x128xbf16, #tpu.memory_space<vmem>>, %arg6: memref<1x128xf32, #tpu.memory_space<vmem>>, %arg7: memref<12x128xf32, #tpu.memory_space<vmem>>, %arg8: memref<1x12x128xf32, #tpu.memory_space<vmem>>) attributes {dimension_semantics = [#tpu.dimension_semantics<parallel>], iteration_bounds = array<i64: 2>, scalar_prefetch = 0 : i64, scratch_operands = 0 : i64, tpu.core_type = #tpu.core_type<tc>, window_params = [{transform_indices = @transform_0, window_bounds = array<i64: 1, 4, 64>}, {transform_indices = @transform_1, window_bounds = array<i64: 1, 8, 128>}, {pipeline_mode = #tpu.pipeline_mode<synchronous>, transform_indices = @transform_2, window_bounds = array<i64: 64, 64>}, {pipeline_mode = #tpu.pipeline_mode<synchronous>, transform_indices = @transform_3, window_bounds = array<i64: 1, 64>}, {pipeline_mode = #tpu.pipeline_mode<synchronous>, transform_indices = @transform_4, window_bounds = array<i64: 64, 128>}, {pipeline_mode = #tpu.pipeline_mode<synchronous>, transform_indices = @transform_5, window_bounds = array<i64: 1, 128>}, {pipeline_mode = #tpu.pipeline_mode<synchronous>, transform_indices = @transform_6, window_bounds = array<i64: 12, 128>}, {transform_indices = @transform_7, window_bounds = array<i64: 1, 12, 128>}]} {
    %c0 = arith.constant 0 : index
    %c0_0 = arith.constant 0 : index
    %c0_1 = arith.constant 0 : index
    %0 = vector.load %arg1[%c0, %c0_0, %c0_1] : memref<1x4x64xf32, #tpu.memory_space<vmem>>, vector<1x4x64xf32>
    %1 = vector.shape_cast %0 : vector<1x4x64xf32> to vector<4x64xf32>
    %2 = arith.truncf %1 : vector<4x64xf32> to vector<4x64xbf16>
    %c0_2 = arith.constant 0 : index
    %c0_3 = arith.constant 0 : index
    %3 = vector.load %arg3[%c0_2, %c0_3] : memref<64x64xbf16, #tpu.memory_space<vmem>>, vector<64x64xbf16>
    %cst = arith.constant dense<0.000000e+00> : vector<4x64xf32>
    %4 = tpu.matmul %2, %3, %cst {dimension_numbers = #tpu.dot_dimension_numbers<[1], [0], [0], [1], [0, 0, 1, 1], [], []>} : vector<4x64xbf16>, vector<64x64xbf16>, vector<4x64xf32> -> vector<4x64xf32>
    %c0_4 = arith.constant 0 : index
    %c0_5 = arith.constant 0 : index
    %5 = vector.load %arg4[%c0_4, %c0_5] : memref<1x64xf32, #tpu.memory_space<vmem>>, vector<1x64xf32>
    %6 = vector.broadcast %5 : vector<1x64xf32> to vector<4x64xf32>
    %7 = arith.addf %4, %6 : vector<4x64xf32>
    %8 = math.tanh %7 : vector<4x64xf32>
    %9 = arith.truncf %8 : vector<4x64xf32> to vector<4x64xbf16>
    %c0_6 = arith.constant 0 : index
    %c0_7 = arith.constant 0 : index
    %10 = vector.load %arg5[%c0_6, %c0_7] : memref<64x128xbf16, #tpu.memory_space<vmem>>, vector<64x128xbf16>
    %cst_8 = arith.constant dense<0.000000e+00> : vector<4x128xf32>
    %11 = tpu.matmul %9, %10, %cst_8 {dimension_numbers = #tpu.dot_dimension_numbers<[1], [0], [0], [1], [0, 0, 1, 1], [], []>} : vector<4x64xbf16>, vector<64x128xbf16>, vector<4x128xf32> -> vector<4x128xf32>
    %c0_9 = arith.constant 0 : index
    %c0_10 = arith.constant 0 : index
    %12 = vector.load %arg6[%c0_9, %c0_10] : memref<1x128xf32, #tpu.memory_space<vmem>>, vector<1x128xf32>
    %13 = vector.broadcast %12 : vector<1x128xf32> to vector<4x128xf32>
    %14 = arith.addf %11, %13 : vector<4x128xf32>
    %c0_11 = arith.constant 0 : index
    %c0_12 = arith.constant 0 : index
    %c0_13 = arith.constant 0 : index
    %15 = vector.load %arg2[%c0_11, %c0_12, %c0_13] : memref<1x8x128xf32, #tpu.memory_space<vmem>>, vector<1x8x128xf32>
    %16 = vector.shape_cast %15 : vector<1x8x128xf32> to vector<8x128xf32>
    %17 = tpu.concatenate %14, %16 in 0 : vector<4x128xf32>, vector<8x128xf32> -> vector<12x128xf32>
    %c0_14 = arith.constant 0 : index
    %c0_15 = arith.constant 0 : index
    %18 = vector.load %arg7[%c0_14, %c0_15] : memref<12x128xf32, #tpu.memory_space<vmem>>, vector<12x128xf32>
    %19 = arith.addf %17, %18 : vector<12x128xf32>
    %c0_16 = arith.constant 0 : index
    %c0_17 = arith.constant 0 : index
    %c0_18 = arith.constant 0 : index
    %20 = vector.load %arg8[%c0_16, %c0_17, %c0_18] : memref<1x12x128xf32, #tpu.memory_space<vmem>>, vector<1x12x128xf32>
    %21 = vector.shape_cast %20 : vector<1x12x128xf32> to vector<12x128xf32>
    %22 = vector.shape_cast %19 : vector<12x128xf32> to vector<1x12x128xf32>
    tpu.vector_store %arg8[%c0_16, %c0_17, %c0_18], %22 {strides = array<i32>} : memref<1x12x128xf32, #tpu.memory_space<vmem>>, vector<1x12x128xf32>,
    return
  }
  func.func @transform_0(%arg0: i32) -> (i32, i32, i32) {
    %c0_i32 = arith.constant 0 : i32
    %c0_i32_0 = arith.constant 0 : i32
    %c0_i32_1 = arith.constant 0 : i32
    return %arg0, %c0_i32, %c0_i32_0 : i32, i32, i32
  }
  func.func @transform_1(%arg0: i32) -> (i32, i32, i32) {
    %c0_i32 = arith.constant 0 : i32
    %c0_i32_0 = arith.constant 0 : i32
    %c0_i32_1 = arith.constant 0 : i32
    return %arg0, %c0_i32, %c0_i32_0 : i32, i32, i32
  }
  func.func @transform_2(%arg0: i32) -> (i32, i32) {
    %c0_i32 = arith.constant 0 : i32
    %c0_i32_0 = arith.constant 0 : i32
    %c0_i32_1 = arith.constant 0 : i32
    return %c0_i32, %c0_i32_0 : i32, i32
  }
  func.func @transform_3(%arg0: i32) -> (i32, i32) {
    %c0_i32 = arith.constant 0 : i32
    %c0_i32_0 = arith.constant 0 : i32
    %c0_i32_1 = arith.constant 0 : i32
    return %c0_i32, %c0_i32_0 : i32, i32
  }
  func.func @transform_4(%arg0: i32) -> (i32, i32) {
    %c0_i32 = arith.constant 0 : i32
    %c0_i32_0 = arith.constant 0 : i32
    %c0_i32_1 = arith.constant 0 : i32
    return %c0_i32, %c0_i32_0 : i32, i32
  }
  func.func @transform_5(%arg0: i32) -> (i32, i32) {
    %c0_i32 = arith.constant 0 : i32
    %c0_i32_0 = arith.constant 0 : i32
    %c0_i32_1 = arith.constant 0 : i32
    return %c0_i32, %c0_i32_0 : i32, i32
  }
  func.func @transform_6(%arg0: i32) -> (i32, i32) {
    %c0_i32 = arith.constant 0 : i32
    %c0_i32_0 = arith.constant 0 : i32
    %c0_i32_1 = arith.constant 0 : i32
    return %c0_i32, %c0_i32_0 : i32, i32
  }
  func.func @transform_7(%arg0: i32) -> (i32, i32, i32) {
    %c0_i32 = arith.constant 0 : i32
    %c0_i32_0 = arith.constant 0 : i32
    %c0_i32_1 = arith.constant 0 : i32
    return %arg0, %c0_i32, %c0_i32_0 : i32, i32, i32
  }
}

module attributes {stable_mosaic.version = 11 : i64} {
  func.func @_head_kernel(%arg0: i32, %arg1: memref<1x12x128xf32, #tpu.memory_space<vmem>>, %arg2: memref<1x128xf32, #tpu.memory_space<vmem>>, %arg3: memref<1x128xf32, #tpu.memory_space<vmem>>, %arg4: memref<128x256xbf16, #tpu.memory_space<vmem>>, %arg5: memref<1x12x1xi32, #tpu.memory_space<vmem>>, %arg6: memref<1x12x256xf32, #tpu.memory_space<vmem>>, %arg7: memref<1x11x1xf32, #tpu.memory_space<vmem>>) attributes {dimension_semantics = [#tpu.dimension_semantics<parallel>], iteration_bounds = array<i64: 2>, scalar_prefetch = 0 : i64, scratch_operands = 0 : i64, tpu.core_type = #tpu.core_type<tc>, window_params = [{transform_indices = @transform_0, window_bounds = array<i64: 1, 12, 128>}, {pipeline_mode = #tpu.pipeline_mode<synchronous>, transform_indices = @transform_1, window_bounds = array<i64: 1, 128>}, {pipeline_mode = #tpu.pipeline_mode<synchronous>, transform_indices = @transform_2, window_bounds = array<i64: 1, 128>}, {pipeline_mode = #tpu.pipeline_mode<synchronous>, transform_indices = @transform_3, window_bounds = array<i64: 128, 256>}, {transform_indices = @transform_4, window_bounds = array<i64: 1, 12, 1>}, {transform_indices = @transform_5, window_bounds = array<i64: 1, 12, 256>}, {transform_indices = @transform_6, window_bounds = array<i64: 1, 11, 1>}]} {
    %c0 = arith.constant 0 : index
    %c0_0 = arith.constant 0 : index
    %c0_1 = arith.constant 0 : index
    %0 = vector.load %arg1[%c0, %c0_0, %c0_1] : memref<1x12x128xf32, #tpu.memory_space<vmem>>, vector<1x12x128xf32>
    %1 = vector.shape_cast %0 : vector<1x12x128xf32> to vector<12x128xf32>
    %c0_2 = arith.constant 0 : index
    %c0_3 = arith.constant 0 : index
    %2 = vector.load %arg2[%c0_2, %c0_3] : memref<1x128xf32, #tpu.memory_space<vmem>>, vector<1x128xf32>
    %c0_4 = arith.constant 0 : index
    %c0_5 = arith.constant 0 : index
    %3 = vector.load %arg3[%c0_4, %c0_5] : memref<1x128xf32, #tpu.memory_space<vmem>>, vector<1x128xf32>
    %cst = arith.constant dense<0.000000e+00> : vector<12xf32>
    %4 = vector.multi_reduction <add>, %1, %cst [1] : vector<12x128xf32> to vector<12xf32>
    %5 = vector.shape_cast %4 : vector<12xf32> to vector<12x1xf32>
    %cst_6 = arith.constant 1.280000e+02 : f32
    %6 = vector.broadcast %cst_6 : f32 to vector<12x1xf32>
    %7 = arith.divf %5, %6 : vector<12x1xf32>
    %8 = vector.broadcast %7 : vector<12x1xf32> to vector<12x128xf32>
    %9 = arith.subf %1, %8 : vector<12x128xf32>
    %10 = arith.mulf %9, %9 : vector<12x128xf32>
    %cst_7 = arith.constant dense<0.000000e+00> : vector<12xf32>
    %11 = vector.multi_reduction <add>, %10, %cst_7 [1] : vector<12x128xf32> to vector<12xf32>
    %12 = vector.shape_cast %11 : vector<12xf32> to vector<12x1xf32>
    %cst_8 = arith.constant 1.280000e+02 : f32
    %13 = vector.broadcast %cst_8 : f32 to vector<12x1xf32>
    %14 = arith.divf %12, %13 : vector<12x1xf32>
    %cst_9 = arith.constant 9.99999974E-6 : f32
    %15 = vector.broadcast %cst_9 : f32 to vector<12x1xf32>
    %16 = arith.addf %14, %15 : vector<12x1xf32>
    %17 = math.rsqrt %16 : vector<12x1xf32>
    %18 = vector.broadcast %17 : vector<12x1xf32> to vector<12x128xf32>
    %19 = arith.mulf %9, %18 : vector<12x128xf32>
    %20 = vector.broadcast %2 : vector<1x128xf32> to vector<12x128xf32>
    %21 = arith.mulf %19, %20 : vector<12x128xf32>
    %22 = vector.broadcast %3 : vector<1x128xf32> to vector<12x128xf32>
    %23 = arith.addf %21, %22 : vector<12x128xf32>
    %24 = arith.truncf %23 : vector<12x128xf32> to vector<12x128xbf16>
    %c0_10 = arith.constant 0 : index
    %c0_11 = arith.constant 0 : index
    %25 = vector.load %arg4[%c0_10, %c0_11] : memref<128x256xbf16, #tpu.memory_space<vmem>>, vector<128x256xbf16>
    %cst_12 = arith.constant dense<0.000000e+00> : vector<12x256xf32>
    %26 = tpu.matmul %24, %25, %cst_12 {dimension_numbers = #tpu.dot_dimension_numbers<[1], [0], [0], [1], [0, 0, 1, 1], [], []>} : vector<12x128xbf16>, vector<128x256xbf16>, vector<12x256xf32> -> vector<12x256xf32>
    %c0_13 = arith.constant 0 : index
    %c0_14 = arith.constant 0 : index
    %c0_15 = arith.constant 0 : index
    %27 = vector.load %arg6[%c0_13, %c0_14, %c0_15] : memref<1x12x256xf32, #tpu.memory_space<vmem>>, vector<1x12x256xf32>
    %28 = vector.shape_cast %27 : vector<1x12x256xf32> to vector<12x256xf32>
    %29 = vector.shape_cast %26 : vector<12x256xf32> to vector<1x12x256xf32>
    tpu.vector_store %arg6[%c0_13, %c0_14, %c0_15], %29 {strides = array<i32>} : memref<1x12x256xf32, #tpu.memory_space<vmem>>, vector<1x12x256xf32>,
    %30 = vector.extract_strided_slice %26 {offsets = [0, 0], sizes = [11, 256], strides = [1, 1]} : vector<12x256xf32> to vector<11x256xf32>
    %c0_16 = arith.constant 0 : index
    %c0_17 = arith.constant 0 : index
    %c0_18 = arith.constant 0 : index
    %31 = vector.load %arg5[%c0_16, %c0_17, %c0_18] : memref<1x12x1xi32, #tpu.memory_space<vmem>>, vector<1x12x1xi32>
    %32 = vector.shape_cast %31 : vector<1x12x1xi32> to vector<12x1xi32>
    %33 = vector.extract_strided_slice %32 {offsets = [1, 0], sizes = [11, 1], strides = [1, 1]} : vector<12x1xi32> to vector<11x1xi32>
    %cst_19 = arith.constant dense<0xFF800000> : vector<11xf32>
    %34 = vector.multi_reduction <maximumf>, %30, %cst_19 [1] : vector<11x256xf32> to vector<11xf32>
    %35 = vector.shape_cast %34 : vector<11xf32> to vector<11x1xf32>
    %36 = vector.broadcast %35 : vector<11x1xf32> to vector<11x256xf32>
    %37 = arith.subf %30, %36 : vector<11x256xf32>
    %38 = math.exp %37 : vector<11x256xf32>
    %cst_20 = arith.constant dense<0.000000e+00> : vector<11xf32>
    %39 = vector.multi_reduction <add>, %38, %cst_20 [1] : vector<11x256xf32> to vector<11xf32>
    %40 = vector.shape_cast %39 : vector<11xf32> to vector<11x1xf32>
    %41 = math.log %40 : vector<11x1xf32>
    %42 = arith.addf %35, %41 : vector<11x1xf32>
    %43 = tpu.iota {dimensions = array<i32: 1>} : vector<11x256xi32>
    %44 = vector.broadcast %33 : vector<11x1xi32> to vector<11x256xi32>
    %45 = arith.cmpi eq, %43, %44 : vector<11x256xi32>
    %cst_21 = arith.constant 0.000000e+00 : f32
    %46 = vector.broadcast %cst_21 : f32 to vector<11x256xf32>
    %47 = arith.select %45, %30, %46 : vector<11x256xi1>, vector<11x256xf32>
    %cst_22 = arith.constant dense<0.000000e+00> : vector<11xf32>
    %48 = vector.multi_reduction <add>, %47, %cst_22 [1] : vector<11x256xf32> to vector<11xf32>
    %49 = vector.shape_cast %48 : vector<11xf32> to vector<11x1xf32>
    %50 = arith.subf %42, %49 : vector<11x1xf32>
    %c0_23 = arith.constant 0 : index
    %c0_24 = arith.constant 0 : index
    %c0_25 = arith.constant 0 : index
    %51 = vector.load %arg7[%c0_23, %c0_24, %c0_25] : memref<1x11x1xf32, #tpu.memory_space<vmem>>, vector<1x11x1xf32>
    %52 = vector.shape_cast %51 : vector<1x11x1xf32> to vector<11x1xf32>
    %53 = vector.shape_cast %50 : vector<11x1xf32> to vector<1x11x1xf32>
    tpu.vector_store %arg7[%c0_23, %c0_24, %c0_25], %53 {strides = array<i32>} : memref<1x11x1xf32, #tpu.memory_space<vmem>>, vector<1x11x1xf32>,
    return
  }
  func.func @transform_0(%arg0: i32) -> (i32, i32, i32) {
    %c0_i32 = arith.constant 0 : i32
    %c0_i32_0 = arith.constant 0 : i32
    %c0_i32_1 = arith.constant 0 : i32
    return %arg0, %c0_i32, %c0_i32_0 : i32, i32, i32
  }
  func.func @transform_1(%arg0: i32) -> (i32, i32) {
    %c0_i32 = arith.constant 0 : i32
    %c0_i32_0 = arith.constant 0 : i32
    %c0_i32_1 = arith.constant 0 : i32
    return %c0_i32, %c0_i32_0 : i32, i32
  }
  func.func @transform_2(%arg0: i32) -> (i32, i32) {
    %c0_i32 = arith.constant 0 : i32
    %c0_i32_0 = arith.constant 0 : i32
    %c0_i32_1 = arith.constant 0 : i32
    return %c0_i32, %c0_i32_0 : i32, i32
  }
  func.func @transform_3(%arg0: i32) -> (i32, i32) {
    %c0_i32 = arith.constant 0 : i32
    %c0_i32_0 = arith.constant 0 : i32
    %c0_i32_1 = arith.constant 0 : i32
    return %c0_i32, %c0_i32_0 : i32, i32
  }
  func.func @transform_4(%arg0: i32) -> (i32, i32, i32) {
    %c0_i32 = arith.constant 0 : i32
    %c0_i32_0 = arith.constant 0 : i32
    %c0_i32_1 = arith.constant 0 : i32
    return %arg0, %c0_i32, %c0_i32_0 : i32, i32, i32
  }
  func.func @transform_5(%arg0: i32) -> (i32, i32, i32) {
    %c0_i32 = arith.constant 0 : i32
    %c0_i32_0 = arith.constant 0 : i32
    %c0_i32_1 = arith.constant 0 : i32
    return %arg0, %c0_i32, %c0_i32_0 : i32, i32, i32
  }
  func.func @transform_6(%arg0: i32) -> (i32, i32, i32) {
    %c0_i32 = arith.constant 0 : i32
    %c0_i32_0 = arith.constant 0 : i32
    %c0_i32_1 = arith.constant 0 : i32
    return %arg0, %c0_i32, %c0_i32_0 : i32, i32, i32
  }
}

</mosaic_0001>

<bundles_post_ra>
// kernel: caption_model_forward.4
= control target key start
LH: loop header
LB: loop body
LE: loop exit
PB: predicated region body
PF: predicated region fallthrough
CT: control target
= control target key end

     0   :  { %s670_s24 = smov 0   ;;  %s733_s0 = inlined_call_operand.vmem [shape: f32[2,4,64], index: 0, kind: input, shape index: {}]   ;;  %s734_s1 = inlined_call_operand.vmem [shape: f32[2,8,128], index: 1, kind: input, shape index: {}]   ;;  %s735_s2 = inlined_call_operand.vmem [shape: bf16[64,64], index: 2, kind: input, shape index: {}]   ;;  %s736_s3 = inlined_call_operand.vmem [shape: f32[1,64], index: 3, kind: input, shape index: {}]   ;;  %s737_s4 = inlined_call_operand.vmem [shape: bf16[64,128], index: 4, kind: input, shape index: {}]   ;;  %s738_s5 = inlined_call_operand.vmem [shape: f32[1,128], index: 5, kind: input, shape index: {}]   ;;  %s739_s6 = inlined_call_operand.vmem [shape: f32[12,128], index: 6, kind: input, shape index: {}]   ;;  %s740_s7 = inlined_call_operand.vmem [shape: f32[2,12,128], index: 7, kind: output, shape index: {}]  }
   0x1 LB: > { %s542_s25 = sadd.s32 4294967295, %s626_s24   ;;  %p546_p0 = scmp.ge.s32.totalorder %s626_s24, 1  ;;  %s626_s24 = sphi %s670_s24, %s17_s24  }
   0x2   : > { %p245_p1 = scmp.lt.s32.totalorder %s626_s24, 3 }
   0x4   : > { %p246_p2 = pnand %p546_p0, %p245_p1 }
   0x5   : > { %v610_v0 = vld [vmem:[%s735_s2] sm:$0xff] (!%p246_p2)   ;;  %v628_v1 = vmov (!%p246_p2), 0.0   ;;  %v611_v2 = vld [vmem:[%s735_s2 + $0x8] sm:$0xff] (!%p246_p2)   ;;  %vm629_vm0 = vmmov (!%p246_p2), 0   ;;  %p280_p3 = scmp.lt.s32.totalorder (!%p246_p2), %s542_s25, 1  ;;  %v612_v3 = vld [vmem:[%s735_s2 + $0x10] sm:$0xff] (!%p246_p2)  }
   0x6   : > { %249 = sbr.rel (%p246_p2) target bundleno = 467 (0x1d3), region = 48  ;;  %576 = vmatprep.subr.bf16.mxu0 (!%p246_p2), %v628_v1  ;;  %588 = vmatprep.subr.bf16.mxu1 (!%p246_p2), %v628_v1  ;;  %v613_v4 = vld [vmem:[%s735_s2 + $0x18] sm:$0xff] (!%p246_p2)   ;;  %vm335_vm1 = vcmask (!%p246_p2), 523264   ;;  %v614_v7 = vld [vmem:[%s737_s4] sm:$0xff] (!%p246_p2)   ;;  %v615_v8 = vld [vmem:[%s737_s4 + $0x8] sm:$0xff] (!%p246_p2)   ;;  %vm467_vm2 = vcmask (!%p246_p2), 1043456  }
   0x7   : > { %577 = vmatpush3.bf16.msra.mxu0 (!%p246_p2), %v610_v0  ;;  %584 = vmatprep.mubr.msk.bf16.mxu0 (!%p246_p2), %vm629_vm0, %v628_v1  ;;  %v616_v9 = vld [vmem:[%s737_s4 + $0x10] sm:$0xff] (!%p246_p2)   ;;  %v617_v10 = vld [vmem:[%s737_s4 + $0x18] sm:$0xff] (!%p246_p2)   ;;  %v551_v11 = vld [vmem:[%s736_s3] ss:$0 sm:$0xff] (!%p246_p2) }
   0x8   : > { %578 = vmatprep.subr.bf16.mxu0 (!%p246_p2), %v628_v1  ;;  %596 = vmatprep.mubr.msk.bf16.mxu1 (!%p246_p2), %vm629_vm0, %v628_v1  ;;  %v470_v21 = vld [vmem:[%s739_s6 + $0x8] sm:$0xf] (!%p246_p2)  ;;  %v557_v23 = vld [vmem:[%s738_s5] ss:$0 sm:$0xff] (!%p246_p2) }
   0x9   : > { %589 = vmatpush3.bf16.msra.mxu1 (!%p246_p2), %v614_v7  ;;  %v469_v26 = vld [vmem:[%s739_s6] sm:$0xff] (!%p246_p2) }
   0xa   : > { %590 = vmatprep.subr.bf16.mxu1 (!%p246_p2), %v628_v1 }
   0xb   : > { %579 = vmatpush3.bf16.msra.mxu0 (!%p246_p2), %v611_v2 }
   0xc   : > { %580 = vmatprep.subr.bf16.mxu0 (!%p246_p2), %v628_v1 }
   0xd   : > { %s742_s25 = smov (!%p280_p3, %s542_s25), 1  ;;  %591 = vmatpush3.bf16.msra.mxu1 %v615_v8 }
   0xe   : > { %s547_s9 = sshll.u32 %s742_s25, 2  ;;  %592 = vmatprep.subr.bf16.mxu1 %v628_v1  ;;  %s548_s27 = sshll.u32 %s742_s25, 3 }
   0xf   : > { %s283_s12 = scalar_lea.vmem %s733_s0, %s547_s9  ;;  %581 = vmatpush3.bf16.msra.mxu0 %v612_v3  ;;  %s287_s30 = scalar_lea.vmem %s734_s1, %s548_s27 }
  0x10   : > { %v294_v5 = vld [vmem:[%s283_s12] sm:$0xf]  ;;  %582 = vmatprep.subr.bf16.mxu0 %v628_v1  ;;  %s565_s8 = sshll.u32 %s742_s25, 4 }
  0x11   : > { %v295_v6 = vpack.c.bf16 %v294_v5, %v294_v5  ;;  %593 = vmatpush3.bf16.msra.mxu1 %v616_v9  ;;  %v463_v19 = vld [vmem:[%s287_s30] sm:$0xff]  ;;  %s292_s11 = scalar_lea.vmem %s740_s7, %s565_s8 }
  0x12   : > { %594 = vmatprep.subr.bf16.mxu1 %v628_v1  ;;  %v465_v20 = vrot.slane %v463_v19, 4 }
  0x13   : > { %583 = vmatpush3.bf16.msra.mxu0 %v613_v4 }
  0x14   : > { %v472_v22 = vadd.f32 %v470_v21, %v465_v20 }
  0x15   : > { %595 = vmatpush3.bf16.msra.mxu1 %v617_v10 }
  0x16   : > { %585 = vmatmul.mubr.msk.bf16.vlgmr.msra.gmra.mrb[0].mxu0 %vm335_vm1, %v295_v6  ;;  %474 = vst [vmem:[%s292_s11 + $0x8] sm:$0xf] %v472_v22 }
  0xe9   : > { %v373_v12 = vpop.f32.mrb[0].mxu0 }
  0xea   : > { %v374_v13 = vadd.f32 %v551_v11, %v373_v12  ;;  %v586_v14 = vpop.f32.mrb[1].mxu0 }
  0xeb   : > { %v376_v15 = vpop.f32.mrb[2].mxu0 }
  0xec   : > { %618 = vtanh.f32 %v374_v13  ;;  %v587_v16 = vpop.f32.mrb[3].mxu0 }
  0xf6   : > { %v619_v17 = vpop.eup %618 }
  0xf7   : > { %v380_v18 = vpack.c.bf16 %v619_v17, %v619_v17 }
  0xf9   : > { %597 = vmatmul.mubr.msk.bf16.vlgmr.msra.gmra.mrb[0].mxu1 %vm335_vm1, %v380_v18 }
 0x1cc   : > { %v457_v24 = vpop.f32.mrb[0].mxu1 }
 0x1cd   : > { %v458_v25 = vadd.f32 %v557_v23, %v457_v24  ;;  %v598_v27 = vpop.f32.mrb[1].mxu1 }
 0x1ce   : > { %v460_v28 = vpop.f32.mrb[2].mxu1 }
 0x1cf   : > { %v468_v29 = vsel %vm467_vm2, %v458_v25, %v465_v20  ;;  %v599_v30 = vpop.f32.mrb[3].mxu1 }
 0x1d0   : > { %v471_v31 = vadd.f32 %v469_v26, %v468_v29 }
 0x1d2   : > { %473 = vst [vmem:[%s292_s11] sm:$0xff] %v471_v31 }
 0x1d3 PF: > { %s17_s24 = sadd.s32 1, %s626_s24  }
 0x1d4   : > { %p14_p4 = scmp.ge.s32.totalorder %s17_s24, 4  }
 0x1d6   :  { %16 = sbr.rel (!%p14_p4) target bundleno = 1 (0x1), region = 81 }

// kernel: caption_model_forward.7
= control target key start
LH: loop header
LB: loop body
LE: loop exit
PB: predicated region body
PF: predicated region fallthrough
CT: control target
= control target key end

     0   :  { %s802_s21 = smov 0   ;;  %s896_s0 = inlined_call_operand.vmem [shape: f32[2,12,128], index: 0, kind: input, shape index: {}]   ;;  %s897_s1 = inlined_call_operand.vmem [shape: f32[1,128], index: 1, kind: input, shape index: {}]   ;;  %s898_s2 = inlined_call_operand.vmem [shape: f32[1,128], index: 2, kind: input, shape index: {}]   ;;  %s899_s3 = inlined_call_operand.vmem [shape: bf16[128,256], index: 3, kind: input, shape index: {}]   ;;  %s900_s4 = inlined_call_operand.vmem [shape: s32[2,12,1], index: 4, kind: input, shape index: {}]   ;;  %s901_s5 = inlined_call_operand.vmem [shape: f32[2,12,256], index: 5, kind: output, shape index: {0}]   ;;  %s902_s6 = inlined_call_operand.vmem [shape: f32[2,11,1], index: 6, kind: output, shape index: {1}]  }
   0x1 LB: > { %s670_s22 = sadd.s32 4294967295, %s764_s21   ;;  %p674_p0 = scmp.ge.s32.totalorder %s764_s21, 1  ;;  %s764_s21 = sphi %s802_s21, %s17_s21  }
   0x2   : > { %p225_p1 = scmp.lt.s32.totalorder %s764_s21, 3 }
   0x4   : > { %p226_p2 = pnand %p674_p0, %p225_p1 }
   0x5   : > { %p265_p3 = scmp.lt.s32.totalorder (!%p226_p2), %s670_s22, 1  ;;  %vm292_vm0 = vcmask (!%p226_p2), 1043456   ;;  %v718_v3 = vld [vmem:[%s899_s3 + $0x4] ss:$8 sps:$4 sm:$0xff] (!%p226_p2)   ;;  %v720_v4 = vld [vmem:[%s899_s3] ss:$8 sps:$4 sm:$0xff] (!%p226_p2)   ;;  %v513_v62 = vlaneseq (!%p226_p2) }
   0x6   : > { %229 = sbr.rel (%p226_p2) target bundleno = 878 (0x36e), region = 40  ;;  %v721_v5 = vld [vmem:[%s899_s3 + $0x14] ss:$8 sps:$4 sm:$0xff] (!%p226_p2)   ;;  %429 = vmatprep.subr.bf16.mxu0 (!%p226_p2), %v718_v3  ;;  %v723_v15 = vld [vmem:[%s899_s3 + $0x10] ss:$8 sps:$4 sm:$0xff] (!%p226_p2)   ;;  %v766_v23 = vmov (!%p226_p2), 0  }
   0x7   : > { %430 = vmatpush1.bf16.msra.mxu0 (!%p226_p2), %v720_v4  ;;  %v724_v16 = vld [vmem:[%s899_s3 + $0x24] ss:$8 sps:$4 sm:$0xff] (!%p226_p2)   ;;  %v726_v17 = vld [vmem:[%s899_s3 + $0x20] ss:$8 sps:$4 sm:$0xff] (!%p226_p2)   ;;  %v727_v18 = vld [vmem:[%s899_s3 + $0x34] ss:$8 sps:$4 sm:$0xff] (!%p226_p2)   ;;  %461 = vmatprep.mubr.bf16.mxu0 (!%p226_p2), %v766_v23 }
   0x8   : > { %431 = vmatprep.subr.bf16.mxu0 (!%p226_p2), %v721_v5  ;;  %v729_v19 = vld [vmem:[%s899_s3 + $0x30] ss:$8 sps:$4 sm:$0xff] (!%p226_p2)   ;;  %v730_v20 = vld [vmem:[%s899_s3 + $0x44] ss:$8 sps:$4 sm:$0xff] (!%p226_p2)   ;;  %v732_v21 = vld [vmem:[%s899_s3 + $0x40] ss:$8 sps:$4 sm:$0xff] (!%p226_p2)   ;;  %717 = vset.pattern.permute.xlu1 (!%p226_p2), %v766_v23 }
   0x9   : > { %v733_v22 = vld [vmem:[%s899_s3 + $0x54] ss:$8 sps:$4 sm:$0xff] (!%p226_p2)   ;;  %v735_v24 = vld [vmem:[%s899_s3 + $0x50] ss:$8 sps:$4 sm:$0xff] (!%p226_p2)   ;;  %716 = vset.pattern.permute.xlu0 (!%p226_p2), %v766_v23  ;;  %v736_v25 = vld [vmem:[%s899_s3 + $0x64] ss:$8 sps:$4 sm:$0xff] (!%p226_p2)  }
   0xa   : > { %v738_v26 = vld [vmem:[%s899_s3 + $0x60] ss:$8 sps:$4 sm:$0xff] (!%p226_p2)   ;;  %v739_v27 = vld [vmem:[%s899_s3 + $0x74] ss:$8 sps:$4 sm:$0xff] (!%p226_p2)   ;;  %v741_v28 = vld [vmem:[%s899_s3 + $0x70] ss:$8 sps:$4 sm:$0xff] (!%p226_p2)  }
   0xb   : > { %432 = vmatpush1.bf16.msra.mxu0 (!%p226_p2), %v723_v15  ;;  %v683_v37 = vld [vmem:[%s897_s1] ss:$0 sm:$0xff] (!%p226_p2)  ;;  %vm481_vm1 = vcmask (!%p226_p2), 1042432   ;;  %vm530_vm2 = vcmask (!%p226_p2), 1040384   ;;  %v514_v63 = vand.u32 (!%p226_p2), 127, %v513_v62  ;;  %vm545_vm5 = vcmask (!%p226_p2), 1047553  }
   0xc   : > { %433 = vmatprep.subr.bf16.mxu0 (!%p226_p2), %v724_v16  ;;  %v684_v41 = vld [vmem:[%s898_s2] ss:$0 sm:$0xff] (!%p226_p2)  ;;  %vm558_vm8 = vcmask (!%p226_p2), 1046528   ;;  %vm566_vm9 = vcmask (!%p226_p2), 7168   ;;  %vm568_vm10 = vcmask (!%p226_p2), 2048  }
   0xd   : > { %s904_s22 = smov (!%p265_p3, %s670_s22), 1  ;;  %v515_v3 = vadd.s32 128, %v514_v63 }
   0xe   : > { %s813_s23 = sshll.u32 %s904_s22, 4  ;;  %s705_s18 = sshll.u32 %s904_s22, 5 }
   0xf   : > { %s269_s26 = scalar_lea.vmem %s896_s0, %s813_s23  ;;  %434 = vmatpush1.bf16.msra.mxu0 %v726_v17  ;;  %s279_s24 = scalar_lea.vmem %s901_s5, %s705_s18 }
  0x10   : > { %v287_v0 = vld [vmem:[%s269_s26 + $0x8] sm:$0xf]  ;;  %v286_v2 = vld [vmem:[%s269_s26] sm:$0xff]  ;;  %435 = vmatprep.subr.bf16.mxu0 %v727_v18  ;;  %s274_s26 = scalar_lea.vmem %s900_s4, %s813_s23  ;;  %s284_s29 = scalar_lea.vmem %s902_s6, %s813_s23 }
  0x11   : > { %v293_v1 = vsel %vm292_vm0, %v287_v0, 0.0  ;;  %v477_v60 = vld [vmem:[%s274_s26 + $0x8] sm:$0xf]  ;;  %v476_v61 = vld [vmem:[%s274_s26] sm:$0xff] }
  0x12   : > { %294 = vadd.xlane.f32.xlu0 %v293_v1 }
  0x13   : > { %436 = vmatpush1.bf16.msra.mxu0 %v729_v19 }
  0x14   : > { %437 = vmatprep.subr.bf16.mxu0 %v730_v20 }
  0x16   : > { %290 = vadd.xlane.f32.xlu0 %v286_v2 }
  0x17   : > { %438 = vmatpush1.bf16.msra.mxu0 %v732_v21 }
  0x18   : > { %439 = vmatprep.subr.bf16.mxu0 %v733_v22 }
  0x1b   : > { %440 = vmatpush1.bf16.msra.mxu0 %v735_v24 }
  0x1c   : > { %441 = vmatprep.subr.bf16.mxu0 %v736_v25 }
  0x1f   : > { %442 = vmatpush1.bf16.msra.mxu0 %v738_v26 }
  0x20   : > { %443 = vmatprep.subr.bf16.mxu0 %v739_v27 }
  0x23   : > { %444 = vmatpush1.bf16.msra.mxu0 %v741_v28 }
  0x9f   : > { %v295_v6 = vpop.xlane.xlu0 %294 }
  0xa0   : > { %v298_v7 = vmul.f32 0.0078125, %v295_v6 }
  0xa2   : > { %v300_v10 = vsub.f32 %v287_v0, %v298_v7 }
  0xa3   : > { %v291_v8 = vpop.xlane.xlu0 %290 }
  0xa4   : > { %v297_v9 = vmul.f32 0.0078125, %v291_v8  ;;  %v302_v13 = vmul.f32 %v300_v10, %v300_v10 }
  0xa6   : > { %v299_v11 = vsub.f32 %v286_v2, %v297_v9  ;;  %v305_v14 = vsel %vm292_vm0, %v302_v13, 0.0 }
  0xa8   : > { %v301_v12 = vmul.f32 %v299_v11, %v299_v11 }
  0xaa   : > { %303 = vadd.xlane.f32.xlu1 %v301_v12 }
  0xae   : > { %306 = vadd.xlane.f32.xlu1 %v305_v14 }
 0x137   : > { %v304_v29 = vpop.xlane.xlu1 %303 }
 0x138   : > { %v308_v30 = vmul.f32 0.0078125, %v304_v29 }
 0x13a   : > { %v310_v31 = vadd.f32 1e-05, %v308_v30 }
 0x13b   : > { %v307_v32 = vpop.xlane.xlu1 %306 }
 0x13c   : > { %742 = vrsqrt.f32 %v310_v31  ;;  %v309_v33 = vmul.f32 0.0078125, %v307_v32 }
 0x13e   : > { %v311_v34 = vadd.f32 1e-05, %v309_v33 }
 0x140   : > { %744 = vrsqrt.f32 %v311_v34 }
 0x146   : > { %v743_v35 = vpop.eup %742 }
 0x147   : > { %v314_v36 = vmul.f32 %v743_v35, %v299_v11 }
 0x149   : > { %v322_v40 = vmul.f32 %v683_v37, %v314_v36 }
 0x14a   : > { %v745_v38 = vpop.eup %744 }
 0x14b   : > { %v315_v39 = vmul.f32 %v745_v38, %v300_v10  ;;  %v330_v43 = vadd.f32 %v684_v41, %v322_v40 }
 0x14d   : > { %v323_v42 = vmul.f32 %v683_v37, %v315_v39 }
 0x14f   : > { %v331_v44 = vadd.f32 %v684_v41, %v323_v42 }
 0x151   : > { %v332_v45 = vpack.c.bf16 %v331_v44, %v330_v43 }
 0x153   : > { %462 = vmatmul.mubr.bf16.vlgmr.msra.gmra.mrb[0].mxu0 %v332_v45 }
 0x226   : > { %v463_v46 = vpop.f32.mrb[0].mxu0 }
 0x227   : > { %472 = vst [vmem:[%s279_s24] sm:$0xff] %v463_v46  ;;  %v465_v47 = vpop.f32.mrb[1].mxu0  ;;  %v531_v50 = vrot.slane %v463_v46, 7 }
 0x228   : > { %473 = vst [vmem:[%s279_s24 + $0x8] sm:$0xff] %v465_v47  ;;  %v467_v48 = vpop.f32.mrb[2].mxu0  ;;  %v478_v49 = vmax.f32 %v463_v46, %v465_v47  ;;  %v532_v54 = vrot.slane %v465_v47, 7 }
 0x229   : > { %474 = vst [vmem:[%s279_s24 + $0x10] sm:$0xf] %v467_v48  ;;  %v533_v51 = vrot.slane %v467_v48, 7  ;;  %v469_v52 = vpop.f32.mrb[3].mxu0  ;;  %v482_v53 = vsel %vm481_vm1, %v467_v48, -inf }
 0x22a   : > { %475 = vst [vmem:[%s279_s24 + $0x18] sm:$0xf] %v469_v52  ;;  %v535_v55 = vrot.slane %v469_v52, 7  ;;  %479 = vmax.xlane.f32.xlu1 %v478_v49  ;;  %v483_v56 = vsel %vm481_vm1, %v469_v52, -inf }
 0x22b   : > { %v484_v57 = vmax.f32 %v482_v53, %v483_v56  ;;  %v534_v58 = vsel %vm530_vm2, %v531_v50, %v533_v51 }
 0x22c   : > { %v536_v59 = vsel %vm530_vm2, %v532_v54, %v535_v55 }
 0x22d   : > { %485 = vmax.xlane.f32.xlu0 %v484_v57 }
 0x23b   : > { %520 = vperm.xlu1 %717, %v477_v60  }
 0x243   : > { %517 = vperm.xlu0 %716, %v476_v61  }
 0x2b7   : > { %v480_v0 = vpop.xlane.xlu1 %479 }
 0x2b8   : > { %v487_v1 = vsub.f32 %v463_v46, %v480_v0  ;;  %v488_v2 = vsub.f32 %v465_v47, %v480_v0 }
 0x2ba   : > { %v491_v4 = vmul.f32 1.442695, %v487_v1  ;;  %v493_v5 = vmul.f32 1.442695, %v488_v2  ;;  %v486_v6 = vpop.xlane.xlu0 %485 }
 0x2bb   : > { %v489_v7 = vsub.f32 %v467_v48, %v486_v6  ;;  %v490_v8 = vsub.f32 %v469_v52, %v486_v6  ;;  %v521_v9 = vpop.permute.xlu1 %520 }
 0x2bc   : > { %746 = vpow2.f32 %v491_v4  ;;  %vm524_vm3 = vcmp.eq.s32.totalorder %v514_v63, %v521_v9  ;;  %vm525_vm4 = vcmp.eq.s32.totalorder %v515_v3, %v521_v9 }
 0x2bd   : > { %748 = vpow2.f32 %v493_v5  ;;  %v495_v10 = vmul.f32 1.442695, %v489_v7  ;;  %v497_v11 = vmul.f32 1.442695, %v490_v8  ;;  %v543_v12 = vsel %vm524_vm3, %v534_v58, 0.0 }
 0x2be   : > { %v544_v13 = vsel %vm525_vm4, %v536_v59, 0.0  ;;  %v551_v14 = vsel %vm292_vm0, %v543_v12, 0.0 }
 0x2bf   : > { %750 = vpow2.f32 %v495_v10  ;;  %v552_v15 = vsel %vm292_vm0, %v544_v13, 0.0 }
 0x2c0   : > { %752 = vpow2.f32 %v497_v11  ;;  %v553_v16 = vadd.f32 %v552_v15, %v551_v14 }
 0x2c2   : > { %v518_v17 = vpop.permute.xlu0 %517 }
 0x2c3   : > { %vm522_vm6 = vcmp.eq.s32.totalorder %v514_v63, %v518_v17  ;;  %vm523_vm7 = vcmp.eq.s32.totalorder %v515_v3, %v518_v17 }
 0x2c4   : > { %v541_v18 = vsel %vm522_vm6, %v531_v50, 0.0  ;;  %v542_v19 = vsel %vm523_vm7, %v532_v54, 0.0 }
 0x2c5   : > { %v546_v20 = vsel %vm545_vm5, %v541_v18, 0.0  ;;  %v547_v21 = vsel %vm545_vm5, %v542_v19, 0.0 }
 0x2c6   : > { %v747_v22 = vpop.eup %746  ;;  %v548_v23 = vadd.f32 %v547_v21, %v546_v20 }
 0x2c7   : > { %v749_v24 = vpop.eup %748 }
 0x2c8   : > { %v499_v25 = vadd.f32 %v749_v24, %v747_v22 }
 0x2c9   : > { %v751_v26 = vpop.eup %750 }
 0x2ca   : > { %v753_v27 = vpop.eup %752  ;;  %500 = vadd.xlane.f32.xlu1 %v499_v25  ;;  %v502_v28 = vsel %vm481_vm1, %v751_v26, 0.0 }
 0x2cb   : > { %v503_v29 = vsel %vm481_vm1, %v753_v27, 0.0 }
 0x2cc   : > { %v504_v30 = vadd.f32 %v503_v29, %v502_v28 }
 0x2ce   : > { %505 = vadd.xlane.f32.xlu0 %v504_v30  ;;  %549 = vadd.xlane.f32.xlu1 %v548_v23 }
 0x2d2   : > { %554 = vadd.xlane.f32.xlu1 %v553_v16 }
 0x357   : > { %v501_v31 = vpop.xlane.xlu1 %500 }
 0x358   : > { %754 = vlog2.f32 %v501_v31 }
 0x35b   : > { %v550_v32 = vpop.xlane.xlu1 %549  ;;  %v506_v33 = vpop.xlane.xlu0 %505 }
 0x35c   : > { %756 = vlog2.f32 %v506_v33  ;;  %v559_v38 = vrot.slane %v550_v32, 1 }
 0x35f   : > { %v555_v34 = vpop.xlane.xlu1 %554 }
 0x360   : > { %v560_v36 = vrot.slane %v555_v34, 1 }
 0x362   : > { %v755_v35 = vpop.eup %754  ;;  %v561_v41 = vsel %vm558_vm8, %v559_v38, %v560_v36 }
 0x363   : > { %v508_v37 = vmul.f32 0.6931472, %v755_v35 }
 0x365   : > { %v511_v39 = vadd.f32 %v508_v37, %v480_v0 }
 0x366   : > { %v757_v40 = vpop.eup %756 }
 0x367   : > { %v510_v42 = vmul.f32 0.6931472, %v757_v40  ;;  %v564_v43 = vsub.f32 %v511_v39, %v561_v41 }
 0x369   : > { %v512_v44 = vadd.f32 %v510_v42, %v486_v6  ;;  %567 = vst.msk [vmem:[%s284_s29] sm:$0xff] %vm566_vm9, %v564_v43 }
 0x36b   : > { %v565_v45 = vsub.f32 %v512_v44, %v560_v36 }
 0x36d   : > { %569 = vst.msk [vmem:[%s284_s29 + $0x8] sm:$0x7] %vm568_vm10, %v565_v45 }
 0x36e PF: > { %s17_s21 = sadd.s32 1, %s764_s21  }
 0x36f   : > { %p14_p4 = scmp.ge.s32.totalorder %s17_s21, 4  }
 0x371   :  { %16 = sbr.rel (!%p14_p4) target bundleno = 1 (0x1), region = 85 }

// kernel: caption_model_forward.5
= control target key start
LH: loop header
LB: loop body
LE: loop exit
PB: predicated region body
PF: predicated region fallthrough
CT: control target
= control target key end

     0   :  { %s3742_s0 = inlined_call_operand.vmem [shape: f32[2,12,128], index: 0, kind: input, shape index: {}]   ;;  %s3743_s1 = inlined_call_operand.hbm [shape: f32[1,128], index: 1, kind: input, shape index: {}]   ;;  %s3744_s2 = inlined_call_operand.hbm [shape: f32[1,128], index: 2, kind: input, shape index: {}]   ;;  %s3745_s3 = inlined_call_operand.hbm [shape: bf16[128,384], index: 3, kind: input, shape index: {}]   ;;  %s3746_s4 = inlined_call_operand.hbm [shape: f32[1,384], index: 4, kind: input, shape index: {}]   ;;  %s3747_s5 = inlined_call_operand.vmem [shape: bf16[128,128], index: 5, kind: input, shape index: {}]   ;;  %s3748_s6 = inlined_call_operand.hbm [shape: f32[1,128], index: 6, kind: input, shape index: {}]   ;;  %s3749_s7 = inlined_call_operand.hbm [shape: f32[1,128], index: 7, kind: input, shape index: {}]   ;;  %s3750_s8 = inlined_call_operand.hbm [shape: f32[1,128], index: 8, kind: input, shape index: {}]   ;;  %s3751_s9 = inlined_call_operand.vmem [shape: bf16[128,512], index: 9, kind: input, shape index: {}]   ;;  %s3752_s10 = inlined_call_operand.hbm [shape: f32[1,512], index: 10, kind: input, shape index: {}]   ;;  %s3753_s11 = inlined_call_operand.hbm [shape: bf16[512,128], index: 11, kind: input, shape index: {}]   ;;  %s3754_s12 = inlined_call_operand.hbm [shape: f32[1,128], index: 12, kind: input, shape index: {}]   ;;  %s3755_s13 = inlined_call_operand.vmem [shape: f32[2,12,128], index: 13, kind: output, shape index: {}]  }
   0x1   :  { %3759 = sst [smem:[#allocation25_spill]] %s3743_s1 }
   0x2   :  { %3760 = sst [smem:[#allocation26_spill]] %s3744_s2 }
   0x3   :  { %3761 = sst [smem:[#allocation27_spill]] %s3746_s4 }
   0x4   :  { %18 = vsyncpa [#allocation3], 0 }
   0x5   :  { %19 = vsyncpa [#allocation5], 0 }
   0x6   :  { %20 = vsyncpa [#allocation8], 0 }
   0x7   :  { %21 = vsyncpa [#allocation11], 0 }
   0x8   :  { %22 = vsyncpa [#allocation14], 0 }
   0x9   :  { %23 = vsyncpa [#allocation17], 0  ;;  %s3146_s25 = smov 0  }
   0xa LB: > { %3762 = sst [smem:[#allocation24_spill]] %s3056_s25  ;;  %s3058_s26 = smov [#allocation4]   ;;  %s3056_s25 = sphi %s3146_s25, %s29_s25  }
   0xb   : > { %s362_s27 = sshll.u32 %s3058_s26, 4  ;;  %s3152_s28 = sadd.s32 4294967295, %s3056_s25   ;;  %s3157_s27 = int_to_ptr.vmem [resolvable:$true] %s362_s27 }
   0xc   : > { %p2193_p0 = scmp.ge.s32.totalorder %s3056_s25, 1  ;;  %p338_p1 = scmp.lt.s32.totalorder %s3056_s25, 3 }
   0xd   : > { %p3757_p2 = scmp.eq.s32.totalorder %s3152_s28, 0  ;;  %s3059_s30 = smov [#allocation7]  }
   0xe   : > { %p3159_p3 = pnand %p2193_p0, %p338_p1  ;;  %s386_s14 = sshll.u32 %s3059_s30, 4  ;;  %s3165_s14 = int_to_ptr.vmem [resolvable:$true] %s386_s14 }
   0xf   : > { %s3060_s15 = smov [#allocation10]   ;;  %s3061_s18 = smov [#allocation13]  }
  0x10   : > { %s3763_s29 = scalar_select %p3159_p3, 1, 0 }
  0x11   : > { %p2504_p4 = pneg %p3159_p3  ;;  %s411_s16 = sshll.u32 %s3060_s15, 4  ;;  %s3173_s16 = int_to_ptr.vmem [resolvable:$true] %s411_s16 }
  0x12   : > { %s436_s19 = sshll.u32 %s3061_s18, 4  ;;  %s3765_s2 = sld [smem:[#allocation26_spill]]  ;;  %s3175_s19 = int_to_ptr.vmem [resolvable:$true] %s436_s19 }
  0x13   : > { %p3169_p5 = pnand %p3757_p2, %p2504_p4 }
  0x15   : > { %p3185_p7 = pneg %p3169_p5 }
  0x18   : > { %s2746_s22 = scalar_lea.hbm %s3765_s2, 16 }
  0x19   : > { %p2747_p6 = scmp.ne.s32.totalorder %s3765_s2, %s2746_s22  ;;  %p2753_p10 = scmp.lt.u32.totalorder %s2746_s22, %s3765_s2 }
  0x1b   : > { %p2749_p8 = pnand %p3185_p7, %p2747_p6 }
  0x1d   : > { %p2750_p9 = pneg %p2749_p8 }
  0x1f   : > { %p2755_p11 = pnand %p2753_p10, %p2750_p9 }
  0x21   : > { %2758 = shalt.err (!%p2755_p11)
}
  0x22   : > { %s2759_s18 = scalar_lea.vmem %s3157_s27, 16  ;;  %s2766_s20 = scalar_lea.vmem %s3157_s27, 32 }
  0x23   : > { %p2760_p12 = scmp.ne.s32.totalorder %s3157_s27, %s2759_s18  ;;  %p2767_p1 = scmp.lt.s32.totalorder %s3157_s27, %s3157_s27 }
  0x24   : > { %p2768_p4 = scmp.lt.s32.totalorder %s2766_s20, %s2759_s18 }
  0x25   : > { %p2762_p13 = pnand %p2760_p12, %p3185_p7 }
  0x26   : > { %p2769_p6 = por %p2768_p4, %p2767_p1 }
  0x27   : > { %p2763_p0 = pneg %p2762_p13 }
  0x29   : > { %p2770_p8 = pnand %p2769_p6, %p2763_p0 }
  0x2b   : > { %2773 = shalt.err (!%p2770_p8)
}
  0x2c   : > { %2510 = dma.hbm_to_vmem [thread:$0]  (!%p3169_p5), %s3765_s2, 16, %s3157_s27, [#allocation5]  }
  0x2d   : > { %s3767_s4 = sld [smem:[#allocation27_spill]] }
  0x33   : > { %s2774_s30 = scalar_lea.hbm %s3767_s4, 48 }
  0x34   : > { %p2775_p9 = scmp.ne.s32.totalorder %s3767_s4, %s2774_s30  ;;  %p2781_p12 = scmp.lt.u32.totalorder %s2774_s30, %s3767_s4 }
  0x36   : > { %p2777_p10 = pnand %p2775_p9, %p3185_p7 }
  0x38   : > { %p2778_p11 = pneg %p2777_p10 }
  0x3a   : > { %p2783_p13 = pnand %p2781_p12, %p2778_p11 }
  0x3c   : > { %2786 = shalt.err (!%p2783_p13)
}
  0x3d   : > { %s2787_s27 = scalar_lea.vmem %s3165_s14, 48  ;;  %s2794_s25 = scalar_lea.vmem %s3165_s14, 64 }
  0x3e   : > { %p2788_p0 = scmp.ne.s32.totalorder %s3165_s14, %s2787_s27  ;;  %p2795_p6 = scmp.lt.s32.totalorder %s3165_s14, %s3165_s14 }
  0x3f   : > { %p2796_p8 = scmp.lt.s32.totalorder %s2794_s25, %s2787_s27 }
  0x40   : > { %p2790_p1 = pnand %p2788_p0, %p3185_p7 }
  0x41   : > { %p2797_p9 = por %p2796_p8, %p2795_p6 }
  0x42   : > { %p2791_p4 = pneg %p2790_p1 }
  0x44   : > { %p2798_p10 = pnand %p2797_p9, %p2791_p4 }
  0x46   : > { %2801 = shalt.err (!%p2798_p10)
}
  0x47   : > { %2516 = dma.hbm_to_vmem [thread:$0]  (!%p3169_p5), %s3767_s4, 48, %s3165_s14, [#allocation8]  }
  0x48   : > { %s2802_s30 = scalar_lea.hbm %s3749_s7, 16 }
  0x49   : > { %p2803_p11 = scmp.ne.s32.totalorder %s3749_s7, %s2802_s30  ;;  %p2809_p0 = scmp.lt.u32.totalorder %s2802_s30, %s3749_s7 }
  0x4b   : > { %p2805_p12 = pnand %p2803_p11, %p3185_p7 }
  0x4d   : > { %p2806_p13 = pneg %p2805_p12 }
  0x4f   : > { %p2811_p1 = pnand %p2809_p0, %p2806_p13 }
  0x51   : > { %2814 = shalt.err (!%p2811_p1)
}
  0x52   : > { %s2815_s14 = scalar_lea.vmem %s3173_s16, 16  ;;  %s2822_s25 = scalar_lea.vmem %s3173_s16, 32 }
  0x53   : > { %p2816_p4 = scmp.ne.s32.totalorder %s3173_s16, %s2815_s14  ;;  %p2823_p9 = scmp.lt.s32.totalorder %s3173_s16, %s3173_s16 }
  0x54   : > { %p2824_p10 = scmp.lt.s32.totalorder %s2822_s25, %s2815_s14 }
  0x55   : > { %p2818_p6 = pnand %p2816_p4, %p3185_p7 }
  0x56   : > { %p2825_p11 = por %p2824_p10, %p2823_p9 }
  0x57   : > { %p2819_p8 = pneg %p2818_p6 }
  0x59   : > { %p2826_p12 = pnand %p2825_p11, %p2819_p8 }
  0x5b   : > { %2829 = shalt.err (!%p2826_p12)
}
  0x5c   : > { %2522 = dma.hbm_to_vmem [thread:$0]  (!%p3169_p5), %s3749_s7, 16, %s3173_s16, [#allocation11]  }
  0x5d   : > { %s2830_s30 = scalar_lea.hbm %s3752_s10, 64 }
  0x5e   : > { %p2831_p13 = scmp.ne.s32.totalorder %s3752_s10, %s2830_s30  ;;  %p2837_p4 = scmp.lt.u32.totalorder %s2830_s30, %s3752_s10 }
  0x60   : > { %p2833_p0 = pnand %p2831_p13, %p3185_p7 }
  0x62   : > { %p2834_p1 = pneg %p2833_p0 }
  0x64   : > { %p2839_p6 = pnand %p2837_p4, %p2834_p1 }
  0x66   : > { %2842 = shalt.err (!%p2839_p6)
}
  0x67   : > { %s2843_s16 = scalar_lea.vmem %s3175_s19, 64  ;;  %p2851_p11 = scmp.lt.s32.totalorder %s3175_s19, %s3175_s19 }
  0x68   : > { %p2844_p8 = scmp.ne.s32.totalorder %s3175_s19, %s2843_s16  ;;  %p2852_p12 = scmp.lt.s32.totalorder %s2843_s16, %s2843_s16 }
  0x6a   : > { %p2846_p9 = pnand %p2844_p8, %p3185_p7  ;;  %p2853_p13 = por %p2852_p12, %p2851_p11 }
  0x6c   : > { %p2847_p10 = pneg %p2846_p9 }
  0x6e   : > { %p2854_p0 = pnand %p2853_p13, %p2847_p10 }
  0x70   : > { %2857 = shalt.err (!%p2854_p0)
}
  0x71   : > { %2528 = dma.hbm_to_vmem [thread:$0]  (!%p3169_p5), %s3752_s10, 64, %s3175_s19, [#allocation14]  }
  0x72   : > { %s3062_s21 = smov [#allocation2]   ;;  %s3063_s23 = smov [#allocation6]  }
  0x73   : > { %s351_s22 = sshll.u32 %s3062_s21, 4  ;;  %s372_s24 = sshll.u32 %s3063_s23, 4  ;;  %s352_s22 = int_to_ptr.vmem [resolvable:$true] %s351_s22  ;;  %s373_s24 = int_to_ptr.vmem [resolvable:$true] %s372_s24 }
  0x74   : > { %s3768_s1 = sld [smem:[#allocation25_spill]] }
  0x7a   : > { %s2858_s18 = scalar_lea.hbm %s3768_s1, 16 }
  0x7b   : > { %p2859_p1 = scmp.ne.s32.totalorder %s3768_s1, %s2858_s18  ;;  %p2865_p8 = scmp.lt.u32.totalorder %s2858_s18, %s3768_s1 }
  0x7d   : > { %p2861_p4 = pnand %p2859_p1, %p3185_p7 }
  0x7f   : > { %p2862_p6 = pneg %p2861_p4 }
  0x81   : > { %p2867_p9 = pnand %p2865_p8, %p2862_p6 }
  0x83   : > { %2870 = shalt.err (!%p2867_p9)
}
  0x84   : > { %s2871_s19 = scalar_lea.vmem %s352_s22, 16  ;;  %s2878_s25 = scalar_lea.vmem %s352_s22, 32 }
  0x85   : > { %p2872_p10 = scmp.ne.s32.totalorder %s352_s22, %s2871_s19  ;;  %p2879_p13 = scmp.lt.s32.totalorder %s352_s22, %s352_s22 }
  0x86   : > { %p2880_p0 = scmp.lt.s32.totalorder %s2878_s25, %s2871_s19 }
  0x87   : > { %p2874_p11 = pnand %p2872_p10, %p3185_p7 }
  0x88   : > { %p2881_p2 = por %p2880_p0, %p2879_p13 }
  0x89   : > { %p2875_p12 = pneg %p2874_p11 }
  0x8b   : > { %p2882_p3 = pnand %p2881_p2, %p2875_p12 }
  0x8d   : > { %2885 = shalt.err (!%p2882_p3)
}
  0x8e   : > { %2507 = dma.hbm_to_vmem [thread:$0]  (!%p3169_p5), %s3768_s1, 16, %s352_s22, [#allocation3]  }
  0x8f   : > { %s2886_s18 = scalar_lea.hbm %s3745_s3, 3072 }
  0x90   : > { %p2887_p1 = scmp.ne.s32.totalorder %s3745_s3, %s2886_s18  ;;  %p2893_p3 = scmp.lt.u32.totalorder %s2886_s18, %s3745_s3 }
  0x92   : > { %p2889_p4 = pnand %p2887_p1, %p3185_p7 }
  0x94   : > { %p2890_p2 = pneg %p2889_p4 }
  0x96   : > { %p2895_p6 = pnand %p2893_p3, %p2890_p2 }
  0x98   : > { %2898 = shalt.err (!%p2895_p6)
}
  0x99   : > { %s2899_s19 = scalar_lea.vmem %s373_s24, 3072  ;;  %p2907_p11 = scmp.lt.s32.totalorder %s373_s24, %s373_s24 }
  0x9a   : > { %p2900_p8 = scmp.ne.s32.totalorder %s373_s24, %s2899_s19  ;;  %p2908_p12 = scmp.lt.s32.totalorder %s2899_s19, %s2899_s19 }
  0x9c   : > { %p2902_p9 = pnand %p2900_p8, %p3185_p7  ;;  %p2909_p13 = por %p2908_p12, %p2907_p11 }
  0x9e   : > { %p2903_p10 = pneg %p2902_p9 }
  0xa0   : > { %p2910_p0 = pnand %p2909_p13, %p2903_p10 }
  0xa2   : > { %2913 = shalt.err (!%p2910_p0)
}
  0xa3   : > { %s3064_s22 = smov 192   ;;  %s3065_s25 = smov 12  }
  0xa4   : > { %2513 = dma.hbm_to_vmem [thread:$0]  (!%p3169_p5), %s3745_s3, 3072, %s373_s24, [#allocation5], %s3064_s22, %s3064_s22, %s3065_s25  }
  0xa5   : > { %s3066_s30 = smov [#allocation9]   ;;  %s3067_s18 = smov [#allocation12]  }
  0xa6   : > { %s400_s15 = sshll.u32 %s3066_s30, 4  ;;  %s422_s20 = sshll.u32 %s3067_s18, 4  ;;  %s401_s15 = int_to_ptr.vmem [resolvable:$true] %s400_s15  ;;  %s423_s20 = int_to_ptr.vmem [resolvable:$true] %s422_s20 }
  0xa7   : > { %s2914_s14 = scalar_lea.hbm %s3748_s6, 16 }
  0xa8   : > { %p2915_p1 = scmp.ne.s32.totalorder %s3748_s6, %s2914_s14  ;;  %p2921_p3 = scmp.lt.u32.totalorder %s2914_s14, %s3748_s6 }
  0xaa   : > { %p2917_p4 = pnand %p2915_p1, %p3185_p7 }
  0xac   : > { %p2918_p2 = pneg %p2917_p4 }
  0xae   : > { %p2923_p6 = pnand %p2921_p3, %p2918_p2 }
  0xb0   : > { %2926 = shalt.err (!%p2923_p6)
}
  0xb1   : > { %s2927_s24 = scalar_lea.vmem %s401_s15, 16  ;;  %s2934_s22 = scalar_lea.vmem %s401_s15, 32 }
  0xb2   : > { %p2928_p8 = scmp.ne.s32.totalorder %s401_s15, %s2927_s24  ;;  %p2935_p11 = scmp.lt.s32.totalorder %s401_s15, %s401_s15 }
  0xb3   : > { %p2936_p12 = scmp.lt.s32.totalorder %s2934_s22, %s2927_s24 }
  0xb4   : > { %p2930_p9 = pnand %p2928_p8, %p3185_p7 }
  0xb5   : > { %p2937_p13 = por %p2936_p12, %p2935_p11 }
  0xb6   : > { %p2931_p10 = pneg %p2930_p9 }
  0xb8   : > { %p2938_p0 = pnand %p2937_p13, %p2931_p10 }
  0xba   : > { %2941 = shalt.err (!%p2938_p0)
}
  0xbb   : > { %2519 = dma.hbm_to_vmem [thread:$0]  (!%p3169_p5), %s3748_s6, 16, %s401_s15, [#allocation8]  }
  0xbc   : > { %s2942_s21 = scalar_lea.hbm %s3750_s8, 16 }
  0xbd   : > { %p2943_p1 = scmp.ne.s32.totalorder %s3750_s8, %s2942_s21  ;;  %p2949_p3 = scmp.lt.u32.totalorder %s2942_s21, %s3750_s8 }
  0xbf   : > { %p2945_p4 = pnand %p2943_p1, %p3185_p7 }
  0xc1   : > { %p2946_p2 = pneg %p2945_p4 }
  0xc3   : > { %p2951_p6 = pnand %p2949_p3, %p2946_p2 }
  0xc5   : > { %2954 = shalt.err (!%p2951_p6)
}
  0xc6   : > { %s2955_s16 = scalar_lea.vmem %s423_s20, 16  ;;  %s2962_s15 = scalar_lea.vmem %s423_s20, 32 }
  0xc7   : > { %p2956_p8 = scmp.ne.s32.totalorder %s423_s20, %s2955_s16  ;;  %p2963_p11 = scmp.lt.s32.totalorder %s423_s20, %s423_s20 }
  0xc8   : > { %p2964_p12 = scmp.lt.s32.totalorder %s2962_s15, %s2955_s16 }
  0xc9   : > { %p2958_p9 = pnand %p2956_p8, %p3185_p7 }
  0xca   : > { %p2965_p13 = por %p2964_p12, %p2963_p11 }
  0xcb   : > { %p2959_p10 = pneg %p2958_p9 }
  0xcd   : > { %p2966_p0 = pnand %p2965_p13, %p2959_p10 }
  0xcf   : > { %2969 = shalt.err (!%p2966_p0)
}
  0xd0   : > { %2525 = dma.hbm_to_vmem [thread:$0]  (!%p3169_p5), %s3750_s8, 16, %s423_s20, [#allocation11]  }
  0xd1   : > { %s3068_s24 = smov [#allocation15]   ;;  %s2970_s2 = scalar_lea.hbm %s3753_s11, 4096 }
  0xd2   : > { %s446_s22 = sshll.u32 %s3068_s24, 4  ;;  %p2971_p1 = scmp.ne.s32.totalorder %s3753_s11, %s2970_s2  ;;  %s447_s22 = int_to_ptr.vmem [resolvable:$true] %s446_s22 }
  0xd3   : > { %p2977_p3 = scmp.lt.u32.totalorder %s2970_s2, %s3753_s11 }
  0xd4   : > { %p2973_p4 = pnand %p2971_p1, %p3185_p7 }
  0xd6   : > { %p2974_p2 = pneg %p2973_p4 }
  0xd8   : > { %p2979_p6 = pnand %p2977_p3, %p2974_p2 }
  0xda   : > { %2982 = shalt.err (!%p2979_p6)
}
  0xdb   : > { %s2983_s20 = scalar_lea.vmem %s447_s22, 4096  ;;  %p2991_p11 = scmp.lt.s32.totalorder %s447_s22, %s447_s22 }
  0xdc   : > { %p2984_p8 = scmp.ne.s32.totalorder %s447_s22, %s2983_s20  ;;  %p2992_p12 = scmp.lt.s32.totalorder %s2983_s20, %s2983_s20 }
  0xde   : > { %p2986_p9 = pnand %p2984_p8, %p3185_p7  ;;  %p2993_p13 = por %p2992_p12, %p2991_p11 }
  0xe0   : > { %p2987_p10 = pneg %p2986_p9 }
  0xe2   : > { %p2994_p0 = pnand %p2993_p13, %p2987_p10 }
  0xe4   : > { %2997 = shalt.err (!%p2994_p0)
}
  0xe5   : > { %s3069_s18 = smov 64   ;;  %s3070_s27 = smov 4  }
  0xe6   : > { %2531 = dma.hbm_to_vmem [thread:$0]  (!%p3169_p5), %s3753_s11, 4096, %s447_s22, [#allocation14], %s3069_s18, %s3069_s18, %s3070_s27  }
  0xe7   : > { %s3071_s14 = smov [#allocation16]   ;;  %s2998_s25 = scalar_lea.hbm %s3754_s12, 16 }
  0xe8   : > { %s460_s19 = sshll.u32 %s3071_s14, 4  ;;  %p2999_p1 = scmp.ne.s32.totalorder %s3754_s12, %s2998_s25  ;;  %s461_s19 = int_to_ptr.vmem [resolvable:$true] %s460_s19 }
  0xe9   : > { %p3005_p3 = scmp.lt.u32.totalorder %s2998_s25, %s3754_s12 }
  0xea   : > { %p3001_p4 = pnand %p2999_p1, %p3185_p7 }
  0xec   : > { %p3002_p2 = pneg %p3001_p4 }
  0xee   : > { %p3007_p6 = pnand %p3005_p3, %p3002_p2 }
  0xf0   : > { %3010 = shalt.err (!%p3007_p6)
}
  0xf1   : > { %s3011_s22 = scalar_lea.vmem %s461_s19, 16  ;;  %s3018_s30 = scalar_lea.vmem %s461_s19, 32 }
  0xf2   : > { %p3012_p8 = scmp.ne.s32.totalorder %s461_s19, %s3011_s22  ;;  %p3019_p11 = scmp.lt.s32.totalorder %s461_s19, %s461_s19 }
  0xf3   : > { %p3020_p12 = scmp.lt.s32.totalorder %s3018_s30, %s3011_s22 }
  0xf4   : > { %p3014_p9 = pnand %p3012_p8, %p3185_p7 }
  0xf5   : > { %p3021_p13 = por %p3020_p12, %p3019_p11 }
  0xf6   : > { %p3015_p10 = pneg %p3014_p9 }
  0xf8   : > { %p3022_p0 = pnand %p3021_p13, %p3015_p10 }
  0xfa   : > { %3025 = shalt.err (!%p3022_p0)
}
  0xfb   : > { %2534 = dma.hbm_to_vmem [thread:$0]  (!%p3169_p5), %s3754_s12, 16, %s461_s19, [#allocation17]  }
  0xfc   : > { %p3769_p1 = scmp.ne.s32.totalorder %s3763_s29, 0 }
  0xfd   : > { %p3770_p4 = scmp.eq.s32.totalorder (!%p3769_p1), %s3152_s28, 0 }
  0xfe   : > { %481 = sbr.rel (%p3769_p1) target bundleno = 3246 (0xcae), region = 72 }
 0x105   : > { %3031 = dma.done.wait (%p3770_p4), [#allocation3], 16   ;;  %p3771_p7 = pmov %p3770_p4 }
 0x106   : > { %p3772_p2 = pmov %p3770_p4 }
 0x107   : > { %3033 = vsyncadd (%p3771_p7), [#allocation3], 4294967280 }
 0x108   : > { %3035 = dma.done.wait (%p3772_p2), [#allocation5], 3088   ;;  %p3773_p3 = pmov %p3772_p2 }
 0x109   : > { %p3774_p6 = pmov %p3772_p2 }
 0x10a   : > { %3037 = vsyncadd (%p3773_p3), [#allocation5], 4294964208 }
 0x10b   : > { %3039 = dma.done.wait (%p3774_p6), [#allocation8], 64   ;;  %p3775_p5 = pmov %p3772_p2 }
 0x10c   : > { %p3776_p8 = pmov %p3772_p2 }
 0x10d   : > { %3041 = vsyncadd (%p3775_p5), [#allocation8], 4294967232 }
 0x10e   : > { %3043 = dma.done.wait (%p3776_p8), [#allocation11], 32   ;;  %p3777_p9 = pmov %p3772_p2 }
 0x10f   : > { %p3778_p10 = pmov %p3772_p2 }
 0x110   : > { %3045 = vsyncadd (%p3777_p9), [#allocation11], 4294967264 }
 0x111   : > { %3047 = dma.done.wait (%p3778_p10), [#allocation14], 4160   ;;  %p3779_p11 = pmov %p3772_p2 }
 0x112   : > { %p3780_p12 = pmov %p3772_p2 }
 0x113   : > { %3049 = vsyncadd (%p3779_p11), [#allocation14], 4294963136 }
 0x114   : > { %3051 = dma.done.wait (%p3780_p12), [#allocation17], 16   ;;  %p3781_p13 = pmov %p3772_p2 }
 0x115   : > { %p561_p0 = scmp.lt.s32.totalorder %s3152_s28, 1  ;;  %vm578_vm0 = vcmask 1043456   ;;  %v2586_v3 = vld [vmem:[#allocation6 + $0x4] ss:$12 sps:$4 sm:$0xff]   ;;  %v2588_v4 = vld [vmem:[#allocation6] ss:$12 sps:$4 sm:$0xff]   ;;  %v653_v55 = vlaneseq }
 0x116   : > { %3053 = vsyncadd (%p3781_p13), [#allocation17], 4294967280  ;;  %v3072_v5 = vmov 0.0   ;;  %v2589_v6 = vld [vmem:[#allocation6 + $0x8] ss:$12 sps:$4 sm:$0xff]   ;;  %796 = vmatprep.subr.bf16.mxu0 %v2586_v3  ;;  %v3073_v32 = vmov 0  }
 0x117   : > { %s3784_s28 = smov (!%p561_p0, %s3152_s28), 1  ;;  %2400 = vmatprep.subr.bf16.mxu1 %v3072_v5  ;;  %v2590_v7 = vld [vmem:[#allocation6 + $0x1c] ss:$12 sps:$4 sm:$0xff]   ;;  %797 = vmatpush1.bf16.msra.mxu0 %v2588_v4  ;;  %v2592_v17 = vld [vmem:[#allocation6 + $0x18] ss:$12 sps:$4 sm:$0xff]   ;;  %vm3074_vm1 = vmmov 0  }
 0x118   : > { %s2328_s29 = sshll.u32 %s3784_s28, 4  ;;  %2401 = vmatpush3.bf16.msra.mxu1 %v2589_v6  ;;  %798 = vmatprep.subr.bf16.mxu0 %v2590_v7  ;;  %v2593_v18 = vld [vmem:[#allocation6 + $0x20] ss:$12 sps:$4 sm:$0xff]   ;;  %v2596_v20 = vld [vmem:[#allocation6 + $0x30] ss:$12 sps:$4 sm:$0xff]   ;;  %v3459_v56 = vshrl.u32 %v653_v55, 7 }
 0x119   : > { %s565_s27 = scalar_lea.vmem %s3742_s0, %s2328_s29  ;;  %2402 = vmatprep.subr.bf16.mxu1 %v3072_v5  ;;  %v2594_v19 = vld [vmem:[#allocation6 + $0x34] ss:$12 sps:$4 sm:$0xff]   ;;  %v2597_v21 = vld [vmem:[#allocation6 + $0x38] ss:$12 sps:$4 sm:$0xff]   ;;  %v2601_v24 = vld [vmem:[#allocation6 + $0x50] ss:$12 sps:$4 sm:$0xff]   ;;  %828 = vmatprep.mubr.bf16.mxu0 %v3073_v32  ;;  %s570_s22 = scalar_lea.vmem %s3755_s13, %s2328_s29 }
 0x11a   : > { %v3422_v0 = vld [vmem:[%s565_s27 + $0x8] sm:$0xf]  ;;  %v3426_v2 = vld [vmem:[%s565_s27] sm:$0xff]  ;;  %v2598_v22 = vld [vmem:[#allocation6 + $0x4c] ss:$12 sps:$4 sm:$0xff]   ;;  %2416 = vmatprep.mubr.msk.bf16.mxu1 %vm3074_vm1, %v3072_v5  ;;  %v655_v57 = vsub.s32 0, %v3459_v56 }
 0x11b   : > { %v579_v1 = vsel %vm578_vm0, %v3422_v0, 0.0  ;;  %799 = vmatpush1.bf16.msra.mxu0 %v2592_v17  ;;  %v2600_v23 = vld [vmem:[#allocation6 + $0x48] ss:$12 sps:$4 sm:$0xff]   ;;  %v2602_v25 = vld [vmem:[#allocation6 + $0x64] ss:$12 sps:$4 sm:$0xff]   ;;  %v663_v58 = vsub.s32 2, %v3459_v56 }
 0x11c   : > { %580 = vadd.xlane.f32.xlu0 %v579_v1  ;;  %2403 = vmatpush3.bf16.msra.mxu1 %v2593_v18  ;;  %v2604_v26 = vld [vmem:[#allocation6 + $0x60] ss:$12 sps:$4 sm:$0xff]   ;;  %v2605_v27 = vld [vmem:[#allocation6 + $0x68] ss:$12 sps:$4 sm:$0xff]   ;;  %v2608_v29 = vld [vmem:[#allocation6 + $0x78] ss:$12 sps:$4 sm:$0xff]  }
 0x11d   : > { %2404 = vmatprep.subr.bf16.mxu1 %v3072_v5  ;;  %800 = vmatprep.subr.bf16.mxu0 %v2594_v19  ;;  %v2606_v28 = vld [vmem:[#allocation6 + $0x7c] ss:$12 sps:$4 sm:$0xff]   ;;  %v2609_v30 = vld [vmem:[#allocation6 + $0x80] ss:$12 sps:$4 sm:$0xff]   ;;  %v2613_v34 = vld [vmem:[#allocation6 + $0x98] ss:$12 sps:$4 sm:$0xff]  }
 0x11e   : > { %v2610_v31 = vld [vmem:[#allocation6 + $0x94] ss:$12 sps:$4 sm:$0xff]   ;;  %v2612_v33 = vld [vmem:[#allocation6 + $0x90] ss:$12 sps:$4 sm:$0xff]   ;;  %v2614_v35 = vld [vmem:[#allocation6 + $0xac] ss:$12 sps:$4 sm:$0xff]  }
 0x11f   : > { %801 = vmatpush1.bf16.msra.mxu0 %v2596_v20  ;;  %v2616_v36 = vld [vmem:[#allocation6 + $0xa8] ss:$12 sps:$4 sm:$0xff]   ;;  %v2617_v37 = vld [vmem:[#allocation6 + $0xb0] ss:$12 sps:$4 sm:$0xff]   ;;  %v651_v59 = vld [vmem:[#allocation7] sm:$0x7] }
 0x120   : > { %576 = vadd.xlane.f32.xlu0 %v3426_v2  ;;  %2405 = vmatpush3.bf16.msra.mxu1 %v2597_v21  ;;  %v2220_v46 = vld [vmem:[#allocation2] ss:$0 sm:$0xff]  ;;  %v2221_v50 = vld [vmem:[#allocation4] ss:$0 sm:$0xff]  ;;  %v659_v60 = vsub.s32 1, %v3459_v56  ;;  %v656_v61 = vrot.slane %v651_v59, %v655_v57  ;;  %v664_v62 = vrot.slane %v651_v59, %v663_v58  ;;  %vm887_vm2 = vcmask 523264  }
 0x121   : > { %2406 = vmatprep.subr.bf16.mxu1 %v3072_v5  ;;  %802 = vmatprep.subr.bf16.mxu0 %v2598_v22  ;;  %vm970_vm3 = vcmask 1045504   ;;  %v3480_v22 = vand.u32 127, %v653_v55  ;;  %vm941_vm5 = vcmask 97280   ;;  %vm945_vm7 = vcmask 93184   ;;  %s3075_s16 = smov 64  }
 0x122   : > { %v660_v3 = vrot.slane %v651_v59, %v659_v60 }
 0x123   : > { %803 = vmatpush1.bf16.msra.mxu0 %v2600_v23  ;;  %v3483_v23 = vadd.s32 8, %v3459_v56  ;;  %vm937_vm4 = vcmp.le.s32.totalorder %v3480_v22, %v3459_v56 }
 0x124   : > { %2407 = vmatpush3.bf16.msra.mxu1 %v2601_v24  ;;  %804 = vmatprep.subr.bf16.mxu0 %v2602_v25 }
 0x125   : > { %2408 = vmatprep.subr.bf16.mxu1 %v3072_v5  ;;  %vm938_vm6 = vcmp.le.s32.totalorder %v3480_v22, %v3483_v23 }
 0x127   : > { %805 = vmatpush1.bf16.msra.mxu0 %v2604_v26 }
 0x128   : > { %2409 = vmatpush3.bf16.msra.mxu1 %v2605_v27  ;;  %806 = vmatprep.subr.bf16.mxu0 %v2606_v28 }
 0x129   : > { %2410 = vmatprep.subr.bf16.mxu1 %v3072_v5 }
 0x12b   : > { %807 = vmatpush1.bf16.msra.mxu0 %v2608_v29 }
 0x12c   : > { %2411 = vmatpush3.bf16.msra.mxu1 %v2609_v30  ;;  %808 = vmatprep.subr.bf16.mxu0 %v2610_v31 }
 0x12d   : > { %2412 = vmatprep.subr.bf16.mxu1 %v3072_v5 }
 0x12f   : > { %809 = vmatpush1.bf16.msra.mxu0 %v2612_v33 }
 0x130   : > { %2413 = vmatpush3.bf16.msra.mxu1 %v2613_v34  ;;  %810 = vmatprep.subr.bf16.mxu0 %v2614_v35 }
 0x131   : > { %2414 = vmatprep.subr.bf16.mxu1 %v3072_v5 }
 0x133   : > { %811 = vmatpush1.bf16.msra.mxu0 %v2616_v36 }
 0x134   : > { %2415 = vmatpush3.bf16.msra.mxu1 %v2617_v37  ;;  %2444 = vmatprep.subr.bf16.mxu0 %v3072_v5 }
 0x135   : > { %2420 = vmatprep.subr.bf16.mxu1 %v3072_v5 }
 0x1a9   : > { %v581_v8 = vpop.xlane.xlu0 %580 }
 0x1aa   : > { %v584_v9 = vmul.f32 0.0078125, %v581_v8 }
 0x1ac   : > { %v3432_v12 = vsub.f32 %v3422_v0, %v584_v9 }
 0x1ad   : > { %v577_v10 = vpop.xlane.xlu0 %576 }
 0x1ae   : > { %v583_v11 = vmul.f32 0.0078125, %v577_v10  ;;  %v588_v15 = vmul.f32 %v3432_v12, %v3432_v12 }
 0x1b0   : > { %v3435_v13 = vsub.f32 %v3426_v2, %v583_v11  ;;  %v591_v16 = vsel %vm578_vm0, %v588_v15, 0.0 }
 0x1b2   : > { %v587_v14 = vmul.f32 %v3435_v13, %v3435_v13 }
 0x1b4   : > { %589 = vadd.xlane.f32.xlu1 %v587_v14 }
 0x1b8   : > { %592 = vadd.xlane.f32.xlu1 %v591_v16 }
 0x241   : > { %v590_v38 = vpop.xlane.xlu1 %589 }
 0x242   : > { %v594_v39 = vmul.f32 0.0078125, %v590_v38 }
 0x244   : > { %v596_v40 = vadd.f32 1e-05, %v594_v39 }
 0x245   : > { %v593_v41 = vpop.xlane.xlu1 %592 }
 0x246   : > { %2706 = vrsqrt.f32 %v596_v40  ;;  %v595_v42 = vmul.f32 0.0078125, %v593_v41 }
 0x248   : > { %v597_v43 = vadd.f32 1e-05, %v595_v42 }
 0x24a   : > { %2708 = vrsqrt.f32 %v597_v43 }
 0x250   : > { %v2707_v44 = vpop.eup %2706 }
 0x251   : > { %v600_v45 = vmul.f32 %v2707_v44, %v3435_v13 }
 0x253   : > { %v608_v49 = vmul.f32 %v2220_v46, %v600_v45 }
 0x254   : > { %v2709_v47 = vpop.eup %2708 }
 0x255   : > { %v601_v48 = vmul.f32 %v2709_v47, %v3432_v12  ;;  %v616_v52 = vadd.f32 %v2221_v50, %v608_v49 }
 0x257   : > { %v609_v51 = vmul.f32 %v2220_v46, %v601_v48 }
 0x259   : > { %v617_v53 = vadd.f32 %v2221_v50, %v609_v51 }
 0x25b   : > { %v618_v54 = vpack.c.bf16 %v617_v53, %v616_v52 }
 0x25d   : > { %829 = vmatmul.mubr.bf16.vlgmr.msra.gmra.mrb[0].mxu0 %v618_v54  ;;  %2417 = vmatmul.mubr.bf16.vlgmr.msra.gmra.mrb[0].mxu1 %v618_v54 }
 0x25e   : > { %2422 = vmatprep.mubr.msk.bf16.mxu1 %vm3074_vm1, %v3072_v5  ;;  %2460 = vmatprep.mubr.msk.bf16.mxu0 %vm3074_vm1, %v3072_v5 }
 0x330   : > { %v830_v63 = vpop.f32.mrb[0].mxu0  ;;  %v873_v1 = vpop.f32.mrb[0].mxu1 }
 0x331   : > { %v832_v4 = vpop.f32.mrb[1].mxu0  ;;  %v2418_v6 = vpop.f32.mrb[1].mxu1  ;;  %v831_v9 = vadd.f32 %v830_v63, %v656_v61  ;;  %v874_v10 = vadd.f32 %v873_v1, %v664_v62 }
 0x332   : > { %v834_v7 = vpop.f32.mrb[2].mxu0  ;;  %v876_v8 = vpop.f32.mrb[2].mxu1  ;;  %v833_v15 = vadd.f32 %v832_v4, %v660_v3 }
 0x333   : > { %v835_v11 = vadd.f32 %v834_v7, %v656_v61  ;;  %v877_v12 = vadd.f32 %v876_v8, %v664_v62  ;;  %v836_v13 = vpop.f32.mrb[3].mxu0  ;;  %v2419_v14 = vpop.f32.mrb[3].mxu1 }
 0x334   : > { %v837_v16 = vadd.f32 %v836_v13, %v660_v3 }
 0x335   : > { %v885_v17 = vpack.c.bf16 %v835_v11, %v831_v9  ;;  %v3470_v18 = vpack.c.bf16 %v877_v12, %v874_v10 }
 0x336   : > { %v886_v19 = vpack.c.bf16 %v837_v16, %v833_v15 }
 0x337   : > { %v972_v21 = vsel %vm970_vm3, %v3470_v18, 0 }
 0x338   : > { %v892_v20 = vsel %vm887_vm2, %v886_v19, 0 }
 0x339   : > { %2421 = vmatpush3.bf16.xpose.msra.mxu1 %v892_v20 }
 0x33a   : > { %2426 = vmatprep.subr.bf16.mxu1 %v3072_v5 }
 0x340   : > { %2423 = vmatmul.mubr.msk.bf16.vlgmr.msra.gmra.mrb[4].mxu1 %vm887_vm2, %v885_v17 }
 0x341   : > { %2427 = vmatpush3.bf16.msra.mxu1 %v972_v21  ;;  %2428 = vmatprep.mubr.msk.bf16.mxu1 %vm3074_vm1, %v3072_v5 }
 0x342   : > { %2432 = vmatprep.subr.bf16.mxu1 %v3072_v5 }
 0x413   : > { %v928_v24 = vpop.f32.mrb[4].mxu1 }
 0x414   : > { %v935_v25 = vmul.f32 0.125, %v928_v24  ;;  %v2424_v26 = vpop.f32.mrb[5].mxu1 }
 0x415   : > { %v931_v27 = vpop.f32.mrb[6].mxu1 }
 0x416   : > { %v936_v28 = vmul.f32 0.125, %v931_v27  ;;  %v2425_v29 = vpop.f32.mrb[7].mxu1  ;;  %v939_v30 = vsel %vm937_vm4, %v935_v25, -1e+09 }
 0x417   : > { %v942_v31 = vsel %vm941_vm5, %v939_v30, -inf }
 0x418   : > { %943 = vmax.xlane.f32.xlu0 %v942_v31  ;;  %v940_v33 = vsel %vm938_vm6, %v936_v28, -1e+09 }
 0x419   : > { %v946_v34 = vsel %vm945_vm7, %v940_v33, -inf }
 0x41a   : > { %947 = vmax.xlane.f32.xlu1 %v946_v34  ;;  %v2620_v34 = vld [vmem:[%s3747_s5 + $0x10] sm:$0xff]  }
 0x4a5   : > { %v944_v35 = vpop.xlane.xlu0 %943 }
 0x4a6   : > { %v949_v36 = vsub.f32 %v939_v30, %v944_v35  ;;  %v2621_v35 = vld [vmem:[%s3747_s5 + $0x18] sm:$0xff]  }
 0x4a7   : > { %v948_v37 = vpop.xlane.xlu1 %947 }
 0x4a8   : > { %v951_v38 = vmul.f32 1.442695, %v949_v36  ;;  %v950_v39 = vsub.f32 %v940_v33, %v948_v37  ;;  %v2619_v33 = vld [vmem:[%s3747_s5 + $0x8] sm:$0xff]   ;;  %v2622_v36 = vld [vmem:[%s3747_s5 + $0x20] sm:$0xff]  }
 0x4a9   : > { %v2623_v37 = vld [vmem:[%s3747_s5 + $0x28] sm:$0xff]  }
 0x4aa   : > { %2710 = vpow2.f32 %v951_v38  ;;  %v953_v40 = vmul.f32 1.442695, %v950_v39  ;;  %v2624_v38 = vld [vmem:[%s3747_s5 + $0x30] sm:$0xff]   ;;  %v2625_v39 = vld [vmem:[%s3747_s5 + $0x38] sm:$0xff]  }
 0x4ac   : > { %2712 = vpow2.f32 %v953_v40 }
 0x4b4   : > { %v2711_v41 = vpop.eup %2710 }
 0x4b5   : > { %v955_v42 = vsel %vm941_vm5, %v2711_v41, 0.0 }
 0x4b6   : > { %v2713_v43 = vpop.eup %2712  ;;  %956 = vadd.xlane.f32.xlu0 %v955_v42 }
 0x4b7   : > { %v958_v44 = vsel %vm945_vm7, %v2713_v43, 0.0 }
 0x4b8   : > { %959 = vadd.xlane.f32.xlu1 %v958_v44 }
 0x4c9   : > { %1016 = vrot.lane.b32.xlu1 %v885_v17, %s3075_s16 }
 0x4cc   : > { %1019 = vrot.lane.b32.xlu0 %v886_v19, %s3075_s16 }
 0x543   : > { %v957_v45 = vpop.xlane.xlu0 %956 }
 0x544   : > { %2714 = vrcp.f32 %v957_v45 }
 0x545   : > { %v960_v46 = vpop.xlane.xlu1 %959 }
 0x546   : > { %2716 = vrcp.f32 %v960_v46 }
 0x547   : > { %v1020_v51 = vpop.permute.xlu0 %1019 }
 0x548   : > { %v1025_v53 = vsel %vm887_vm2, %v1020_v51, 0 }
 0x549   : > { %v1017_v54 = vpop.permute.xlu1 %1016 }
 0x54e   : > { %v2715_v47 = vpop.eup %2714 }
 0x54f   : > { %v963_v49 = vmul.f32 %v2715_v47, %v2711_v41 }
 0x550   : > { %v2717_v48 = vpop.eup %2716 }
 0x551   : > { %v964_v50 = vmul.f32 %v2717_v48, %v2713_v43 }
 0x553   : > { %v965_v52 = vpack.c.bf16 %v964_v50, %v963_v49  ;;  %v2250_v50 = vld [vmem:[#allocation9] ss:$0 sm:$0xff] }
 0x555   : > { %2429 = vmatmul.mubr.msk.bf16.vlgmr.msra.gmra.mrb[8].mxu1 %vm941_vm5, %v965_v52 }
 0x556   : > { %2433 = vmatpush3.bf16.xpose.msra.mxu1 %v1025_v53  ;;  %2434 = vmatprep.mubr.msk.bf16.mxu1 %vm3074_vm1, %v3072_v5 }
 0x557   : > { %2438 = vmatprep.subr.bf16.mxu1 %v3072_v5 }
 0x55d   : > { %2435 = vmatmul.mubr.msk.bf16.vlgmr.msra.gmra.mrb[12].mxu1 %vm887_vm2, %v1017_v54 }
 0x55e   : > { %2440 = vmatprep.mubr.msk.bf16.mxu1 %vm3074_vm1, %v3072_v5 }
 0x628   : > { %v3509_v55 = vpop.f32.mrb[8].mxu1 }
 0x629   : > { %v2430_v59 = vpop.f32.mrb[9].mxu1 }
 0x62a   : > { %v3511_v61 = vpop.f32.mrb[10].mxu1 }
 0x62b   : > { %v2431_v62 = vpop.f32.mrb[11].mxu1 }
 0x630   : > { %v1061_v63 = vpop.f32.mrb[12].mxu1 }
 0x631   : > { %v1068_v1 = vmul.f32 0.125, %v1061_v63  ;;  %v2436_v3 = vpop.f32.mrb[13].mxu1 }
 0x632   : > { %v1064_v4 = vpop.f32.mrb[14].mxu1  ;;  %v2634_v3 = vld [vmem:[%s3751_s9 + $0x24] ss:$16 sps:$4 sm:$0xff]  }
 0x633   : > { %v1069_v6 = vmul.f32 0.125, %v1064_v4  ;;  %v2437_v7 = vpop.f32.mrb[15].mxu1  ;;  %v1070_v8 = vsel %vm937_vm4, %v1068_v1, -1e+09  ;;  %v2637_v4 = vld [vmem:[%s3751_s9 + $0x2c] ss:$16 sps:$4 sm:$0xff]  }
 0x634   : > { %v1072_v9 = vsel %vm941_vm5, %v1070_v8, -inf  ;;  %v2635_v7 = vld [vmem:[%s3751_s9 + $0x28] ss:$16 sps:$4 sm:$0xff]  }
 0x635   : > { %1073 = vmax.xlane.f32.xlu1 %v1072_v9  ;;  %v1071_v10 = vsel %vm938_vm6, %v1069_v6, -1e+09  ;;  %v2632_v6 = vld [vmem:[%s3751_s9 + $0x20] ss:$16 sps:$4 sm:$0xff]  }
 0x636   : > { %v1075_v11 = vsel %vm945_vm7, %v1071_v10, -inf }
 0x637   : > { %1076 = vmax.xlane.f32.xlu0 %v1075_v11 }
 0x6c2   : > { %v1074_v12 = vpop.xlane.xlu1 %1073 }
 0x6c3   : > { %v1078_v13 = vsub.f32 %v1070_v8, %v1074_v12 }
 0x6c4   : > { %v1077_v14 = vpop.xlane.xlu0 %1076 }
 0x6c5   : > { %v1080_v15 = vmul.f32 1.442695, %v1078_v13  ;;  %v1079_v16 = vsub.f32 %v1071_v10, %v1077_v14 }
 0x6c7   : > { %2718 = vpow2.f32 %v1080_v15  ;;  %v1082_v17 = vmul.f32 1.442695, %v1079_v16 }
 0x6c9   : > { %2720 = vpow2.f32 %v1082_v17  ;;  %v2640_v17 = vld [vmem:[%s3751_s9 + $0x44] ss:$16 sps:$4 sm:$0xff]  }
 0x6d1   : > { %v2719_v19 = vpop.eup %2718 }
 0x6d2   : > { %v1084_v20 = vsel %vm941_vm5, %v2719_v19, 0.0 }
 0x6d3   : > { %v2721_v21 = vpop.eup %2720  ;;  %1085 = vadd.xlane.f32.xlu0 %v1084_v20  ;;  %v2638_v20 = vld [vmem:[%s3751_s9 + $0x40] ss:$16 sps:$4 sm:$0xff]  }
 0x6d4   : > { %v1087_v24 = vsel %vm945_vm7, %v2721_v21, 0.0 }
 0x6d5   : > { %1088 = vadd.xlane.f32.xlu1 %v1087_v24  ;;  %v2646_v24 = vld [vmem:[%s3751_s9 + $0x64] ss:$16 sps:$4 sm:$0xff]  }
 0x6e9   : > { %1096 = vrot.lane.b32.xlu0 %v3470_v18, %s3075_s16  ;;  %v2618_v18 = vld [vmem:[%s3747_s5] sm:$0xff]  }
 0x6ea   : > { %2445 = vmatpush3.bf16.msra.mxu0 %v2618_v18  ;;  %v2656_v18 = vld [vmem:[%s3751_s9 + $0xa0] ss:$16 sps:$4 sm:$0xff]  }
 0x6eb   : > { %2446 = vmatprep.subr.bf16.mxu0 %v3072_v5 }
 0x6ee   : > { %2447 = vmatpush3.bf16.msra.mxu0 %v2619_v33  ;;  %v2659_v33 = vld [vmem:[%s3751_s9 + $0xa8] ss:$16 sps:$4 sm:$0xff]  }
 0x6ef   : > { %2448 = vmatprep.subr.bf16.mxu0 %v3072_v5 }
 0x6f2   : > { %2449 = vmatpush3.bf16.msra.mxu0 %v2620_v34  ;;  %v2664_v34 = vld [vmem:[%s3751_s9 + $0xc4] ss:$16 sps:$4 sm:$0xff]  }
 0x6f3   : > { %2450 = vmatprep.subr.bf16.mxu0 %v3072_v5 }
 0x6f6   : > { %2451 = vmatpush3.bf16.msra.mxu0 %v2621_v35  ;;  %v2667_v35 = vld [vmem:[%s3751_s9 + $0xcc] ss:$16 sps:$4 sm:$0xff]  }
 0x6f7   : > { %2452 = vmatprep.subr.bf16.mxu0 %v3072_v5 }
 0x6fa   : > { %2453 = vmatpush3.bf16.msra.mxu0 %v2622_v36  ;;  %v2662_v36 = vld [vmem:[%s3751_s9 + $0xc0] ss:$16 sps:$4 sm:$0xff]  }
 0x6fb   : > { %2454 = vmatprep.subr.bf16.mxu0 %v3072_v5 }
 0x6fe   : > { %2455 = vmatpush3.bf16.msra.mxu0 %v2623_v37  ;;  %v2665_v37 = vld [vmem:[%s3751_s9 + $0xc8] ss:$16 sps:$4 sm:$0xff]  }
 0x6ff   : > { %2456 = vmatprep.subr.bf16.mxu0 %v3072_v5 }
 0x702   : > { %2457 = vmatpush3.bf16.msra.mxu0 %v2624_v38  ;;  %v2670_v38 = vld [vmem:[%s3751_s9 + $0xe4] ss:$16 sps:$4 sm:$0xff]  }
 0x703   : > { %2458 = vmatprep.subr.bf16.mxu0 %v3072_v5 }
 0x706   : > { %2459 = vmatpush3.bf16.msra.mxu0 %v2625_v39  ;;  %v2673_v39 = vld [vmem:[%s3751_s9 + $0xec] ss:$16 sps:$4 sm:$0xff]  }
 0x760   : > { %v1086_v22 = vpop.xlane.xlu0 %1085 }
 0x761   : > { %2722 = vrcp.f32 %v1086_v22  ;;  %v2649_v22 = vld [vmem:[%s3751_s9 + $0x6c] ss:$16 sps:$4 sm:$0xff]  }
 0x762   : > { %v1089_v23 = vpop.xlane.xlu1 %1088 }
 0x763   : > { %2724 = vrcp.f32 %v1089_v23  ;;  %v2644_v23 = vld [vmem:[%s3751_s9 + $0x60] ss:$16 sps:$4 sm:$0xff]  }
 0x764   : > { %v1097_v25 = vpop.permute.xlu0 %1096 }
 0x765   : > { %v1102_v26 = vsel %vm970_vm3, %v1097_v25, 0  ;;  %v2647_v25 = vld [vmem:[%s3751_s9 + $0x68] ss:$16 sps:$4 sm:$0xff]  }
 0x766   : > { %2439 = vmatpush3.bf16.msra.mxu1 %v1102_v26  ;;  %v2652_v26 = vld [vmem:[%s3751_s9 + $0x84] ss:$16 sps:$4 sm:$0xff]  }
 0x76b   : > { %v2723_v27 = vpop.eup %2722 }
 0x76c   : > { %v1092_v29 = vmul.f32 %v2723_v27, %v2719_v19  ;;  %v2643_v19 = vld [vmem:[%s3751_s9 + $0x4c] ss:$16 sps:$4 sm:$0xff]  }
 0x76d   : > { %v2725_v28 = vpop.eup %2724  ;;  %v2655_v27 = vld [vmem:[%s3751_s9 + $0x8c] ss:$16 sps:$4 sm:$0xff]  }
 0x76e   : > { %v1093_v30 = vmul.f32 %v2725_v28, %v2721_v21  ;;  %v2641_v21 = vld [vmem:[%s3751_s9 + $0x48] ss:$16 sps:$4 sm:$0xff]   ;;  %v2650_v28 = vld [vmem:[%s3751_s9 + $0x80] ss:$16 sps:$4 sm:$0xff]  }
 0x770   : > { %v1094_v31 = vpack.c.bf16 %v1093_v30, %v1092_v29  ;;  %v2653_v29 = vld [vmem:[%s3751_s9 + $0x88] ss:$16 sps:$4 sm:$0xff]   ;;  %v2658_v30 = vld [vmem:[%s3751_s9 + $0xa4] ss:$16 sps:$4 sm:$0xff]  }
 0x772   : > { %2441 = vmatmul.mubr.msk.bf16.vlgmr.msra.gmra.mrb[16].mxu1 %vm941_vm5, %v1094_v31  ;;  %v2661_v31 = vld [vmem:[%s3751_s9 + $0xac] ss:$16 sps:$4 sm:$0xff]  }
 0x773   : > { %1559 = vmatprep.mubr.bf16.mxu1 %v3073_v32 }
 0x845   : > { %v1138_v40 = vpop.f32.mrb[16].mxu1 }
 0x846   : > { %v2442_v41 = vpop.f32.mrb[17].mxu1 }
 0x847   : > { %v1141_v42 = vpop.f32.mrb[18].mxu1  ;;  %v2671_v41 = vld [vmem:[%s3751_s9 + $0xe8] ss:$16 sps:$4 sm:$0xff]  }
 0x848   : > { %v2581_v43 = vpack.i.bf16 %v1141_v42, %v1138_v40  ;;  %v2443_v44 = vpop.f32.mrb[19].mxu1  ;;  %v2668_v40 = vld [vmem:[%s3751_s9 + $0xe0] ss:$16 sps:$4 sm:$0xff]  }
 0x84a   : > { %2582 = vrot.lane.b32.xlu1 %v2581_v43, %s3075_s16 }
 0x8bc   : > { %v2583_v45 = vpop.permute.xlu1 %2582 }
 0x8bd   : > { %v2585_v46 = vunpack.i.h.bf16 %v2583_v45  ;;  %v2584_v47 = vunpack.i.l.bf16 %v2583_v45 }
 0x8bf   : > { %v1154_v48 = vsel %vm887_vm2, %v3511_v61, %v2585_v46  ;;  %v1153_v5 = vsel %vm887_vm2, %v3509_v55, %v2584_v47  ;;  %v2629_v61 = vld [vmem:[%s3751_s9 + $0x8] ss:$16 sps:$4 sm:$0xff]  }
 0x8c0   : > { %v1155_v49 = vpack.c.bf16 %v1154_v48, %v1153_v5 }
 0x8c2   : > { %2461 = vmatmul.mubr.bf16.vlgmr.msra.gmra.mrb[4].mxu0 %v1155_v49  ;;  %v2259_v49 = vld [vmem:[#allocation10] ss:$0 sm:$0xff] }
 0x8c3   : > { %1602 = vmatprep.mubr.bf16.mxu0 %v3073_v32  ;;  %v2626_v32 = vld [vmem:[%s3751_s9] ss:$16 sps:$4 sm:$0xff]  }
 0x995   : > { %v1261_v51 = vpop.f32.mrb[4].mxu0 }
 0x996   : > { %v1262_v52 = vadd.f32 %v2250_v50, %v1261_v51  ;;  %v2462_v53 = vpop.f32.mrb[5].mxu0 }
 0x997   : > { %v1264_v54 = vpop.f32.mrb[6].mxu0  ;;  %v2260_v53 = vld [vmem:[#allocation12] ss:$0 sm:$0xff] }
 0x998   : > { %v3566_v59 = vadd.f32 %v1262_v52, %v3426_v2  ;;  %v1265_v62 = vadd.f32 %v2250_v50, %v1264_v54  ;;  %v2463_v63 = vpop.f32.mrb[7].mxu0  ;;  %v2628_v2 = vld [vmem:[%s3751_s9 + $0x4] ss:$16 sps:$4 sm:$0xff]  }
 0x999   : > { %1527 = vmatprep.subr.bf16.mxu1 %v2628_v2  ;;  %v2675_v2 = vld [vmem:[#allocation15 + $0xc0] sm:$0xff]  }
 0x99a   : > { %v3569_v1 = vadd.f32 %v1265_v62, %v3422_v0  ;;  %1272 = vadd.xlane.f32.xlu0 %v3566_v59  ;;  %v2631_v0 = vld [vmem:[%s3751_s9 + $0xc] ss:$16 sps:$4 sm:$0xff]   ;;  %1528 = vmatpush1.bf16.msra.mxu1 %v2626_v32  ;;  %v2674_v32 = vld [vmem:[#allocation15 + $0x40] sm:$0xff]  }
 0x99b   : > { %1570 = vmatprep.subr.bf16.mxu0 %v2631_v0  ;;  %1529 = vmatprep.subr.bf16.mxu1 %v2634_v3  ;;  %v2677_v0 = vld [vmem:[#allocation15 + $0x80] sm:$0xff]   ;;  %v2678_v3 = vld [vmem:[#allocation15 + $0x48] sm:$0xff]  }
 0x99c   : > { %v1274_v55 = vsel %vm578_vm0, %v3569_v1, 0.0  ;;  %1571 = vmatpush1.bf16.msra.mxu0 %v2629_v61  ;;  %v2676_v61 = vld [vmem:[#allocation15] sm:$0xff]  }
 0x99d   : > { %1275 = vadd.xlane.f32.xlu1 %v1274_v55  ;;  %1572 = vmatprep.subr.bf16.mxu0 %v2637_v4  ;;  %v2679_v4 = vld [vmem:[#allocation15 + $0xc8] sm:$0xff]  }
 0x99e   : > { %1530 = vmatpush1.bf16.msra.mxu1 %v2632_v6  ;;  %v2680_v6 = vld [vmem:[#allocation15 + $0x8] sm:$0xff]  }
 0x99f   : > { %1531 = vmatprep.subr.bf16.mxu1 %v2640_v17  ;;  %v2691_v17 = vld [vmem:[#allocation15 + $0xe0] sm:$0xff]  }
 0x9a0   : > { %1573 = vmatpush1.bf16.msra.mxu0 %v2635_v7  ;;  %v2681_v7 = vld [vmem:[#allocation15 + $0x88] sm:$0xff]  }
 0x9a1   : > { %1574 = vmatprep.subr.bf16.mxu0 %v2643_v19  ;;  %v2692_v19 = vld [vmem:[#allocation15 + $0x20] sm:$0xff]  }
 0x9a2   : > { %1532 = vmatpush1.bf16.msra.mxu1 %v2638_v20  ;;  %v2693_v20 = vld [vmem:[#allocation15 + $0xa0] sm:$0xff]  }
 0x9a3   : > { %1533 = vmatprep.subr.bf16.mxu1 %v2646_v24  ;;  %v2695_v24 = vld [vmem:[#allocation15 + $0xe8] sm:$0xff]  }
 0x9a4   : > { %1575 = vmatpush1.bf16.msra.mxu0 %v2641_v21  ;;  %v2694_v21 = vld [vmem:[#allocation15 + $0x68] sm:$0xff]  }
 0x9a5   : > { %1576 = vmatprep.subr.bf16.mxu0 %v2649_v22  ;;  %v2696_v22 = vld [vmem:[#allocation15 + $0x28] sm:$0xff]  }
 0x9a6   : > { %1534 = vmatpush1.bf16.msra.mxu1 %v2644_v23  ;;  %v2697_v23 = vld [vmem:[#allocation15 + $0xa8] sm:$0xff]  }
 0x9a7   : > { %1535 = vmatprep.subr.bf16.mxu1 %v2652_v26  ;;  %v2699_v26 = vld [vmem:[#allocation15 + $0xf0] sm:$0xff]  }
 0x9a8   : > { %1577 = vmatpush1.bf16.msra.mxu0 %v2647_v25  ;;  %v2698_v25 = vld [vmem:[#allocation15 + $0x70] sm:$0xff]  }
 0x9a9   : > { %1578 = vmatprep.subr.bf16.mxu0 %v2655_v27  ;;  %v2700_v27 = vld [vmem:[#allocation15 + $0x30] sm:$0xff]  }
 0x9aa   : > { %1536 = vmatpush1.bf16.msra.mxu1 %v2650_v28  ;;  %v2701_v28 = vld [vmem:[#allocation15 + $0xb0] sm:$0xff]  }
 0x9ab   : > { %1537 = vmatprep.subr.bf16.mxu1 %v2658_v30  ;;  %v2703_v30 = vld [vmem:[#allocation15 + $0xf8] sm:$0xff]  }
 0x9ac   : > { %1579 = vmatpush1.bf16.msra.mxu0 %v2653_v29  ;;  %v2702_v29 = vld [vmem:[#allocation15 + $0x78] sm:$0xff]  }
 0x9ad   : > { %1580 = vmatprep.subr.bf16.mxu0 %v2661_v31  ;;  %v2704_v31 = vld [vmem:[#allocation15 + $0x38] sm:$0xff]  }
 0x9ae   : > { %1538 = vmatpush1.bf16.msra.mxu1 %v2656_v18  ;;  %v2705_v18 = vld [vmem:[#allocation15 + $0xb8] sm:$0xff]  }
 0x9af   : > { %1539 = vmatprep.subr.bf16.mxu1 %v2664_v34  ;;  %v1361_v34 = vsub.s32 3, %v3459_v56 }
 0x9b0   : > { %1581 = vmatpush1.bf16.msra.mxu0 %v2659_v33  ;;  %v1345_v33 = vld [vmem:[#allocation13] sm:$0xf] }
 0x9b1   : > { %1582 = vmatprep.subr.bf16.mxu0 %v2667_v35  ;;  %v1350_v35 = vrot.slane %v1345_v33, %v655_v57 }
 0x9b2   : > { %1540 = vmatpush1.bf16.msra.mxu1 %v2662_v36  ;;  %v1358_v36 = vrot.slane %v1345_v33, %v663_v58 }
 0x9b3   : > { %1541 = vmatprep.subr.bf16.mxu1 %v2670_v38  ;;  %v1362_v38 = vrot.slane %v1345_v33, %v1361_v34 }
 0x9b4   : > { %1583 = vmatpush1.bf16.msra.mxu0 %v2665_v37  ;;  %v1354_v37 = vrot.slane %v1345_v33, %v659_v60 }
 0x9b5   : > { %1584 = vmatprep.subr.bf16.mxu0 %v2673_v39 }
 0x9b6   : > { %1542 = vmatpush1.bf16.msra.mxu1 %v2668_v40 }
 0x9b7   : > { %2356 = vmatprep.subr.bf16.mxu1 %v2674_v32 }
 0x9b8   : > { %1585 = vmatpush1.bf16.msra.mxu0 %v2671_v41 }
 0x9b9   : > { %2378 = vmatprep.subr.bf16.mxu0 %v2675_v2 }
 0xa27   : > { %v1273_v8 = vpop.xlane.xlu0 %1272 }
 0xa28   : > { %v1277_v9 = vmul.f32 0.0078125, %v1273_v8  ;;  %v2682_v8 = vld [vmem:[#allocation15 + $0x50] sm:$0xff]  }
 0xa2a   : > { %v3599_v10 = vsub.f32 %v3566_v59, %v1277_v9  ;;  %v1276_v11 = vpop.xlane.xlu1 %1275  ;;  %v2683_v9 = vld [vmem:[#allocation15 + $0xd0] sm:$0xff]  }
 0xa2b   : > { %v1278_v12 = vmul.f32 0.0078125, %v1276_v11  ;;  %v2685_v11 = vld [vmem:[#allocation15 + $0x90] sm:$0xff]  }
 0xa2c   : > { %v1281_v13 = vmul.f32 %v3599_v10, %v3599_v10 }
 0xa2d   : > { %v3604_v14 = vsub.f32 %v3569_v1, %v1278_v12  ;;  %v2686_v12 = vld [vmem:[#allocation15 + $0x58] sm:$0xff]  }
 0xa2e   : > { %1283 = vadd.xlane.f32.xlu0 %v1281_v13  ;;  %v2687_v13 = vld [vmem:[#allocation15 + $0xd8] sm:$0xff]  }
 0xa2f   : > { %v1282_v15 = vmul.f32 %v3604_v14, %v3604_v14 }
 0xa31   : > { %v1285_v16 = vsel %vm578_vm0, %v1282_v15, 0.0  ;;  %v2689_v15 = vld [vmem:[#allocation15 + $0x98] sm:$0xff]  }
 0xa32   : > { %1286 = vadd.xlane.f32.xlu1 %v1285_v16  ;;  %v2690_v16 = vld [vmem:[#allocation15 + $0x60] sm:$0xff]  }
 0xabb   : > { %v1284_v42 = vpop.xlane.xlu0 %1283 }
 0xabc   : > { %v1288_v43 = vmul.f32 0.0078125, %v1284_v42 }
 0xabe   : > { %v1290_v44 = vadd.f32 1e-05, %v1288_v43 }
 0xabf   : > { %v1287_v45 = vpop.xlane.xlu1 %1286 }
 0xac0   : > { %2726 = vrsqrt.f32 %v1290_v44  ;;  %v1289_v46 = vmul.f32 0.0078125, %v1287_v45 }
 0xac2   : > { %v1291_v47 = vadd.f32 1e-05, %v1289_v46 }
 0xac4   : > { %2728 = vrsqrt.f32 %v1291_v47 }
 0xaca   : > { %v2727_v48 = vpop.eup %2726 }
 0xacb   : > { %v1294_v5 = vmul.f32 %v2727_v48, %v3599_v10  ;;  %v2684_v10 = vld [vmem:[#allocation15 + $0x10] sm:$0xff]  }
 0xacd   : > { %v1302_v52 = vmul.f32 %v2259_v49, %v1294_v5 }
 0xace   : > { %v2729_v50 = vpop.eup %2728 }
 0xacf   : > { %v1295_v51 = vmul.f32 %v2729_v50, %v3604_v14  ;;  %v1310_v62 = vadd.f32 %v2260_v53, %v1302_v52  ;;  %v2688_v14 = vld [vmem:[#allocation15 + $0x18] sm:$0xff]  }
 0xad1   : > { %v1303_v54 = vmul.f32 %v2259_v49, %v1295_v51 }
 0xad3   : > { %v1311_v63 = vadd.f32 %v2260_v53, %v1303_v54 }
 0xad5   : > { %v1312_v55 = vpack.c.bf16 %v1311_v63, %v1310_v62 }
 0xad7   : > { %1560 = vmatmul.mubr.bf16.vlgmr.msra.gmra.mrb[20].mxu1 %v1312_v55  ;;  %1603 = vmatmul.mubr.bf16.vlgmr.msra.gmra.mrb[8].mxu0 %v1312_v55 }
 0xad8   : > { %2357 = vmatpush3.bf16.msra.mxu1 %v2676_v61  ;;  %2379 = vmatpush3.bf16.msra.mxu0 %v2677_v0 }
 0xad9   : > { %2358 = vmatprep.subr.bf16.mxu1 %v2678_v3  ;;  %2380 = vmatprep.subr.bf16.mxu0 %v2679_v4 }
 0xadc   : > { %2359 = vmatpush3.bf16.msra.mxu1 %v2680_v6  ;;  %2381 = vmatpush3.bf16.msra.mxu0 %v2681_v7 }
 0xadd   : > { %2360 = vmatprep.subr.bf16.mxu1 %v2682_v8  ;;  %2382 = vmatprep.subr.bf16.mxu0 %v2683_v9 }
 0xae0   : > { %2361 = vmatpush3.bf16.msra.mxu1 %v2684_v10  ;;  %2383 = vmatpush3.bf16.msra.mxu0 %v2685_v11 }
 0xae1   : > { %2362 = vmatprep.subr.bf16.mxu1 %v2686_v12  ;;  %2384 = vmatprep.subr.bf16.mxu0 %v2687_v13 }
 0xae4   : > { %2363 = vmatpush3.bf16.msra.mxu1 %v2688_v14  ;;  %2385 = vmatpush3.bf16.msra.mxu0 %v2689_v15 }
 0xae5   : > { %2364 = vmatprep.subr.bf16.mxu1 %v2690_v16  ;;  %2386 = vmatprep.subr.bf16.mxu0 %v2691_v17 }
 0xae8   : > { %2365 = vmatpush3.bf16.msra.mxu1 %v2692_v19  ;;  %2387 = vmatpush3.bf16.msra.mxu0 %v2693_v20 }
 0xae9   : > { %2366 = vmatprep.subr.bf16.mxu1 %v2694_v21  ;;  %2388 = vmatprep.subr.bf16.mxu0 %v2695_v24 }
 0xaec   : > { %2367 = vmatpush3.bf16.msra.mxu1 %v2696_v22  ;;  %2389 = vmatpush3.bf16.msra.mxu0 %v2697_v23 }
 0xaed   : > { %2368 = vmatprep.subr.bf16.mxu1 %v2698_v25  ;;  %2390 = vmatprep.subr.bf16.mxu0 %v2699_v26 }
 0xaf0   : > { %2369 = vmatpush3.bf16.msra.mxu1 %v2700_v27  ;;  %2391 = vmatpush3.bf16.msra.mxu0 %v2701_v28 }
 0xaf1   : > { %2370 = vmatprep.subr.bf16.mxu1 %v2702_v29  ;;  %2392 = vmatprep.subr.bf16.mxu0 %v2703_v30 }
 0xaf4   : > { %2371 = vmatpush3.bf16.msra.mxu1 %v2704_v31  ;;  %2393 = vmatpush3.bf16.msra.mxu0 %v2705_v18 }
 0xbaa   : > { %v1561_v39 = vpop.f32.mrb[20].mxu1  ;;  %v1604_v40 = vpop.f32.mrb[8].mxu0 }
 0xbab   : > { %v3690_v41 = vadd.f32 %v1561_v39, %v1350_v35  ;;  %v3692_v42 = vadd.f32 %v1604_v40, %v1358_v36  ;;  %v1563_v43 = vpop.f32.mrb[21].mxu1  ;;  %v1606_v44 = vpop.f32.mrb[9].mxu0 }
 0xbac   : > { %v3694_v45 = vadd.f32 %v1563_v43, %v1354_v37  ;;  %v3696_v46 = vadd.f32 %v1606_v44, %v1362_v38  ;;  %v1565_v57 = vpop.f32.mrb[22].mxu1  ;;  %v1608_v47 = vpop.f32.mrb[10].mxu0 }
 0xbad   : > { %v1621_v58 = vmul.f32 0.044715, %v3690_v41  ;;  %v1623_v56 = vmul.f32 0.044715, %v3692_v42  ;;  %v1566_v60 = vadd.f32 %v1565_v57, %v1350_v35  ;;  %v1609_v48 = vadd.f32 %v1608_v47, %v1358_v36  ;;  %v1567_v5 = vpop.f32.mrb[23].mxu1  ;;  %v1610_v49 = vpop.f32.mrb[11].mxu0 }
 0xbae   : > { %v1622_v50 = vmul.f32 0.044715, %v3694_v45  ;;  %v1624_v51 = vmul.f32 0.044715, %v3696_v46  ;;  %v3702_v52 = vadd.f32 %v1567_v5, %v1354_v37  ;;  %v3704_v53 = vadd.f32 %v1610_v49, %v1362_v38 }
 0xbaf   : > { %v1629_v54 = vmul.f32 %v1621_v58, %v3690_v41  ;;  %v1631_v62 = vmul.f32 %v1623_v56, %v3692_v42  ;;  %v1625_v63 = vmul.f32 0.044715, %v1566_v60  ;;  %v1627_v55 = vmul.f32 0.044715, %v1609_v48 }
 0xbb0   : > { %v1630_v32 = vmul.f32 %v1622_v50, %v3694_v45  ;;  %v1632_v2 = vmul.f32 %v1624_v51, %v3696_v46  ;;  %v1626_v61 = vmul.f32 0.044715, %v3702_v52  ;;  %v1628_v0 = vmul.f32 0.044715, %v3704_v53 }
 0xbb1   : > { %v1637_v3 = vmul.f32 %v1629_v54, %v3690_v41  ;;  %v1639_v4 = vmul.f32 %v1631_v62, %v3692_v42  ;;  %v1633_v6 = vmul.f32 %v1625_v63, %v1566_v60  ;;  %v1635_v7 = vmul.f32 %v1627_v55, %v1609_v48 }
 0xbb2   : > { %v1638_v8 = vmul.f32 %v1630_v32, %v3694_v45  ;;  %v1640_v9 = vmul.f32 %v1632_v2, %v3696_v46  ;;  %v1634_v10 = vmul.f32 %v1626_v61, %v3702_v52  ;;  %v1636_v11 = vmul.f32 %v1628_v0, %v3704_v53 }
 0xbb3   : > { %v1645_v12 = vadd.f32 %v1637_v3, %v3690_v41  ;;  %v1647_v13 = vadd.f32 %v1639_v4, %v3692_v42  ;;  %v1641_v14 = vmul.f32 %v1633_v6, %v1566_v60  ;;  %v1643_v15 = vmul.f32 %v1635_v7, %v1609_v48 }
 0xbb4   : > { %v1642_v16 = vmul.f32 %v1634_v10, %v3702_v52  ;;  %v1644_v17 = vmul.f32 %v1636_v11, %v3704_v53  ;;  %v1646_v22 = vadd.f32 %v1638_v8, %v3694_v45  ;;  %v1648_v27 = vadd.f32 %v1640_v9, %v3696_v46  ;;  %v2293_v9 = vld [vmem:[#allocation16] ss:$0 sm:$0xff] }
 0xbb5   : > { %v1653_v19 = vmul.f32 0.7978846, %v1645_v12  ;;  %v1655_v20 = vmul.f32 0.7978846, %v1647_v13  ;;  %v1649_v21 = vadd.f32 %v1641_v14, %v1566_v60  ;;  %v1651_v24 = vadd.f32 %v1643_v15, %v1609_v48 }
 0xbb6   : > { %v1650_v23 = vadd.f32 %v1642_v16, %v3702_v52  ;;  %v1654_v28 = vmul.f32 0.7978846, %v1646_v22  ;;  %v1652_v30 = vadd.f32 %v1644_v17, %v3704_v53  ;;  %v1656_v31 = vmul.f32 0.7978846, %v1648_v27 }
 0xbb7   : > { %2730 = vtanh.f32 %v1653_v19  ;;  %v1657_v25 = vmul.f32 0.7978846, %v1649_v21  ;;  %v1659_v26 = vmul.f32 0.7978846, %v1651_v24  ;;  %v1613_v39 = vmul.f32 0.5, %v3690_v41 }
 0xbb8   : > { %2732 = vtanh.f32 %v1655_v20  ;;  %v1658_v29 = vmul.f32 0.7978846, %v1650_v23  ;;  %v1660_v18 = vmul.f32 0.7978846, %v1652_v30  ;;  %v1617_v40 = vmul.f32 0.5, %v1566_v60 }
 0xbb9   : > { %2734 = vtanh.f32 %v1657_v25  ;;  %v1615_v57 = vmul.f32 0.5, %v3692_v42  ;;  %v1619_v47 = vmul.f32 0.5, %v1609_v48  ;;  %v1614_v5 = vmul.f32 0.5, %v3694_v45 }
 0xbba   : > { %2736 = vtanh.f32 %v1659_v26  ;;  %v1618_v62 = vmul.f32 0.5, %v3702_v52  ;;  %v1616_v60 = vmul.f32 0.5, %v3696_v46  ;;  %v1620_v2 = vmul.f32 0.5, %v3704_v53 }
 0xbbb   : > { %2738 = vtanh.f32 %v1654_v28 }
 0xbbc   : > { %2740 = vtanh.f32 %v1658_v29 }
 0xbbd   : > { %2742 = vtanh.f32 %v1656_v31 }
 0xbbe   : > { %2744 = vtanh.f32 %v1660_v18 }
 0xbc1   : > { %v2731_v33 = vpop.eup %2730 }
 0xbc2   : > { %v2733_v34 = vpop.eup %2732  ;;  %v1669_v35 = vadd.f32 1.0, %v2731_v33 }
 0xbc3   : > { %v2735_v36 = vpop.eup %2734  ;;  %v1671_v37 = vadd.f32 1.0, %v2733_v34 }
 0xbc4   : > { %v2737_v38 = vpop.eup %2736  ;;  %v1673_v43 = vadd.f32 1.0, %v2735_v36  ;;  %v1677_v50 = vmul.f32 %v1669_v35, %v1613_v39 }
 0xbc5   : > { %v2739_v44 = vpop.eup %2738  ;;  %v1675_v58 = vadd.f32 1.0, %v2737_v38  ;;  %v1679_v55 = vmul.f32 %v1671_v37, %v1615_v57 }
 0xbc6   : > { %v2741_v56 = vpop.eup %2740  ;;  %v1670_v49 = vadd.f32 1.0, %v2739_v44  ;;  %v1681_v51 = vmul.f32 %v1673_v43, %v1617_v40 }
 0xbc7   : > { %v2743_v54 = vpop.eup %2742  ;;  %v1674_v63 = vadd.f32 1.0, %v2741_v56  ;;  %v1683_v32 = vmul.f32 %v1675_v58, %v1619_v47 }
 0xbc8   : > { %v2745_v41 = vpop.eup %2744  ;;  %v1672_v42 = vadd.f32 1.0, %v2743_v54  ;;  %v1685_v48 = vpack.c.bf16 %v1681_v51, %v1677_v50  ;;  %v1678_v61 = vmul.f32 %v1670_v49, %v1614_v5 }
 0xbc9   : > { %v1682_v0 = vmul.f32 %v1674_v63, %v1618_v62  ;;  %v1676_v3 = vadd.f32 1.0, %v2745_v41  ;;  %v1687_v45 = vpack.c.bf16 %v1683_v32, %v1679_v55 }
 0xbca   : > { %v1680_v6 = vmul.f32 %v1672_v42, %v1616_v60 }
 0xbcb   : > { %v1686_v4 = vpack.c.bf16 %v1682_v0, %v1678_v61  ;;  %v1684_v7 = vmul.f32 %v1676_v3, %v1620_v2 }
 0xbcd   : > { %1984 = vmatprep.mubr.bf16.mxu1 %v1686_v4  ;;  %v1688_v8 = vpack.c.bf16 %v1684_v7, %v1680_v6 }
 0xbce   : > { %1985 = vmatmul.mubr.bf16.vlgmr.msra.gmra.mrb[24].mxu1 %v1685_v48 }
 0xbcf   : > { %2025 = vmatprep.mubr.bf16.mxu0 %v1688_v8 }
 0xbd0   : > { %2026 = vmatmul.mubr.bf16.vlgmr.msra.gmra.mrb[12].mxu0 %v1687_v45 }
 0xca1   : > { %v2372_v52 = vpop.f32.mrb[24].mxu1 }
 0xca2   : > { %v2373_v46 = vpop.f32.mrb[25].mxu1 }
 0xca3   : > { %v2394_v10 = vpop.f32.mrb[12].mxu0  ;;  %v2374_v53 = vadd.f32 %v2373_v46, %v2372_v52  ;;  %v2375_v11 = vpop.f32.mrb[26].mxu1 }
 0xca4   : > { %v2395_v12 = vpop.f32.mrb[13].mxu0  ;;  %v2376_v13 = vpop.f32.mrb[27].mxu1 }
 0xca5   : > { %v1987_v14 = vadd.f32 %v2374_v53, %v2293_v9  ;;  %v2396_v15 = vadd.f32 %v2395_v12, %v2394_v10  ;;  %v2397_v16 = vpop.f32.mrb[14].mxu0  ;;  %v2377_v17 = vadd.f32 %v2376_v13, %v2375_v11 }
 0xca6   : > { %v2398_v19 = vpop.f32.mrb[15].mxu0 }
 0xca7   : > { %v2028_v20 = vadd.f32 %v2396_v15, %v1987_v14  ;;  %v1990_v21 = vadd.f32 %v2377_v17, %v2293_v9  ;;  %v2399_v24 = vadd.f32 %v2398_v19, %v2397_v16 }
 0xca9   : > { %v2034_v22 = vadd.f32 %v2028_v20, %v3566_v59  ;;  %v2031_v23 = vadd.f32 %v2399_v24, %v1990_v21 }
 0xcab   : > { %2036 = vst [vmem:[%s570_s22] sm:$0xff] %v2034_v22  ;;  %v2035_v25 = vadd.f32 %v2031_v23, %v3569_v1 }
 0xcad   : > { %2037 = vst [vmem:[%s570_s22 + $0x8] sm:$0xf] %v2035_v25 }
 0xcae PF: > { %s3782_s30 = sld [smem:[#allocation24_spill]] }
 0xcb4   : > { %s29_s25 = sadd.s32 1, %s3782_s30  }
 0xcb5   : > { %p26_p1 = scmp.ge.s32.totalorder %s29_s25, 4  }
 0xcb7   :  { %28 = sbr.rel (!%p26_p1) target bundleno = 10 (0xa), region = 143 }
 0xcbe   :  { %2059 = vsyncpa [#allocation3], 1 }
 0xcbf   :  { %2061 = vsyncpa [#allocation3 + $0x1], 1 }
 0xcc0   :  { %2062 = vsyncpa [#allocation5], 1 }
 0xcc1   :  { %2063 = vsyncpa [#allocation8], 1 }
 0xcc2   :  { %2064 = vsyncpa [#allocation11], 1 }
 0xcc3   :  { %2065 = vsyncpa [#allocation14], 1 }
 0xcc4   :  { %2066 = vsyncpa [#allocation17], 1 }

// kernel: caption_model_forward.6
= control target key start
LH: loop header
LB: loop body
LE: loop exit
PB: predicated region body
PF: predicated region fallthrough
CT: control target
= control target key end

     0   :  { %s2475_s25 = smov 0   ;;  %s3003_s0 = inlined_call_operand.vmem [shape: f32[2,12,128], index: 0, kind: input, shape index: {}]   ;;  %s3004_s1 = inlined_call_operand.vmem [shape: f32[1,128], index: 1, kind: input, shape index: {}]   ;;  %s3005_s2 = inlined_call_operand.vmem [shape: f32[1,128], index: 2, kind: input, shape index: {}]   ;;  %s3006_s3 = inlined_call_operand.vmem [shape: bf16[128,384], index: 3, kind: input, shape index: {}]   ;;  %s3007_s4 = inlined_call_operand.vmem [shape: f32[1,384], index: 4, kind: input, shape index: {}]   ;;  %s3008_s5 = inlined_call_operand.vmem [shape: bf16[128,128], index: 5, kind: input, shape index: {}]   ;;  %s3009_s6 = inlined_call_operand.vmem [shape: f32[1,128], index: 6, kind: input, shape index: {}]   ;;  %s3010_s7 = inlined_call_operand.vmem [shape: f32[1,128], index: 7, kind: input, shape index: {}]   ;;  %s3011_s8 = inlined_call_operand.vmem [shape: f32[1,128], index: 8, kind: input, shape index: {}]   ;;  %s3012_s9 = inlined_call_operand.vmem [shape: bf16[128,512], index: 9, kind: input, shape index: {}]   ;;  %s3013_s10 = inlined_call_operand.vmem [shape: f32[1,512], index: 10, kind: input, shape index: {}]   ;;  %s3014_s11 = inlined_call_operand.vmem [shape: bf16[512,128], index: 11, kind: input, shape index: {}]   ;;  %s3015_s12 = inlined_call_operand.vmem [shape: f32[1,128], index: 12, kind: input, shape index: {}]   ;;  %s3016_s13 = inlined_call_operand.vmem [shape: f32[2,12,128], index: 13, kind: output, shape index: {}]  }
   0x1 LB: > { %s1963_s26 = sadd.s32 4294967295, %s2399_s25   ;;  %p1967_p0 = scmp.ge.s32.totalorder %s2399_s25, 1  ;;  %s2399_s25 = sphi %s2475_s25, %s23_s25  }
   0x2   : > { %p387_p1 = scmp.lt.s32.totalorder %s2399_s25, 3 }
   0x4   : > { %p388_p2 = pnand %p1967_p0, %p387_p1 }
   0x5   : > { %p431_p3 = scmp.lt.s32.totalorder (!%p388_p2), %s1963_s26, 1  ;;  %vm448_vm0 = vcmask (!%p388_p2), 1043456   ;;  %v2233_v3 = vld [vmem:[%s3006_s3 + $0x4] ss:$12 sps:$4 sm:$0xff] (!%p388_p2)   ;;  %v2235_v4 = vld [vmem:[%s3006_s3] ss:$12 sps:$4 sm:$0xff] (!%p388_p2)   ;;  %v523_v55 = vlaneseq (!%p388_p2) }
   0x6   : > { %391 = sbr.rel (%p388_p2) target bundleno = 2980 (0xba4), region = 72  ;;  %v2401_v5 = vmov (!%p388_p2), 0.0   ;;  %v2236_v6 = vld [vmem:[%s3006_s3 + $0x8] ss:$12 sps:$4 sm:$0xff] (!%p388_p2)   ;;  %666 = vmatprep.subr.bf16.mxu0 (!%p388_p2), %v2233_v3  ;;  %v2239_v17 = vld [vmem:[%s3006_s3 + $0x18] ss:$12 sps:$4 sm:$0xff] (!%p388_p2)  }
   0x7   : > { %2152 = vmatprep.subr.bf16.mxu1 (!%p388_p2), %v2401_v5  ;;  %v2237_v7 = vld [vmem:[%s3006_s3 + $0x1c] ss:$12 sps:$4 sm:$0xff] (!%p388_p2)   ;;  %667 = vmatpush1.bf16.msra.mxu0 (!%p388_p2), %v2235_v4  ;;  %v2240_v18 = vld [vmem:[%s3006_s3 + $0x20] ss:$12 sps:$4 sm:$0xff] (!%p388_p2)   ;;  %v2244_v21 = vld [vmem:[%s3006_s3 + $0x38] ss:$12 sps:$4 sm:$0xff] (!%p388_p2)  }
   0x8   : > { %2153 = vmatpush3.bf16.msra.mxu1 (!%p388_p2), %v2236_v6  ;;  %668 = vmatprep.subr.bf16.mxu0 (!%p388_p2), %v2237_v7  ;;  %v2241_v19 = vld [vmem:[%s3006_s3 + $0x34] ss:$12 sps:$4 sm:$0xff] (!%p388_p2)   ;;  %v2243_v20 = vld [vmem:[%s3006_s3 + $0x30] ss:$12 sps:$4 sm:$0xff] (!%p388_p2)   ;;  %v2245_v22 = vld [vmem:[%s3006_s3 + $0x4c] ss:$12 sps:$4 sm:$0xff] (!%p388_p2)  }
   0x9   : > { %2154 = vmatprep.subr.bf16.mxu1 (!%p388_p2), %v2401_v5  ;;  %v2247_v23 = vld [vmem:[%s3006_s3 + $0x48] ss:$12 sps:$4 sm:$0xff] (!%p388_p2)   ;;  %v2248_v24 = vld [vmem:[%s3006_s3 + $0x50] ss:$12 sps:$4 sm:$0xff] (!%p388_p2)   ;;  %v2251_v26 = vld [vmem:[%s3006_s3 + $0x60] ss:$12 sps:$4 sm:$0xff] (!%p388_p2)  }
   0xa   : > { %v2249_v25 = vld [vmem:[%s3006_s3 + $0x64] ss:$12 sps:$4 sm:$0xff] (!%p388_p2)   ;;  %v2252_v27 = vld [vmem:[%s3006_s3 + $0x68] ss:$12 sps:$4 sm:$0xff] (!%p388_p2)   ;;  %v2256_v30 = vld [vmem:[%s3006_s3 + $0x80] ss:$12 sps:$4 sm:$0xff] (!%p388_p2)  }
   0xb   : > { %669 = vmatpush1.bf16.msra.mxu0 (!%p388_p2), %v2239_v17  ;;  %v2253_v28 = vld [vmem:[%s3006_s3 + $0x7c] ss:$12 sps:$4 sm:$0xff] (!%p388_p2)   ;;  %v2255_v29 = vld [vmem:[%s3006_s3 + $0x78] ss:$12 sps:$4 sm:$0xff] (!%p388_p2)   ;;  %v2257_v31 = vld [vmem:[%s3006_s3 + $0x94] ss:$12 sps:$4 sm:$0xff] (!%p388_p2)  }
   0xc   : > { %2155 = vmatpush3.bf16.msra.mxu1 (!%p388_p2), %v2240_v18  ;;  %670 = vmatprep.subr.bf16.mxu0 (!%p388_p2), %v2241_v19  ;;  %v2402_v32 = vmov (!%p388_p2), 0   ;;  %vm2403_vm1 = vmmov (!%p388_p2), 0   ;;  %v2259_v33 = vld [vmem:[%s3006_s3 + $0x90] ss:$12 sps:$4 sm:$0xff] (!%p388_p2)   ;;  %v2260_v34 = vld [vmem:[%s3006_s3 + $0x98] ss:$12 sps:$4 sm:$0xff] (!%p388_p2)  }
   0xd   : > { %s3018_s26 = smov (!%p431_p3, %s1963_s26), 1  ;;  %2156 = vmatprep.subr.bf16.mxu1 %v2401_v5  ;;  %698 = vmatprep.mubr.bf16.mxu0 %v2402_v32  ;;  %v2261_v35 = vld [vmem:[%s3006_s3 + $0xac] ss:$12 sps:$4 sm:$0xff]   ;;  %v2263_v36 = vld [vmem:[%s3006_s3 + $0xa8] ss:$12 sps:$4 sm:$0xff]   ;;  %v2606_v56 = vshrl.u32 %v523_v55, 7 }
   0xe   : > { %s2080_s27 = sshll.u32 %s3018_s26, 4  ;;  %2168 = vmatprep.mubr.msk.bf16.mxu1 %vm2403_vm1, %v2401_v5  ;;  %v2264_v37 = vld [vmem:[%s3006_s3 + $0xb0] ss:$12 sps:$4 sm:$0xff]   ;;  %v1972_v46 = vld [vmem:[%s3004_s1] ss:$0 sm:$0xff]  ;;  %vm757_vm2 = vcmask 523264  }
   0xf   : > { %s435_s30 = scalar_lea.vmem %s3003_s0, %s2080_s27  ;;  %671 = vmatpush1.bf16.msra.mxu0 %v2243_v20  ;;  %v1973_v50 = vld [vmem:[%s3005_s2] ss:$0 sm:$0xff]  ;;  %v525_v57 = vsub.s32 0, %v2606_v56  ;;  %v533_v58 = vsub.s32 2, %v2606_v56  ;;  %v529_v60 = vsub.s32 1, %v2606_v56  ;;  %vm840_vm3 = vcmask 1045504   ;;  %s440_s16 = scalar_lea.vmem %s3016_s13, %s2080_s27 }
  0x10   : > { %v2491_v0 = vld [vmem:[%s435_s30 + $0x8] sm:$0xf]  ;;  %v2495_v2 = vld [vmem:[%s435_s30] sm:$0xff]  ;;  %2157 = vmatpush3.bf16.msra.mxu1 %v2244_v21  ;;  %672 = vmatprep.subr.bf16.mxu0 %v2245_v22  ;;  %v2630_v22 = vand.u32 127, %v523_v55  ;;  %vm811_vm5 = vcmask 97280   ;;  %vm815_vm7 = vcmask 93184  }
  0x11   : > { %v449_v1 = vsel %vm448_vm0, %v2491_v0, 0.0  ;;  %2158 = vmatprep.subr.bf16.mxu1 %v2401_v5  ;;  %v521_v59 = vld [vmem:[%s3007_s4] sm:$0x7]  ;;  %s2404_s29 = smov 64  }
  0x12   : > { %450 = vadd.xlane.f32.xlu0 %v449_v1  ;;  %v526_v61 = vrot.slane %v521_v59, %v525_v57  ;;  %v534_v62 = vrot.slane %v521_v59, %v533_v58  ;;  %v530_v3 = vrot.slane %v521_v59, %v529_v60  ;;  %vm807_vm4 = vcmp.le.s32.totalorder %v2630_v22, %v2606_v56 }
  0x13   : > { %673 = vmatpush1.bf16.msra.mxu0 %v2247_v23  ;;  %v2633_v23 = vadd.s32 8, %v2606_v56 }
  0x14   : > { %2159 = vmatpush3.bf16.msra.mxu1 %v2248_v24  ;;  %674 = vmatprep.subr.bf16.mxu0 %v2249_v25 }
  0x15   : > { %2160 = vmatprep.subr.bf16.mxu1 %v2401_v5  ;;  %vm808_vm6 = vcmp.le.s32.totalorder %v2630_v22, %v2633_v23 }
  0x16   : > { %446 = vadd.xlane.f32.xlu0 %v2495_v2 }
  0x17   : > { %675 = vmatpush1.bf16.msra.mxu0 %v2251_v26 }
  0x18   : > { %2161 = vmatpush3.bf16.msra.mxu1 %v2252_v27  ;;  %676 = vmatprep.subr.bf16.mxu0 %v2253_v28 }
  0x19   : > { %2162 = vmatprep.subr.bf16.mxu1 %v2401_v5 }
  0x1b   : > { %677 = vmatpush1.bf16.msra.mxu0 %v2255_v29 }
  0x1c   : > { %2163 = vmatpush3.bf16.msra.mxu1 %v2256_v30  ;;  %678 = vmatprep.subr.bf16.mxu0 %v2257_v31 }
  0x1d   : > { %2164 = vmatprep.subr.bf16.mxu1 %v2401_v5 }
  0x1f   : > { %679 = vmatpush1.bf16.msra.mxu0 %v2259_v33 }
  0x20   : > { %2165 = vmatpush3.bf16.msra.mxu1 %v2260_v34  ;;  %680 = vmatprep.subr.bf16.mxu0 %v2261_v35 }
  0x21   : > { %2166 = vmatprep.subr.bf16.mxu1 %v2401_v5 }
  0x23   : > { %681 = vmatpush1.bf16.msra.mxu0 %v2263_v36 }
  0x24   : > { %2167 = vmatpush3.bf16.msra.mxu1 %v2264_v37  ;;  %2196 = vmatprep.subr.bf16.mxu0 %v2401_v5 }
  0x25   : > { %2172 = vmatprep.subr.bf16.mxu1 %v2401_v5 }
  0x9f   : > { %v451_v8 = vpop.xlane.xlu0 %450 }
  0xa0   : > { %v454_v9 = vmul.f32 0.0078125, %v451_v8 }
  0xa2   : > { %v2513_v12 = vsub.f32 %v2491_v0, %v454_v9 }
  0xa3   : > { %v447_v10 = vpop.xlane.xlu0 %446 }
  0xa4   : > { %v453_v11 = vmul.f32 0.0078125, %v447_v10  ;;  %v458_v15 = vmul.f32 %v2513_v12, %v2513_v12 }
  0xa6   : > { %v2516_v13 = vsub.f32 %v2495_v2, %v453_v11  ;;  %v461_v16 = vsel %vm448_vm0, %v458_v15, 0.0 }
  0xa8   : > { %v457_v14 = vmul.f32 %v2516_v13, %v2516_v13 }
  0xaa   : > { %459 = vadd.xlane.f32.xlu1 %v457_v14 }
  0xae   : > { %462 = vadd.xlane.f32.xlu1 %v461_v16 }
 0x137   : > { %v460_v38 = vpop.xlane.xlu1 %459 }
 0x138   : > { %v464_v39 = vmul.f32 0.0078125, %v460_v38 }
 0x13a   : > { %v466_v40 = vadd.f32 1e-05, %v464_v39 }
 0x13b   : > { %v463_v41 = vpop.xlane.xlu1 %462 }
 0x13c   : > { %2353 = vrsqrt.f32 %v466_v40  ;;  %v465_v42 = vmul.f32 0.0078125, %v463_v41 }
 0x13e   : > { %v467_v43 = vadd.f32 1e-05, %v465_v42 }
 0x140   : > { %2355 = vrsqrt.f32 %v467_v43 }
 0x146   : > { %v2354_v44 = vpop.eup %2353 }
 0x147   : > { %v470_v45 = vmul.f32 %v2354_v44, %v2516_v13 }
 0x149   : > { %v478_v49 = vmul.f32 %v1972_v46, %v470_v45 }
 0x14a   : > { %v2356_v47 = vpop.eup %2355 }
 0x14b   : > { %v471_v48 = vmul.f32 %v2356_v47, %v2513_v12  ;;  %v486_v52 = vadd.f32 %v1973_v50, %v478_v49 }
 0x14d   : > { %v479_v51 = vmul.f32 %v1972_v46, %v471_v48 }
 0x14f   : > { %v487_v53 = vadd.f32 %v1973_v50, %v479_v51 }
 0x151   : > { %v488_v54 = vpack.c.bf16 %v487_v53, %v486_v52 }
 0x153   : > { %699 = vmatmul.mubr.bf16.vlgmr.msra.gmra.mrb[0].mxu0 %v488_v54  ;;  %2169 = vmatmul.mubr.bf16.vlgmr.msra.gmra.mrb[0].mxu1 %v488_v54 }
 0x154   : > { %2174 = vmatprep.mubr.msk.bf16.mxu1 %vm2403_vm1, %v2401_v5  ;;  %2212 = vmatprep.mubr.msk.bf16.mxu0 %vm2403_vm1, %v2401_v5 }
 0x226   : > { %v700_v63 = vpop.f32.mrb[0].mxu0  ;;  %v743_v1 = vpop.f32.mrb[0].mxu1 }
 0x227   : > { %v702_v4 = vpop.f32.mrb[1].mxu0  ;;  %v2170_v6 = vpop.f32.mrb[1].mxu1  ;;  %v701_v9 = vadd.f32 %v700_v63, %v526_v61  ;;  %v744_v10 = vadd.f32 %v743_v1, %v534_v62 }
 0x228   : > { %v704_v7 = vpop.f32.mrb[2].mxu0  ;;  %v746_v8 = vpop.f32.mrb[2].mxu1  ;;  %v703_v15 = vadd.f32 %v702_v4, %v530_v3 }
 0x229   : > { %v705_v11 = vadd.f32 %v704_v7, %v526_v61  ;;  %v747_v12 = vadd.f32 %v746_v8, %v534_v62  ;;  %v706_v13 = vpop.f32.mrb[3].mxu0  ;;  %v2171_v14 = vpop.f32.mrb[3].mxu1 }
 0x22a   : > { %v707_v16 = vadd.f32 %v706_v13, %v530_v3 }
 0x22b   : > { %v755_v17 = vpack.c.bf16 %v705_v11, %v701_v9  ;;  %v2620_v18 = vpack.c.bf16 %v747_v12, %v744_v10 }
 0x22c   : > { %v756_v19 = vpack.c.bf16 %v707_v16, %v703_v15 }
 0x22d   : > { %v842_v21 = vsel %vm840_vm3, %v2620_v18, 0 }
 0x22e   : > { %v762_v20 = vsel %vm757_vm2, %v756_v19, 0 }
 0x22f   : > { %2173 = vmatpush3.bf16.xpose.msra.mxu1 %v762_v20 }
 0x230   : > { %2178 = vmatprep.subr.bf16.mxu1 %v2401_v5 }
 0x236   : > { %2175 = vmatmul.mubr.msk.bf16.vlgmr.msra.gmra.mrb[4].mxu1 %vm757_vm2, %v755_v17 }
 0x237   : > { %2179 = vmatpush3.bf16.msra.mxu1 %v842_v21  ;;  %2180 = vmatprep.mubr.msk.bf16.mxu1 %vm2403_vm1, %v2401_v5 }
 0x238   : > { %2184 = vmatprep.subr.bf16.mxu1 %v2401_v5 }
 0x309   : > { %v798_v24 = vpop.f32.mrb[4].mxu1 }
 0x30a   : > { %v805_v25 = vmul.f32 0.125, %v798_v24  ;;  %v2176_v26 = vpop.f32.mrb[5].mxu1 }
 0x30b   : > { %v801_v27 = vpop.f32.mrb[6].mxu1 }
 0x30c   : > { %v806_v28 = vmul.f32 0.125, %v801_v27  ;;  %v2177_v29 = vpop.f32.mrb[7].mxu1  ;;  %v809_v30 = vsel %vm807_vm4, %v805_v25, -1e+09 }
 0x30d   : > { %v812_v31 = vsel %vm811_vm5, %v809_v30, -inf }
 0x30e   : > { %813 = vmax.xlane.f32.xlu0 %v812_v31  ;;  %v810_v33 = vsel %vm808_vm6, %v806_v28, -1e+09 }
 0x30f   : > { %v816_v34 = vsel %vm815_vm7, %v810_v33, -inf }
 0x310   : > { %817 = vmax.xlane.f32.xlu1 %v816_v34  ;;  %v2267_v34 = vld [vmem:[%s3008_s5 + $0x10] sm:$0xff]  }
 0x39b   : > { %v814_v35 = vpop.xlane.xlu0 %813 }
 0x39c   : > { %v819_v36 = vsub.f32 %v809_v30, %v814_v35  ;;  %v2268_v35 = vld [vmem:[%s3008_s5 + $0x18] sm:$0xff]  }
 0x39d   : > { %v818_v37 = vpop.xlane.xlu1 %817 }
 0x39e   : > { %v821_v38 = vmul.f32 1.442695, %v819_v36  ;;  %v820_v39 = vsub.f32 %v810_v33, %v818_v37  ;;  %v2266_v33 = vld [vmem:[%s3008_s5 + $0x8] sm:$0xff]   ;;  %v2269_v36 = vld [vmem:[%s3008_s5 + $0x20] sm:$0xff]  }
 0x39f   : > { %v2270_v37 = vld [vmem:[%s3008_s5 + $0x28] sm:$0xff]  }
 0x3a0   : > { %2357 = vpow2.f32 %v821_v38  ;;  %v823_v40 = vmul.f32 1.442695, %v820_v39  ;;  %v2271_v38 = vld [vmem:[%s3008_s5 + $0x30] sm:$0xff]   ;;  %v2272_v39 = vld [vmem:[%s3008_s5 + $0x38] sm:$0xff]  }
 0x3a2   : > { %2359 = vpow2.f32 %v823_v40 }
 0x3aa   : > { %v2358_v41 = vpop.eup %2357 }
 0x3ab   : > { %v825_v42 = vsel %vm811_vm5, %v2358_v41, 0.0 }
 0x3ac   : > { %v2360_v43 = vpop.eup %2359  ;;  %826 = vadd.xlane.f32.xlu0 %v825_v42 }
 0x3ad   : > { %v828_v44 = vsel %vm815_vm7, %v2360_v43, 0.0 }
 0x3ae   : > { %829 = vadd.xlane.f32.xlu1 %v828_v44 }
 0x3bf   : > { %886 = vrot.lane.b32.xlu1 %v755_v17, %s2404_s29 }
 0x3c2   : > { %889 = vrot.lane.b32.xlu0 %v756_v19, %s2404_s29 }
 0x439   : > { %v827_v45 = vpop.xlane.xlu0 %826 }
 0x43a   : > { %2361 = vrcp.f32 %v827_v45 }
 0x43b   : > { %v830_v46 = vpop.xlane.xlu1 %829 }
 0x43c   : > { %2363 = vrcp.f32 %v830_v46 }
 0x43d   : > { %v890_v51 = vpop.permute.xlu0 %889 }
 0x43e   : > { %v895_v53 = vsel %vm757_vm2, %v890_v51, 0 }
 0x43f   : > { %v887_v54 = vpop.permute.xlu1 %886 }
 0x444   : > { %v2362_v47 = vpop.eup %2361 }
 0x445   : > { %v833_v49 = vmul.f32 %v2362_v47, %v2358_v41 }
 0x446   : > { %v2364_v48 = vpop.eup %2363 }
 0x447   : > { %v834_v50 = vmul.f32 %v2364_v48, %v2360_v43 }
 0x449   : > { %v835_v52 = vpack.c.bf16 %v834_v50, %v833_v49  ;;  %v2002_v50 = vld [vmem:[%s3009_s6] ss:$0 sm:$0xff] }
 0x44b   : > { %2181 = vmatmul.mubr.msk.bf16.vlgmr.msra.gmra.mrb[8].mxu1 %vm811_vm5, %v835_v52 }
 0x44c   : > { %2185 = vmatpush3.bf16.xpose.msra.mxu1 %v895_v53  ;;  %2186 = vmatprep.mubr.msk.bf16.mxu1 %vm2403_vm1, %v2401_v5 }
 0x44d   : > { %2190 = vmatprep.subr.bf16.mxu1 %v2401_v5 }
 0x453   : > { %2187 = vmatmul.mubr.msk.bf16.vlgmr.msra.gmra.mrb[12].mxu1 %vm757_vm2, %v887_v54 }
 0x454   : > { %2192 = vmatprep.mubr.msk.bf16.mxu1 %vm2403_vm1, %v2401_v5 }
 0x51e   : > { %v2659_v55 = vpop.f32.mrb[8].mxu1 }
 0x51f   : > { %v2182_v59 = vpop.f32.mrb[9].mxu1 }
 0x520   : > { %v2661_v61 = vpop.f32.mrb[10].mxu1 }
 0x521   : > { %v2183_v62 = vpop.f32.mrb[11].mxu1 }
 0x526   : > { %v931_v63 = vpop.f32.mrb[12].mxu1 }
 0x527   : > { %v938_v1 = vmul.f32 0.125, %v931_v63  ;;  %v2188_v3 = vpop.f32.mrb[13].mxu1 }
 0x528   : > { %v934_v4 = vpop.f32.mrb[14].mxu1  ;;  %v2281_v3 = vld [vmem:[%s3012_s9 + $0x24] ss:$16 sps:$4 sm:$0xff]  }
 0x529   : > { %v939_v6 = vmul.f32 0.125, %v934_v4  ;;  %v2189_v7 = vpop.f32.mrb[15].mxu1  ;;  %v940_v8 = vsel %vm807_vm4, %v938_v1, -1e+09  ;;  %v2276_v1 = vld [vmem:[%s3012_s9 + $0x8] ss:$16 sps:$4 sm:$0xff]  }
 0x52a   : > { %v942_v9 = vsel %vm811_vm5, %v940_v8, -inf  ;;  %v2284_v4 = vld [vmem:[%s3012_s9 + $0x2c] ss:$16 sps:$4 sm:$0xff]   ;;  %v2282_v7 = vld [vmem:[%s3012_s9 + $0x28] ss:$16 sps:$4 sm:$0xff]  }
 0x52b   : > { %943 = vmax.xlane.f32.xlu1 %v942_v9  ;;  %v941_v10 = vsel %vm808_vm6, %v939_v6, -1e+09  ;;  %v2279_v6 = vld [vmem:[%s3012_s9 + $0x20] ss:$16 sps:$4 sm:$0xff]  }
 0x52c   : > { %v945_v11 = vsel %vm815_vm7, %v941_v10, -inf }
 0x52d   : > { %946 = vmax.xlane.f32.xlu0 %v945_v11 }
 0x5b8   : > { %v944_v12 = vpop.xlane.xlu1 %943 }
 0x5b9   : > { %v948_v13 = vsub.f32 %v940_v8, %v944_v12 }
 0x5ba   : > { %v947_v14 = vpop.xlane.xlu0 %946 }
 0x5bb   : > { %v950_v15 = vmul.f32 1.442695, %v948_v13  ;;  %v949_v16 = vsub.f32 %v941_v10, %v947_v14 }
 0x5bd   : > { %2365 = vpow2.f32 %v950_v15  ;;  %v952_v17 = vmul.f32 1.442695, %v949_v16 }
 0x5bf   : > { %2367 = vpow2.f32 %v952_v17  ;;  %v2287_v17 = vld [vmem:[%s3012_s9 + $0x44] ss:$16 sps:$4 sm:$0xff]  }
 0x5c7   : > { %v2366_v19 = vpop.eup %2365 }
 0x5c8   : > { %v954_v20 = vsel %vm811_vm5, %v2366_v19, 0.0 }
 0x5c9   : > { %v2368_v21 = vpop.eup %2367  ;;  %955 = vadd.xlane.f32.xlu0 %v954_v20  ;;  %v2285_v20 = vld [vmem:[%s3012_s9 + $0x40] ss:$16 sps:$4 sm:$0xff]  }
 0x5ca   : > { %v957_v24 = vsel %vm815_vm7, %v2368_v21, 0.0 }
 0x5cb   : > { %958 = vadd.xlane.f32.xlu1 %v957_v24  ;;  %v2293_v24 = vld [vmem:[%s3012_s9 + $0x64] ss:$16 sps:$4 sm:$0xff]  }
 0x5df   : > { %966 = vrot.lane.b32.xlu0 %v2620_v18, %s2404_s29  ;;  %v2265_v18 = vld [vmem:[%s3008_s5] sm:$0xff]  }
 0x5e0   : > { %2197 = vmatpush3.bf16.msra.mxu0 %v2265_v18  ;;  %v2303_v18 = vld [vmem:[%s3012_s9 + $0xa0] ss:$16 sps:$4 sm:$0xff]  }
 0x5e1   : > { %2198 = vmatprep.subr.bf16.mxu0 %v2401_v5 }
 0x5e4   : > { %2199 = vmatpush3.bf16.msra.mxu0 %v2266_v33  ;;  %v2306_v33 = vld [vmem:[%s3012_s9 + $0xa8] ss:$16 sps:$4 sm:$0xff]  }
 0x5e5   : > { %2200 = vmatprep.subr.bf16.mxu0 %v2401_v5 }
 0x5e8   : > { %2201 = vmatpush3.bf16.msra.mxu0 %v2267_v34  ;;  %v2311_v34 = vld [vmem:[%s3012_s9 + $0xc4] ss:$16 sps:$4 sm:$0xff]  }
 0x5e9   : > { %2202 = vmatprep.subr.bf16.mxu0 %v2401_v5 }
 0x5ec   : > { %2203 = vmatpush3.bf16.msra.mxu0 %v2268_v35  ;;  %v2314_v35 = vld [vmem:[%s3012_s9 + $0xcc] ss:$16 sps:$4 sm:$0xff]  }
 0x5ed   : > { %2204 = vmatprep.subr.bf16.mxu0 %v2401_v5 }
 0x5f0   : > { %2205 = vmatpush3.bf16.msra.mxu0 %v2269_v36  ;;  %v2309_v36 = vld [vmem:[%s3012_s9 + $0xc0] ss:$16 sps:$4 sm:$0xff]  }
 0x5f1   : > { %2206 = vmatprep.subr.bf16.mxu0 %v2401_v5 }
 0x5f4   : > { %2207 = vmatpush3.bf16.msra.mxu0 %v2270_v37  ;;  %v2312_v37 = vld [vmem:[%s3012_s9 + $0xc8] ss:$16 sps:$4 sm:$0xff]  }
 0x5f5   : > { %2208 = vmatprep.subr.bf16.mxu0 %v2401_v5 }
 0x5f8   : > { %2209 = vmatpush3.bf16.msra.mxu0 %v2271_v38  ;;  %v2317_v38 = vld [vmem:[%s3012_s9 + $0xe4] ss:$16 sps:$4 sm:$0xff]  }
 0x5f9   : > { %2210 = vmatprep.subr.bf16.mxu0 %v2401_v5 }
 0x5fc   : > { %2211 = vmatpush3.bf16.msra.mxu0 %v2272_v39  ;;  %v2320_v39 = vld [vmem:[%s3012_s9 + $0xec] ss:$16 sps:$4 sm:$0xff]  }
 0x656   : > { %v956_v22 = vpop.xlane.xlu0 %955 }
 0x657   : > { %2369 = vrcp.f32 %v956_v22  ;;  %v2296_v22 = vld [vmem:[%s3012_s9 + $0x6c] ss:$16 sps:$4 sm:$0xff]  }
 0x658   : > { %v959_v23 = vpop.xlane.xlu1 %958 }
 0x659   : > { %2371 = vrcp.f32 %v959_v23  ;;  %v2291_v23 = vld [vmem:[%s3012_s9 + $0x60] ss:$16 sps:$4 sm:$0xff]  }
 0x65a   : > { %v967_v25 = vpop.permute.xlu0 %966 }
 0x65b   : > { %v972_v26 = vsel %vm840_vm3, %v967_v25, 0  ;;  %v2294_v25 = vld [vmem:[%s3012_s9 + $0x68] ss:$16 sps:$4 sm:$0xff]  }
 0x65c   : > { %2191 = vmatpush3.bf16.msra.mxu1 %v972_v26  ;;  %v2299_v26 = vld [vmem:[%s3012_s9 + $0x84] ss:$16 sps:$4 sm:$0xff]  }
 0x661   : > { %v2370_v27 = vpop.eup %2369 }
 0x662   : > { %v962_v29 = vmul.f32 %v2370_v27, %v2366_v19  ;;  %v2290_v19 = vld [vmem:[%s3012_s9 + $0x4c] ss:$16 sps:$4 sm:$0xff]  }
 0x663   : > { %v2372_v28 = vpop.eup %2371  ;;  %v2302_v27 = vld [vmem:[%s3012_s9 + $0x8c] ss:$16 sps:$4 sm:$0xff]  }
 0x664   : > { %v963_v30 = vmul.f32 %v2372_v28, %v2368_v21  ;;  %v2288_v21 = vld [vmem:[%s3012_s9 + $0x48] ss:$16 sps:$4 sm:$0xff]   ;;  %v2297_v28 = vld [vmem:[%s3012_s9 + $0x80] ss:$16 sps:$4 sm:$0xff]  }
 0x666   : > { %v964_v31 = vpack.c.bf16 %v963_v30, %v962_v29  ;;  %v2300_v29 = vld [vmem:[%s3012_s9 + $0x88] ss:$16 sps:$4 sm:$0xff]   ;;  %v2305_v30 = vld [vmem:[%s3012_s9 + $0xa4] ss:$16 sps:$4 sm:$0xff]  }
 0x668   : > { %2193 = vmatmul.mubr.msk.bf16.vlgmr.msra.gmra.mrb[16].mxu1 %vm811_vm5, %v964_v31  ;;  %v2308_v31 = vld [vmem:[%s3012_s9 + $0xac] ss:$16 sps:$4 sm:$0xff]  }
 0x669   : > { %1429 = vmatprep.mubr.bf16.mxu1 %v2402_v32 }
 0x73b   : > { %v1008_v40 = vpop.f32.mrb[16].mxu1 }
 0x73c   : > { %v2194_v41 = vpop.f32.mrb[17].mxu1 }
 0x73d   : > { %v1011_v42 = vpop.f32.mrb[18].mxu1  ;;  %v2318_v41 = vld [vmem:[%s3012_s9 + $0xe8] ss:$16 sps:$4 sm:$0xff]  }
 0x73e   : > { %v2228_v43 = vpack.i.bf16 %v1011_v42, %v1008_v40  ;;  %v2195_v44 = vpop.f32.mrb[19].mxu1  ;;  %v2315_v40 = vld [vmem:[%s3012_s9 + $0xe0] ss:$16 sps:$4 sm:$0xff]  }
 0x740   : > { %2229 = vrot.lane.b32.xlu1 %v2228_v43, %s2404_s29 }
 0x7b2   : > { %v2230_v45 = vpop.permute.xlu1 %2229 }
 0x7b3   : > { %v2232_v46 = vunpack.i.h.bf16 %v2230_v45  ;;  %v2231_v47 = vunpack.i.l.bf16 %v2230_v45 }
 0x7b5   : > { %v1024_v48 = vsel %vm757_vm2, %v2661_v61, %v2232_v46  ;;  %v1023_v5 = vsel %vm757_vm2, %v2659_v55, %v2231_v47  ;;  %v2273_v55 = vld [vmem:[%s3012_s9] ss:$16 sps:$4 sm:$0xff]  }
 0x7b6   : > { %v1025_v49 = vpack.c.bf16 %v1024_v48, %v1023_v5 }
 0x7b8   : > { %2213 = vmatmul.mubr.bf16.vlgmr.msra.gmra.mrb[4].mxu0 %v1025_v49  ;;  %v2011_v49 = vld [vmem:[%s3010_s7] ss:$0 sm:$0xff] }
 0x7b9   : > { %1472 = vmatprep.mubr.bf16.mxu0 %v2402_v32 }
 0x88b   : > { %v1131_v51 = vpop.f32.mrb[4].mxu0 }
 0x88c   : > { %v1132_v52 = vadd.f32 %v2002_v50, %v1131_v51  ;;  %v2214_v53 = vpop.f32.mrb[5].mxu0 }
 0x88d   : > { %v1134_v54 = vpop.f32.mrb[6].mxu0  ;;  %v2012_v53 = vld [vmem:[%s3011_s8] ss:$0 sm:$0xff] }
 0x88e   : > { %v2719_v59 = vadd.f32 %v1132_v52, %v2495_v2  ;;  %v1135_v62 = vadd.f32 %v2002_v50, %v1134_v54  ;;  %v2215_v61 = vpop.f32.mrb[7].mxu0  ;;  %v2275_v2 = vld [vmem:[%s3012_s9 + $0x4] ss:$16 sps:$4 sm:$0xff]  }
 0x88f   : > { %1397 = vmatprep.subr.bf16.mxu1 %v2275_v2  ;;  %v2322_v2 = vld [vmem:[%s3014_s11 + $0xc0] sm:$0xff]  }
 0x890   : > { %v2722_v63 = vadd.f32 %v1135_v62, %v2491_v0  ;;  %1142 = vadd.xlane.f32.xlu0 %v2719_v59  ;;  %v2278_v0 = vld [vmem:[%s3012_s9 + $0xc] ss:$16 sps:$4 sm:$0xff]   ;;  %1398 = vmatpush1.bf16.msra.mxu1 %v2273_v55  ;;  %v2321_v55 = vld [vmem:[%s3014_s11 + $0x40] sm:$0xff]  }
 0x891   : > { %1440 = vmatprep.subr.bf16.mxu0 %v2278_v0  ;;  %1399 = vmatprep.subr.bf16.mxu1 %v2281_v3  ;;  %v2324_v0 = vld [vmem:[%s3014_s11 + $0x80] sm:$0xff]   ;;  %v2325_v3 = vld [vmem:[%s3014_s11 + $0x48] sm:$0xff]  }
 0x892   : > { %v1144_v32 = vsel %vm448_vm0, %v2722_v63, 0.0  ;;  %1441 = vmatpush1.bf16.msra.mxu0 %v2276_v1  ;;  %v2323_v1 = vld [vmem:[%s3014_s11] sm:$0xff]  }
 0x893   : > { %1145 = vadd.xlane.f32.xlu1 %v1144_v32  ;;  %1442 = vmatprep.subr.bf16.mxu0 %v2284_v4  ;;  %v2326_v4 = vld [vmem:[%s3014_s11 + $0xc8] sm:$0xff]  }
 0x894   : > { %1400 = vmatpush1.bf16.msra.mxu1 %v2279_v6  ;;  %v2327_v6 = vld [vmem:[%s3014_s11 + $0x8] sm:$0xff]  }
 0x895   : > { %1401 = vmatprep.subr.bf16.mxu1 %v2287_v17  ;;  %v2338_v17 = vld [vmem:[%s3014_s11 + $0xe0] sm:$0xff]  }
 0x896   : > { %1443 = vmatpush1.bf16.msra.mxu0 %v2282_v7  ;;  %v2328_v7 = vld [vmem:[%s3014_s11 + $0x88] sm:$0xff]  }
 0x897   : > { %1444 = vmatprep.subr.bf16.mxu0 %v2290_v19  ;;  %v2339_v19 = vld [vmem:[%s3014_s11 + $0x20] sm:$0xff]  }
 0x898   : > { %1402 = vmatpush1.bf16.msra.mxu1 %v2285_v20  ;;  %v2340_v20 = vld [vmem:[%s3014_s11 + $0xa0] sm:$0xff]  }
 0x899   : > { %1403 = vmatprep.subr.bf16.mxu1 %v2293_v24  ;;  %v2342_v24 = vld [vmem:[%s3014_s11 + $0xe8] sm:$0xff]  }
 0x89a   : > { %1445 = vmatpush1.bf16.msra.mxu0 %v2288_v21  ;;  %v2341_v21 = vld [vmem:[%s3014_s11 + $0x68] sm:$0xff]  }
 0x89b   : > { %1446 = vmatprep.subr.bf16.mxu0 %v2296_v22  ;;  %v2343_v22 = vld [vmem:[%s3014_s11 + $0x28] sm:$0xff]  }
 0x89c   : > { %1404 = vmatpush1.bf16.msra.mxu1 %v2291_v23  ;;  %v2344_v23 = vld [vmem:[%s3014_s11 + $0xa8] sm:$0xff]  }
 0x89d   : > { %1405 = vmatprep.subr.bf16.mxu1 %v2299_v26  ;;  %v2346_v26 = vld [vmem:[%s3014_s11 + $0xf0] sm:$0xff]  }
 0x89e   : > { %1447 = vmatpush1.bf16.msra.mxu0 %v2294_v25  ;;  %v2345_v25 = vld [vmem:[%s3014_s11 + $0x70] sm:$0xff]  }
 0x89f   : > { %1448 = vmatprep.subr.bf16.mxu0 %v2302_v27  ;;  %v2347_v27 = vld [vmem:[%s3014_s11 + $0x30] sm:$0xff]  }
 0x8a0   : > { %1406 = vmatpush1.bf16.msra.mxu1 %v2297_v28  ;;  %v2348_v28 = vld [vmem:[%s3014_s11 + $0xb0] sm:$0xff]  }
 0x8a1   : > { %1407 = vmatprep.subr.bf16.mxu1 %v2305_v30  ;;  %v2350_v30 = vld [vmem:[%s3014_s11 + $0xf8] sm:$0xff]  }
 0x8a2   : > { %1449 = vmatpush1.bf16.msra.mxu0 %v2300_v29  ;;  %v2349_v29 = vld [vmem:[%s3014_s11 + $0x78] sm:$0xff]  }
 0x8a3   : > { %1450 = vmatprep.subr.bf16.mxu0 %v2308_v31  ;;  %v2351_v31 = vld [vmem:[%s3014_s11 + $0x38] sm:$0xff]  }
 0x8a4   : > { %1408 = vmatpush1.bf16.msra.mxu1 %v2303_v18  ;;  %v2352_v18 = vld [vmem:[%s3014_s11 + $0xb8] sm:$0xff]  }
 0x8a5   : > { %1409 = vmatprep.subr.bf16.mxu1 %v2311_v34  ;;  %v1231_v34 = vsub.s32 3, %v2606_v56 }
 0x8a6   : > { %1451 = vmatpush1.bf16.msra.mxu0 %v2306_v33  ;;  %v1215_v33 = vld [vmem:[%s3013_s10] sm:$0xf] }
 0x8a7   : > { %1452 = vmatprep.subr.bf16.mxu0 %v2314_v35  ;;  %v1220_v35 = vrot.slane %v1215_v33, %v525_v57 }
 0x8a8   : > { %1410 = vmatpush1.bf16.msra.mxu1 %v2309_v36  ;;  %v1228_v36 = vrot.slane %v1215_v33, %v533_v58 }
 0x8a9   : > { %1411 = vmatprep.subr.bf16.mxu1 %v2317_v38  ;;  %v1232_v38 = vrot.slane %v1215_v33, %v1231_v34 }
 0x8aa   : > { %1453 = vmatpush1.bf16.msra.mxu0 %v2312_v37  ;;  %v1224_v37 = vrot.slane %v1215_v33, %v529_v60 }
 0x8ab   : > { %1454 = vmatprep.subr.bf16.mxu0 %v2320_v39 }
 0x8ac   : > { %1412 = vmatpush1.bf16.msra.mxu1 %v2315_v40 }
 0x8ad   : > { %2108 = vmatprep.subr.bf16.mxu1 %v2321_v55 }
 0x8ae   : > { %1455 = vmatpush1.bf16.msra.mxu0 %v2318_v41 }
 0x8af   : > { %2130 = vmatprep.subr.bf16.mxu0 %v2322_v2 }
 0x91d   : > { %v1143_v8 = vpop.xlane.xlu0 %1142 }
 0x91e   : > { %v1147_v9 = vmul.f32 0.0078125, %v1143_v8  ;;  %v2329_v8 = vld [vmem:[%s3014_s11 + $0x50] sm:$0xff]  }
 0x920   : > { %v2752_v10 = vsub.f32 %v2719_v59, %v1147_v9  ;;  %v1146_v11 = vpop.xlane.xlu1 %1145  ;;  %v2330_v9 = vld [vmem:[%s3014_s11 + $0xd0] sm:$0xff]  }
 0x921   : > { %v1148_v12 = vmul.f32 0.0078125, %v1146_v11  ;;  %v2332_v11 = vld [vmem:[%s3014_s11 + $0x90] sm:$0xff]  }
 0x922   : > { %v1151_v13 = vmul.f32 %v2752_v10, %v2752_v10 }
 0x923   : > { %v2757_v14 = vsub.f32 %v2722_v63, %v1148_v12  ;;  %v2333_v12 = vld [vmem:[%s3014_s11 + $0x58] sm:$0xff]  }
 0x924   : > { %1153 = vadd.xlane.f32.xlu0 %v1151_v13  ;;  %v2334_v13 = vld [vmem:[%s3014_s11 + $0xd8] sm:$0xff]  }
 0x925   : > { %v1152_v15 = vmul.f32 %v2757_v14, %v2757_v14 }
 0x927   : > { %v1155_v16 = vsel %vm448_vm0, %v1152_v15, 0.0  ;;  %v2336_v15 = vld [vmem:[%s3014_s11 + $0x98] sm:$0xff]  }
 0x928   : > { %1156 = vadd.xlane.f32.xlu1 %v1155_v16  ;;  %v2337_v16 = vld [vmem:[%s3014_s11 + $0x60] sm:$0xff]  }
 0x9b1   : > { %v1154_v42 = vpop.xlane.xlu0 %1153 }
 0x9b2   : > { %v1158_v43 = vmul.f32 0.0078125, %v1154_v42 }
 0x9b4   : > { %v1160_v44 = vadd.f32 1e-05, %v1158_v43 }
 0x9b5   : > { %v1157_v45 = vpop.xlane.xlu1 %1156 }
 0x9b6   : > { %2373 = vrsqrt.f32 %v1160_v44  ;;  %v1159_v46 = vmul.f32 0.0078125, %v1157_v45 }
 0x9b8   : > { %v1161_v47 = vadd.f32 1e-05, %v1159_v46 }
 0x9ba   : > { %2375 = vrsqrt.f32 %v1161_v47 }
 0x9c0   : > { %v2374_v48 = vpop.eup %2373 }
 0x9c1   : > { %v1164_v5 = vmul.f32 %v2374_v48, %v2752_v10  ;;  %v2331_v10 = vld [vmem:[%s3014_s11 + $0x10] sm:$0xff]  }
 0x9c3   : > { %v1172_v52 = vmul.f32 %v2011_v49, %v1164_v5 }
 0x9c4   : > { %v2376_v50 = vpop.eup %2375 }
 0x9c5   : > { %v1165_v51 = vmul.f32 %v2376_v50, %v2757_v14  ;;  %v1180_v62 = vadd.f32 %v2012_v53, %v1172_v52  ;;  %v2335_v14 = vld [vmem:[%s3014_s11 + $0x18] sm:$0xff]  }
 0x9c7   : > { %v1173_v54 = vmul.f32 %v2011_v49, %v1165_v51 }
 0x9c9   : > { %v1181_v61 = vadd.f32 %v2012_v53, %v1173_v54 }
 0x9cb   : > { %v1182_v32 = vpack.c.bf16 %v1181_v61, %v1180_v62 }
 0x9cd   : > { %1430 = vmatmul.mubr.bf16.vlgmr.msra.gmra.mrb[20].mxu1 %v1182_v32  ;;  %1473 = vmatmul.mubr.bf16.vlgmr.msra.gmra.mrb[8].mxu0 %v1182_v32 }
 0x9ce   : > { %2109 = vmatpush3.bf16.msra.mxu1 %v2323_v1  ;;  %2131 = vmatpush3.bf16.msra.mxu0 %v2324_v0 }
 0x9cf   : > { %2110 = vmatprep.subr.bf16.mxu1 %v2325_v3  ;;  %2132 = vmatprep.subr.bf16.mxu0 %v2326_v4 }
 0x9d2   : > { %2111 = vmatpush3.bf16.msra.mxu1 %v2327_v6  ;;  %2133 = vmatpush3.bf16.msra.mxu0 %v2328_v7 }
 0x9d3   : > { %2112 = vmatprep.subr.bf16.mxu1 %v2329_v8  ;;  %2134 = vmatprep.subr.bf16.mxu0 %v2330_v9 }
 0x9d6   : > { %2113 = vmatpush3.bf16.msra.mxu1 %v2331_v10  ;;  %2135 = vmatpush3.bf16.msra.mxu0 %v2332_v11 }
 0x9d7   : > { %2114 = vmatprep.subr.bf16.mxu1 %v2333_v12  ;;  %2136 = vmatprep.subr.bf16.mxu0 %v2334_v13 }
 0x9da   : > { %2115 = vmatpush3.bf16.msra.mxu1 %v2335_v14  ;;  %2137 = vmatpush3.bf16.msra.mxu0 %v2336_v15 }
 0x9db   : > { %2116 = vmatprep.subr.bf16.mxu1 %v2337_v16  ;;  %2138 = vmatprep.subr.bf16.mxu0 %v2338_v17 }
 0x9de   : > { %2117 = vmatpush3.bf16.msra.mxu1 %v2339_v19  ;;  %2139 = vmatpush3.bf16.msra.mxu0 %v2340_v20 }
 0x9df   : > { %2118 = vmatprep.subr.bf16.mxu1 %v2341_v21  ;;  %2140 = vmatprep.subr.bf16.mxu0 %v2342_v24 }
 0x9e2   : > { %2119 = vmatpush3.bf16.msra.mxu1 %v2343_v22  ;;  %2141 = vmatpush3.bf16.msra.mxu0 %v2344_v23 }
 0x9e3   : > { %2120 = vmatprep.subr.bf16.mxu1 %v2345_v25  ;;  %2142 = vmatprep.subr.bf16.mxu0 %v2346_v26 }
 0x9e6   : > { %2121 = vmatpush3.bf16.msra.mxu1 %v2347_v27  ;;  %2143 = vmatpush3.bf16.msra.mxu0 %v2348_v28 }
 0x9e7   : > { %2122 = vmatprep.subr.bf16.mxu1 %v2349_v29  ;;  %2144 = vmatprep.subr.bf16.mxu0 %v2350_v30 }
 0x9ea   : > { %2123 = vmatpush3.bf16.msra.mxu1 %v2351_v31  ;;  %2145 = vmatpush3.bf16.msra.mxu0 %v2352_v18 }
 0xaa0   : > { %v1431_v39 = vpop.f32.mrb[20].mxu1  ;;  %v1474_v40 = vpop.f32.mrb[8].mxu0 }
 0xaa1   : > { %v2948_v41 = vadd.f32 %v1431_v39, %v1220_v35  ;;  %v2950_v42 = vadd.f32 %v1474_v40, %v1228_v36  ;;  %v1433_v43 = vpop.f32.mrb[21].mxu1  ;;  %v1476_v44 = vpop.f32.mrb[9].mxu0 }
 0xaa2   : > { %v2952_v45 = vadd.f32 %v1433_v43, %v1224_v37  ;;  %v2954_v46 = vadd.f32 %v1476_v44, %v1232_v38  ;;  %v1435_v57 = vpop.f32.mrb[22].mxu1  ;;  %v1478_v47 = vpop.f32.mrb[10].mxu0 }
 0xaa3   : > { %v1491_v58 = vmul.f32 0.044715, %v2948_v41  ;;  %v1493_v56 = vmul.f32 0.044715, %v2950_v42  ;;  %v1436_v60 = vadd.f32 %v1435_v57, %v1220_v35  ;;  %v1479_v48 = vadd.f32 %v1478_v47, %v1228_v36  ;;  %v1437_v5 = vpop.f32.mrb[23].mxu1  ;;  %v1480_v49 = vpop.f32.mrb[11].mxu0 }
 0xaa4   : > { %v1492_v50 = vmul.f32 0.044715, %v2952_v45  ;;  %v1494_v51 = vmul.f32 0.044715, %v2954_v46  ;;  %v2960_v52 = vadd.f32 %v1437_v5, %v1224_v37  ;;  %v2962_v53 = vadd.f32 %v1480_v49, %v1232_v38 }
 0xaa5   : > { %v1499_v54 = vmul.f32 %v1491_v58, %v2948_v41  ;;  %v1501_v62 = vmul.f32 %v1493_v56, %v2950_v42  ;;  %v1495_v61 = vmul.f32 0.044715, %v1436_v60  ;;  %v1497_v32 = vmul.f32 0.044715, %v1479_v48 }
 0xaa6   : > { %v1500_v55 = vmul.f32 %v1492_v50, %v2952_v45  ;;  %v1502_v2 = vmul.f32 %v1494_v51, %v2954_v46  ;;  %v1496_v1 = vmul.f32 0.044715, %v2960_v52  ;;  %v1498_v0 = vmul.f32 0.044715, %v2962_v53 }
 0xaa7   : > { %v1507_v3 = vmul.f32 %v1499_v54, %v2948_v41  ;;  %v1509_v4 = vmul.f32 %v1501_v62, %v2950_v42  ;;  %v1503_v6 = vmul.f32 %v1495_v61, %v1436_v60  ;;  %v1505_v7 = vmul.f32 %v1497_v32, %v1479_v48 }
 0xaa8   : > { %v1508_v8 = vmul.f32 %v1500_v55, %v2952_v45  ;;  %v1510_v9 = vmul.f32 %v1502_v2, %v2954_v46  ;;  %v1504_v10 = vmul.f32 %v1496_v1, %v2960_v52  ;;  %v1506_v11 = vmul.f32 %v1498_v0, %v2962_v53 }
 0xaa9   : > { %v1515_v12 = vadd.f32 %v1507_v3, %v2948_v41  ;;  %v1517_v13 = vadd.f32 %v1509_v4, %v2950_v42  ;;  %v1511_v14 = vmul.f32 %v1503_v6, %v1436_v60  ;;  %v1513_v15 = vmul.f32 %v1505_v7, %v1479_v48 }
 0xaaa   : > { %v1512_v16 = vmul.f32 %v1504_v10, %v2960_v52  ;;  %v1514_v17 = vmul.f32 %v1506_v11, %v2962_v53  ;;  %v1516_v22 = vadd.f32 %v1508_v8, %v2952_v45  ;;  %v1518_v27 = vadd.f32 %v1510_v9, %v2954_v46 }
 0xaab   : > { %v1523_v19 = vmul.f32 0.7978846, %v1515_v12  ;;  %v1525_v20 = vmul.f32 0.7978846, %v1517_v13  ;;  %v1519_v21 = vadd.f32 %v1511_v14, %v1436_v60  ;;  %v1521_v24 = vadd.f32 %v1513_v15, %v1479_v48 }
 0xaac   : > { %v1520_v23 = vadd.f32 %v1512_v16, %v2960_v52  ;;  %v1524_v28 = vmul.f32 0.7978846, %v1516_v22  ;;  %v1522_v30 = vadd.f32 %v1514_v17, %v2962_v53  ;;  %v1526_v31 = vmul.f32 0.7978846, %v1518_v27 }
 0xaad   : > { %2377 = vtanh.f32 %v1523_v19  ;;  %v1527_v25 = vmul.f32 0.7978846, %v1519_v21  ;;  %v1529_v26 = vmul.f32 0.7978846, %v1521_v24  ;;  %v1483_v39 = vmul.f32 0.5, %v2948_v41 }
 0xaae   : > { %2379 = vtanh.f32 %v1525_v20  ;;  %v1528_v29 = vmul.f32 0.7978846, %v1520_v23  ;;  %v1530_v18 = vmul.f32 0.7978846, %v1522_v30  ;;  %v1487_v40 = vmul.f32 0.5, %v1436_v60 }
 0xaaf   : > { %2381 = vtanh.f32 %v1527_v25  ;;  %v1485_v57 = vmul.f32 0.5, %v2950_v42  ;;  %v1489_v47 = vmul.f32 0.5, %v1479_v48  ;;  %v1484_v5 = vmul.f32 0.5, %v2952_v45 }
 0xab0   : > { %2383 = vtanh.f32 %v1529_v26  ;;  %v1488_v62 = vmul.f32 0.5, %v2960_v52  ;;  %v1486_v60 = vmul.f32 0.5, %v2954_v46  ;;  %v1490_v2 = vmul.f32 0.5, %v2962_v53  ;;  %v2045_v46 = vld [vmem:[%s3015_s12] ss:$0 sm:$0xff] }
 0xab1   : > { %2385 = vtanh.f32 %v1524_v28 }
 0xab2   : > { %2387 = vtanh.f32 %v1528_v29 }
 0xab3   : > { %2389 = vtanh.f32 %v1526_v31 }
 0xab4   : > { %2391 = vtanh.f32 %v1530_v18 }
 0xab7   : > { %v2378_v33 = vpop.eup %2377 }
 0xab8   : > { %v2380_v34 = vpop.eup %2379  ;;  %v1539_v35 = vadd.f32 1.0, %v2378_v33 }
 0xab9   : > { %v2382_v36 = vpop.eup %2381  ;;  %v1541_v37 = vadd.f32 1.0, %v2380_v34 }
 0xaba   : > { %v2384_v38 = vpop.eup %2383  ;;  %v1543_v43 = vadd.f32 1.0, %v2382_v36  ;;  %v1547_v50 = vmul.f32 %v1539_v35, %v1483_v39 }
 0xabb   : > { %v2386_v44 = vpop.eup %2385  ;;  %v1545_v58 = vadd.f32 1.0, %v2384_v38  ;;  %v1549_v32 = vmul.f32 %v1541_v37, %v1485_v57 }
 0xabc   : > { %v2388_v56 = vpop.eup %2387  ;;  %v1540_v49 = vadd.f32 1.0, %v2386_v44  ;;  %v1551_v51 = vmul.f32 %v1543_v43, %v1487_v40 }
 0xabd   : > { %v2390_v54 = vpop.eup %2389  ;;  %v1544_v61 = vadd.f32 1.0, %v2388_v56  ;;  %v1553_v55 = vmul.f32 %v1545_v58, %v1489_v47 }
 0xabe   : > { %v2392_v41 = vpop.eup %2391  ;;  %v1542_v42 = vadd.f32 1.0, %v2390_v54  ;;  %v1555_v48 = vpack.c.bf16 %v1551_v51, %v1547_v50  ;;  %v1548_v1 = vmul.f32 %v1540_v49, %v1484_v5 }
 0xabf   : > { %v1552_v0 = vmul.f32 %v1544_v61, %v1488_v62  ;;  %v1546_v3 = vadd.f32 1.0, %v2392_v41  ;;  %v1557_v45 = vpack.c.bf16 %v1553_v55, %v1549_v32 }
 0xac0   : > { %v1550_v6 = vmul.f32 %v1542_v42, %v1486_v60 }
 0xac1   : > { %v1556_v4 = vpack.c.bf16 %v1552_v0, %v1548_v1  ;;  %v1554_v7 = vmul.f32 %v1546_v3, %v1490_v2 }
 0xac3   : > { %1854 = vmatprep.mubr.bf16.mxu1 %v1556_v4  ;;  %v1558_v8 = vpack.c.bf16 %v1554_v7, %v1550_v6 }
 0xac4   : > { %1855 = vmatmul.mubr.bf16.vlgmr.msra.gmra.mrb[24].mxu1 %v1555_v48 }
 0xac5   : > { %1895 = vmatprep.mubr.bf16.mxu0 %v1558_v8 }
 0xac6   : > { %1896 = vmatmul.mubr.bf16.vlgmr.msra.gmra.mrb[12].mxu0 %v1557_v45 }
 0xb97   : > { %v2124_v52 = vpop.f32.mrb[24].mxu1 }
 0xb98   : > { %v2125_v53 = vpop.f32.mrb[25].mxu1 }
 0xb99   : > { %v2146_v9 = vpop.f32.mrb[12].mxu0  ;;  %v2126_v10 = vadd.f32 %v2125_v53, %v2124_v52  ;;  %v2127_v11 = vpop.f32.mrb[26].mxu1 }
 0xb9a   : > { %v2147_v12 = vpop.f32.mrb[13].mxu0  ;;  %v2128_v13 = vpop.f32.mrb[27].mxu1 }
 0xb9b   : > { %v1857_v14 = vadd.f32 %v2126_v10, %v2045_v46  ;;  %v2148_v15 = vadd.f32 %v2147_v12, %v2146_v9  ;;  %v2149_v16 = vpop.f32.mrb[14].mxu0  ;;  %v2129_v17 = vadd.f32 %v2128_v13, %v2127_v11 }
 0xb9c   : > { %v2150_v19 = vpop.f32.mrb[15].mxu0 }
 0xb9d   : > { %v1898_v20 = vadd.f32 %v2148_v15, %v1857_v14  ;;  %v1860_v21 = vadd.f32 %v2129_v17, %v2045_v46  ;;  %v2151_v24 = vadd.f32 %v2150_v19, %v2149_v16 }
 0xb9f   : > { %v1904_v22 = vadd.f32 %v1898_v20, %v2719_v59  ;;  %v1901_v23 = vadd.f32 %v2151_v24, %v1860_v21 }
 0xba1   : > { %1906 = vst [vmem:[%s440_s16] sm:$0xff] %v1904_v22  ;;  %v1905_v25 = vadd.f32 %v1901_v23, %v2722_v63 }
 0xba3   : > { %1907 = vst [vmem:[%s440_s16 + $0x8] sm:$0xf] %v1905_v25 }
 0xba4 PF: > { %s23_s25 = sadd.s32 1, %s2399_s25  }
 0xba5   : > { %p20_p4 = scmp.ge.s32.totalorder %s23_s25, 4  }
 0xba7   :  { %22 = sbr.rel (!%p20_p4) target bundleno = 1 (0x1), region = 102 }

</bundles_post_ra>
